<compile_context>
chip_gen: v6e
topology: v6e:2x2x1
jax: 0.10.0
libtpu: 0.0.40
codegen_flags: <defaults>
</compile_context>

<pallas_src>
import functools

import jax
import jax.numpy as jnp
from jax import lax
from jax.experimental import pallas as pl
from jax.experimental.pallas import tpu as pltpu

DILATIONS = (1, 2, 4)   # module hyper-parameter
NUM_ITER = 2            # module hyper-parameter
W1 = 0.3
STD_EPS = 1e-8

# Neighbour offsets in the exact order of get_kernel()'s 8 one-hot taps:
# (ky-1, kx-1) for taps (0,0),(0,1),(0,2),(1,0),(1,2),(2,0),(2,1),(2,2)
_OFFSETS = ((-1, -1), (-1, 0), (-1, 1), (0, -1), (0, 1), (1, -1), (1, 0), (1, 1))


def _tree_reduce(op, vals):
    """Pairwise (tree) reduction of a python list of arrays (exposes VALU ILP)."""
    vals = list(vals)
    while len(vals) > 1:
        nxt = [op(vals[i], vals[i + 1]) for i in range(0, len(vals) - 1, 2)]
        if len(vals) % 2:
            nxt.append(vals[-1])
        vals = nxt
    return vals[0]


# ------------- replicate-clamped neighbour taps (flat, lane-dense) -----------
#
# Arrays are (N, H*W), row-major flattened.  A neighbour tap at offset
# (oy, ox) with replicate padding is src[clamp(y+oy), clamp(x+ox)].
# Row shifts clamp for free with a single concatenate (the clamped rows are
# copies of the first/last row slab); column shifts are chained single-lane
# shifts with an edge select on a precomputed (hoisted) column mask.


def _row_shift(a, dy, h, w):
    """Value of a at row clamp(y+dy), same column.  One concatenate."""
    if dy == 0:
        return a
    p = h * w
    d = abs(dy)
    if dy > 0:
        pieces = [a[:, d * w:]] + [a[:, p - w:]] * d
    else:
        pieces = [a[:, :w]] * d + [a[:, :p - d * w]]
    return jnp.concatenate(pieces, axis=1)


def _col_planes(a, edge_l, edge_r, w, dmax):
    """Clamped column shifts of a for every offset in [-dmax, dmax]."""
    planes = {0: a}
    cur = a
    for k in range(1, dmax + 1):              # x+k neighbours (clamp right edge)
        nb = jnp.concatenate([cur[:, 1:], cur[:, -1:]], axis=1)
        cur = jnp.where(edge_r, cur, nb)
        planes[k] = cur
    cur = a
    for k in range(1, dmax + 1):              # x-k neighbours (clamp left edge)
        nb = jnp.concatenate([cur[:, :1], cur[:, :-1]], axis=1)
        cur = jnp.where(edge_l, cur, nb)
        planes[-k] = cur
    return planes


def _dilated_taps(a, edge_l, edge_r, dilations, h, w):
    """24 replicate-padded dilated-neighbour taps of a (N, H*W) plane, in the
    reference get_dilated_neighbors() order (for d in dilations: 8 offsets)."""
    cp = _col_planes(a, edge_l, edge_r, w, max(dilations))
    taps = []
    for d in dilations:
        for oy, ox in _OFFSETS:
            taps.append(_row_shift(cp[ox * d], oy * d, h, w))
    return taps


# ------------------------------- fused kernel --------------------------------


def _par2a_kernel(imgs_ref, masks_ref, l_ref, out_ref, *,
                  dilations, num_iter, h, w):
    p = h * w
    k = 8 * len(dilations)                      # 24 neighbours

    col = lax.broadcasted_iota(jnp.int32, (1, p), 1) % w
    edge_l = col == 0
    edge_r = col == w - 1

    # ------------- affinity over the image (softmax over neighbours) ---------
    x = imgs_ref[...]                           # (C, H*W) f32, lane-dense
    c = x.shape[0]
    taps = _dilated_taps(x, edge_l, edge_r, dilations, h, w)

    # unbiased std over the neighbour axis (single pass: sum & sum-of-squares)
    s1 = _tree_reduce(jnp.add, taps)
    s2 = _tree_reduce(jnp.add, [t * t for t in taps])
    mean = s1 * (1.0 / k)
    var = jnp.maximum((s2 - s1 * mean) * (1.0 / (k - 1)), 0.0)
    inv = pl.reciprocal(jnp.sqrt(var) + STD_EPS, approx=True)   # 1/(std+eps)

    # Fold 1/C, 1/w1^2 and 1/(std+eps)^2 into one per-channel coefficient:
    #   logit_k = mean_c[ -(|nb-ctr|/(std+eps)/w1)^2 ] = sum_c (nb-ctr)^2*coef_c
    coef = inv * inv * (-1.0 / (c * W1 * W1))   # (C, H*W)

    logits = []
    for t in taps:
        diff = t - x
        logits.append(jnp.sum(diff * diff * coef, axis=0, keepdims=True))

    # numerically-stable softmax over the K neighbours (EUP reciprocal)
    mx = _tree_reduce(jnp.maximum, logits)
    exps = [jnp.exp(lg - mx) for lg in logits]
    inv_den = pl.reciprocal(_tree_reduce(jnp.add, exps), approx=True)
    aff = [e * inv_den for e in exps]           # 24 x (1, H*W): no Cm broadcast

    # ---------------- mask propagation (num_iter fused iterations) -----------
    l_scalar = l_ref[0, 0]                      # batch-global tv_loss scalar
    cur = masks_ref[...]                        # (Cm, H*W)
    for _ in range(num_iter):
        mtaps = _dilated_taps(cur, edge_l, edge_r, dilations, h, w)
        weighted = [mtaps[i] * aff[i] for i in range(k)]   # (1,P) bcasts over Cm
        cur = _tree_reduce(jnp.add, weighted) * l_scalar
    out_ref[...] = cur.astype(out_ref.dtype)


# --------------------------------- wrapper -----------------------------------


def _interpolate_bilinear_align_corners(x, out_h, out_w):
    """F.interpolate(..., mode='bilinear', align_corners=True) in plain JAX."""
    b, c, h, w = x.shape
    if (h, w) == (out_h, out_w):
        return x
    ys = jnp.linspace(0.0, float(h - 1), out_h) if out_h > 1 else jnp.zeros((1,))
    xs = jnp.linspace(0.0, float(w - 1), out_w) if out_w > 1 else jnp.zeros((1,))
    y0 = jnp.floor(ys).astype(jnp.int32)
    y1 = jnp.minimum(y0 + 1, h - 1)
    wy = (ys - y0.astype(ys.dtype))[None, None, :, None]
    x0 = jnp.floor(xs).astype(jnp.int32)
    x1 = jnp.minimum(x0 + 1, w - 1)
    wx = (xs - x0.astype(xs.dtype))[None, None, None, :]
    top = x[:, :, y0, :]
    bot = x[:, :, y1, :]
    v = top * (1.0 - wy) + bot * wy
    left = v[:, :, :, x0]
    right = v[:, :, :, x1]
    return left * (1.0 - wx) + right * wx


def _tv_loss(x):
    """tv_loss() from the reference module (scalar over the whole batch)."""
    t1 = jnp.concatenate([x[:, :, 1:, :], x[:, :, -1:, :]], axis=2)
    t2 = jnp.concatenate([x[:, :, :, 1:], x[:, :, :, -1:]], axis=3)
    return jnp.sum((x - t1) ** 2 + (x - t2) ** 2)


def par2a_forward(imgs, masks, dilations=DILATIONS, num_iter=NUM_ITER):
    """Reproduces PAR2a(dilations, num_iter).forward(imgs, masks)."""
    b, c, h, w = imgs.shape
    imgs = imgs.astype(jnp.float32)
    masks = _interpolate_bilinear_align_corners(masks.astype(jnp.float32), h, w)
    cm = masks.shape[1]
    l = _tv_loss(masks).reshape(1, 1).astype(jnp.float32)   # batch-global scalar

    p = h * w
    assert p % 128 == 0, "TODO(synk): pad H*W to a 128-multiple for odd sizes"
    imgs_flat = imgs.reshape(b, c, p)
    masks_flat = masks.reshape(b, cm, p)

    kern = functools.partial(_par2a_kernel, dilations=tuple(dilations),
                             num_iter=num_iter, h=h, w=w)

    # TODO(synk): for real image sizes, add a spatial (row-tile) grid axis with
    # a 2*max(dilations) halo so the working set fits v7x's 64 MiB VMEM.
    out_flat = pl.pallas_call(
        kern,
        out_shape=jax.ShapeDtypeStruct((b, cm, p), jnp.float32),
        grid_spec=pltpu.PrefetchScalarGridSpec(
            num_scalar_prefetch=0,
            grid=(b,),
            in_specs=[
                pl.BlockSpec((None, c, p), lambda i: (i, 0, 0)),
                pl.BlockSpec((None, cm, p), lambda i: (i, 0, 0)),
                pl.BlockSpec(memory_space=pltpu.MemorySpace.SMEM),
            ],
            out_specs=pl.BlockSpec((None, cm, p), lambda i: (i, 0, 0)),
        ),
        compiler_params=pltpu.CompilerParams(
            dimension_semantics=("parallel",),
            vmem_limit_bytes=32 * 1024 * 1024,
        ),
    )(imgs_flat, masks_flat, l)
    return out_flat.reshape(b, cm, h, w)


# ----------------------------------- main ------------------------------------

if __name__ == "__main__":
    key = jax.random.PRNGKey(0)
    k_img, k_msk = jax.random.split(key)
    # imgs: (B=2, C=3, H=16, W=16); masks: (B=2, Cm=4, 8, 8) -> upsampled to 16x16
    imgs = jax.random.normal(k_img, (2, 3, 16, 16), dtype=jnp.float32)
    masks = jax.random.uniform(k_msk, (2, 4, 8, 8), dtype=jnp.float32)

    out = par2a_forward(imgs, masks)
    out = jax.block_until_ready(out)
    assert out.shape == (2, 4, 16, 16), out.shape
    assert bool(jnp.all(jnp.isfinite(out)))
    print("KERNEL_OK")
</pallas_src>

<mosaic_0001>
module attributes {stable_mosaic.version = 11 : i64} {
  func.func @_par2a_kernel(%arg0: i32, %arg1: memref<1x3x256xf32, #tpu.memory_space<vmem>>, %arg2: memref<1x4x256xf32, #tpu.memory_space<vmem>>, %arg3: memref<1x1xf32, #tpu.memory_space<smem>>, %arg4: memref<1x4x256xf32, #tpu.memory_space<vmem>>) attributes {dimension_semantics = [#tpu.dimension_semantics<parallel>], iteration_bounds = array<i64: 2>, scalar_prefetch = 0 : i64, scratch_operands = 0 : i64, tpu.core_type = #tpu.core_type<tc>, window_params = [{transform_indices = @transform_0, window_bounds = array<i64: 1, 3, 256>}, {transform_indices = @transform_1, window_bounds = array<i64: 1, 4, 256>}, {transform_indices = @transform_2, window_bounds = array<i64: 1, 1>}, {transform_indices = @transform_3, window_bounds = array<i64: 1, 4, 256>}]} {
    %0 = tpu.iota {dimensions = array<i32: 1>} : vector<1x256xi32>
    %c16_i32 = arith.constant 16 : i32
    %c0_i32 = arith.constant 0 : i32
    %1 = arith.cmpi eq, %c16_i32, %c0_i32 : i32
    %c1_i32 = arith.constant 1 : i32
    %2 = arith.select %1, %c1_i32, %c16_i32 : i32
    %3 = vector.broadcast %2 : i32 to vector<1x256xi32>
    %4 = arith.remsi %0, %3 : vector<1x256xi32>
    %c0_i32_0 = arith.constant 0 : i32
    %5 = vector.broadcast %c0_i32_0 : i32 to vector<1x256xi32>
    %6 = arith.cmpi ne, %4, %5 : vector<1x256xi32>
    %c0_i32_1 = arith.constant 0 : i32
    %7 = vector.broadcast %c0_i32_1 : i32 to vector<1x256xi32>
    %8 = arith.cmpi slt, %4, %7 : vector<1x256xi32>
    %c0_i32_2 = arith.constant 0 : i32
    %9 = arith.cmpi slt, %2, %c0_i32_2 : i32
    %10 = vector.broadcast %9 : i1 to vector<1x256xi1>
    %11 = vector.broadcast %10 : vector<1x256xi1> to vector<1x256xi1>
    %12 = arith.xori %8, %11 : vector<1x256xi1>
    %13 = arith.andi %12, %6 : vector<1x256xi1>
    %14 = vector.broadcast %2 : i32 to vector<1x256xi32>
    %15 = arith.addi %4, %14 : vector<1x256xi32>
    %16 = arith.select %13, %15, %4 : vector<1x256xi1>, vector<1x256xi32>
    %c0_i32_3 = arith.constant 0 : i32
    %17 = vector.broadcast %c0_i32_3 : i32 to vector<1x256xi32>
    %18 = arith.cmpi eq, %16, %17 : vector<1x256xi32>
    %c15_i32 = arith.constant 15 : i32
    %19 = vector.broadcast %c15_i32 : i32 to vector<1x256xi32>
    %20 = arith.cmpi eq, %16, %19 : vector<1x256xi32>
    %c0 = arith.constant 0 : index
    %c0_4 = arith.constant 0 : index
    %c0_5 = arith.constant 0 : index
    %21 = vector.load %arg1[%c0, %c0_4, %c0_5] : memref<1x3x256xf32, #tpu.memory_space<vmem>>, vector<1x3x256xf32>
    %22 = vector.shape_cast %21 : vector<1x3x256xf32> to vector<3x256xf32>
    %23 = vector.extract_strided_slice %22 {offsets = [0, 1], sizes = [3, 255], strides = [1, 1]} : vector<3x256xf32> to vector<3x255xf32>
    %24 = vector.extract_strided_slice %22 {offsets = [0, 255], sizes = [3, 1], strides = [1, 1]} : vector<3x256xf32> to vector<3x1xf32>
    %25 = tpu.concatenate %23, %24 in 1 : vector<3x255xf32>, vector<3x1xf32> -> vector<3x256xf32>
    %26 = vector.shape_cast %20 : vector<1x256xi1> to vector<1x256xi1>
    %27 = vector.broadcast %26 : vector<1x256xi1> to vector<3x256xi1>
    %28 = arith.select %27, %22, %25 : vector<3x256xi1>, vector<3x256xf32>
    %29 = vector.extract_strided_slice %28 {offsets = [0, 1], sizes = [3, 255], strides = [1, 1]} : vector<3x256xf32> to vector<3x255xf32>
    %30 = vector.extract_strided_slice %28 {offsets = [0, 255], sizes = [3, 1], strides = [1, 1]} : vector<3x256xf32> to vector<3x1xf32>
    %31 = tpu.concatenate %29, %30 in 1 : vector<3x255xf32>, vector<3x1xf32> -> vector<3x256xf32>
    %32 = vector.shape_cast %20 : vector<1x256xi1> to vector<1x256xi1>
    %33 = vector.broadcast %32 : vector<1x256xi1> to vector<3x256xi1>
    %34 = arith.select %33, %28, %31 : vector<3x256xi1>, vector<3x256xf32>
    %35 = vector.extract_strided_slice %34 {offsets = [0, 1], sizes = [3, 255], strides = [1, 1]} : vector<3x256xf32> to vector<3x255xf32>
    %36 = vector.extract_strided_slice %34 {offsets = [0, 255], sizes = [3, 1], strides = [1, 1]} : vector<3x256xf32> to vector<3x1xf32>
    %37 = tpu.concatenate %35, %36 in 1 : vector<3x255xf32>, vector<3x1xf32> -> vector<3x256xf32>
    %38 = vector.shape_cast %20 : vector<1x256xi1> to vector<1x256xi1>
    %39 = vector.broadcast %38 : vector<1x256xi1> to vector<3x256xi1>
    %40 = arith.select %39, %34, %37 : vector<3x256xi1>, vector<3x256xf32>
    %41 = vector.extract_strided_slice %40 {offsets = [0, 1], sizes = [3, 255], strides = [1, 1]} : vector<3x256xf32> to vector<3x255xf32>
    %42 = vector.extract_strided_slice %40 {offsets = [0, 255], sizes = [3, 1], strides = [1, 1]} : vector<3x256xf32> to vector<3x1xf32>
    %43 = tpu.concatenate %41, %42 in 1 : vector<3x255xf32>, vector<3x1xf32> -> vector<3x256xf32>
    %44 = vector.shape_cast %20 : vector<1x256xi1> to vector<1x256xi1>
    %45 = vector.broadcast %44 : vector<1x256xi1> to vector<3x256xi1>
    %46 = arith.select %45, %40, %43 : vector<3x256xi1>, vector<3x256xf32>
    %47 = vector.extract_strided_slice %22 {offsets = [0, 0], sizes = [3, 1], strides = [1, 1]} : vector<3x256xf32> to vector<3x1xf32>
    %48 = vector.extract_strided_slice %22 {offsets = [0, 0], sizes = [3, 255], strides = [1, 1]} : vector<3x256xf32> to vector<3x255xf32>
    %49 = tpu.concatenate %47, %48 in 1 : vector<3x1xf32>, vector<3x255xf32> -> vector<3x256xf32>
    %50 = vector.shape_cast %18 : vector<1x256xi1> to vector<1x256xi1>
    %51 = vector.broadcast %50 : vector<1x256xi1> to vector<3x256xi1>
    %52 = arith.select %51, %22, %49 : vector<3x256xi1>, vector<3x256xf32>
    %53 = vector.extract_strided_slice %52 {offsets = [0, 0], sizes = [3, 1], strides = [1, 1]} : vector<3x256xf32> to vector<3x1xf32>
    %54 = vector.extract_strided_slice %52 {offsets = [0, 0], sizes = [3, 255], strides = [1, 1]} : vector<3x256xf32> to vector<3x255xf32>
    %55 = tpu.concatenate %53, %54 in 1 : vector<3x1xf32>, vector<3x255xf32> -> vector<3x256xf32>
    %56 = vector.shape_cast %18 : vector<1x256xi1> to vector<1x256xi1>
    %57 = vector.broadcast %56 : vector<1x256xi1> to vector<3x256xi1>
    %58 = arith.select %57, %52, %55 : vector<3x256xi1>, vector<3x256xf32>
    %59 = vector.extract_strided_slice %58 {offsets = [0, 0], sizes = [3, 1], strides = [1, 1]} : vector<3x256xf32> to vector<3x1xf32>
    %60 = vector.extract_strided_slice %58 {offsets = [0, 0], sizes = [3, 255], strides = [1, 1]} : vector<3x256xf32> to vector<3x255xf32>
    %61 = tpu.concatenate %59, %60 in 1 : vector<3x1xf32>, vector<3x255xf32> -> vector<3x256xf32>
    %62 = vector.shape_cast %18 : vector<1x256xi1> to vector<1x256xi1>
    %63 = vector.broadcast %62 : vector<1x256xi1> to vector<3x256xi1>
    %64 = arith.select %63, %58, %61 : vector<3x256xi1>, vector<3x256xf32>
    %65 = vector.extract_strided_slice %64 {offsets = [0, 0], sizes = [3, 1], strides = [1, 1]} : vector<3x256xf32> to vector<3x1xf32>
    %66 = vector.extract_strided_slice %64 {offsets = [0, 0], sizes = [3, 255], strides = [1, 1]} : vector<3x256xf32> to vector<3x255xf32>
    %67 = tpu.concatenate %65, %66 in 1 : vector<3x1xf32>, vector<3x255xf32> -> vector<3x256xf32>
    %68 = vector.shape_cast %18 : vector<1x256xi1> to vector<1x256xi1>
    %69 = vector.broadcast %68 : vector<1x256xi1> to vector<3x256xi1>
    %70 = arith.select %69, %64, %67 : vector<3x256xi1>, vector<3x256xf32>
    %71 = vector.extract_strided_slice %52 {offsets = [0, 0], sizes = [3, 16], strides = [1, 1]} : vector<3x256xf32> to vector<3x16xf32>
    %72 = vector.extract_strided_slice %52 {offsets = [0, 0], sizes = [3, 240], strides = [1, 1]} : vector<3x256xf32> to vector<3x240xf32>
    %73 = tpu.concatenate %71, %72 in 1 : vector<3x16xf32>, vector<3x240xf32> -> vector<3x256xf32>
    %74 = vector.extract_strided_slice %22 {offsets = [0, 0], sizes = [3, 16], strides = [1, 1]} : vector<3x256xf32> to vector<3x16xf32>
    %75 = vector.extract_strided_slice %22 {offsets = [0, 0], sizes = [3, 240], strides = [1, 1]} : vector<3x256xf32> to vector<3x240xf32>
    %76 = tpu.concatenate %74, %75 in 1 : vector<3x16xf32>, vector<3x240xf32> -> vector<3x256xf32>
    %77 = vector.extract_strided_slice %28 {offsets = [0, 0], sizes = [3, 16], strides = [1, 1]} : vector<3x256xf32> to vector<3x16xf32>
    %78 = vector.extract_strided_slice %28 {offsets = [0, 0], sizes = [3, 240], strides = [1, 1]} : vector<3x256xf32> to vector<3x240xf32>
    %79 = tpu.concatenate %77, %78 in 1 : vector<3x16xf32>, vector<3x240xf32> -> vector<3x256xf32>
    %80 = vector.extract_strided_slice %52 {offsets = [0, 16], sizes = [3, 240], strides = [1, 1]} : vector<3x256xf32> to vector<3x240xf32>
    %81 = vector.extract_strided_slice %52 {offsets = [0, 240], sizes = [3, 16], strides = [1, 1]} : vector<3x256xf32> to vector<3x16xf32>
    %82 = tpu.concatenate %80, %81 in 1 : vector<3x240xf32>, vector<3x16xf32> -> vector<3x256xf32>
    %83 = vector.extract_strided_slice %22 {offsets = [0, 16], sizes = [3, 240], strides = [1, 1]} : vector<3x256xf32> to vector<3x240xf32>
    %84 = vector.extract_strided_slice %22 {offsets = [0, 240], sizes = [3, 16], strides = [1, 1]} : vector<3x256xf32> to vector<3x16xf32>
    %85 = tpu.concatenate %83, %84 in 1 : vector<3x240xf32>, vector<3x16xf32> -> vector<3x256xf32>
    %86 = vector.extract_strided_slice %28 {offsets = [0, 16], sizes = [3, 240], strides = [1, 1]} : vector<3x256xf32> to vector<3x240xf32>
    %87 = vector.extract_strided_slice %28 {offsets = [0, 240], sizes = [3, 16], strides = [1, 1]} : vector<3x256xf32> to vector<3x16xf32>
    %88 = tpu.concatenate %86, %87 in 1 : vector<3x240xf32>, vector<3x16xf32> -> vector<3x256xf32>
    %89 = vector.extract_strided_slice %58 {offsets = [0, 0], sizes = [3, 16], strides = [1, 1]} : vector<3x256xf32> to vector<3x16xf32>
    %90 = vector.extract_strided_slice %58 {offsets = [0, 0], sizes = [3, 224], strides = [1, 1]} : vector<3x256xf32> to vector<3x224xf32>
    %91 = tpu.concatenate %89, %89, %90 in 1 : vector<3x16xf32>, vector<3x16xf32>, vector<3x224xf32> -> vector<3x256xf32>
    %92 = vector.extract_strided_slice %22 {offsets = [0, 0], sizes = [3, 16], strides = [1, 1]} : vector<3x256xf32> to vector<3x16xf32>
    %93 = vector.extract_strided_slice %22 {offsets = [0, 0], sizes = [3, 224], strides = [1, 1]} : vector<3x256xf32> to vector<3x224xf32>
    %94 = tpu.concatenate %92, %92, %93 in 1 : vector<3x16xf32>, vector<3x16xf32>, vector<3x224xf32> -> vector<3x256xf32>
    %95 = vector.extract_strided_slice %34 {offsets = [0, 0], sizes = [3, 16], strides = [1, 1]} : vector<3x256xf32> to vector<3x16xf32>
    %96 = vector.extract_strided_slice %34 {offsets = [0, 0], sizes = [3, 224], strides = [1, 1]} : vector<3x256xf32> to vector<3x224xf32>
    %97 = tpu.concatenate %95, %95, %96 in 1 : vector<3x16xf32>, vector<3x16xf32>, vector<3x224xf32> -> vector<3x256xf32>
    %98 = vector.extract_strided_slice %58 {offsets = [0, 32], sizes = [3, 224], strides = [1, 1]} : vector<3x256xf32> to vector<3x224xf32>
    %99 = vector.extract_strided_slice %58 {offsets = [0, 240], sizes = [3, 16], strides = [1, 1]} : vector<3x256xf32> to vector<3x16xf32>
    %100 = tpu.concatenate %98, %99, %99 in 1 : vector<3x224xf32>, vector<3x16xf32>, vector<3x16xf32> -> vector<3x256xf32>
    %101 = vector.extract_strided_slice %22 {offsets = [0, 32], sizes = [3, 224], strides = [1, 1]} : vector<3x256xf32> to vector<3x224xf32>
    %102 = vector.extract_strided_slice %22 {offsets = [0, 240], sizes = [3, 16], strides = [1, 1]} : vector<3x256xf32> to vector<3x16xf32>
    %103 = tpu.concatenate %101, %102, %102 in 1 : vector<3x224xf32>, vector<3x16xf32>, vector<3x16xf32> -> vector<3x256xf32>
    %104 = vector.extract_strided_slice %34 {offsets = [0, 32], sizes = [3, 224], strides = [1, 1]} : vector<3x256xf32> to vector<3x224xf32>
    %105 = vector.extract_strided_slice %34 {offsets = [0, 240], sizes = [3, 16], strides = [1, 1]} : vector<3x256xf32> to vector<3x16xf32>
    %106 = tpu.concatenate %104, %105, %105 in 1 : vector<3x224xf32>, vector<3x16xf32>, vector<3x16xf32> -> vector<3x256xf32>
    %107 = vector.extract_strided_slice %70 {offsets = [0, 0], sizes = [3, 16], strides = [1, 1]} : vector<3x256xf32> to vector<3x16xf32>
    %108 = vector.extract_strided_slice %70 {offsets = [0, 0], sizes = [3, 192], strides = [1, 1]} : vector<3x256xf32> to vector<3x192xf32>
    %109 = tpu.concatenate %107, %107, %107, %107, %108 in 1 : vector<3x16xf32>, vector<3x16xf32>, vector<3x16xf32>, vector<3x16xf32>, vector<3x192xf32> -> vector<3x256xf32>
    %110 = vector.extract_strided_slice %22 {offsets = [0, 0], sizes = [3, 16], strides = [1, 1]} : vector<3x256xf32> to vector<3x16xf32>
    %111 = vector.extract_strided_slice %22 {offsets = [0, 0], sizes = [3, 192], strides = [1, 1]} : vector<3x256xf32> to vector<3x192xf32>
    %112 = tpu.concatenate %110, %110, %110, %110, %111 in 1 : vector<3x16xf32>, vector<3x16xf32>, vector<3x16xf32>, vector<3x16xf32>, vector<3x192xf32> -> vector<3x256xf32>
    %113 = vector.extract_strided_slice %46 {offsets = [0, 0], sizes = [3, 16], strides = [1, 1]} : vector<3x256xf32> to vector<3x16xf32>
    %114 = vector.extract_strided_slice %46 {offsets = [0, 0], sizes = [3, 192], strides = [1, 1]} : vector<3x256xf32> to vector<3x192xf32>
    %115 = tpu.concatenate %113, %113, %113, %113, %114 in 1 : vector<3x16xf32>, vector<3x16xf32>, vector<3x16xf32>, vector<3x16xf32>, vector<3x192xf32> -> vector<3x256xf32>
    %116 = vector.extract_strided_slice %70 {offsets = [0, 64], sizes = [3, 192], strides = [1, 1]} : vector<3x256xf32> to vector<3x192xf32>
    %117 = vector.extract_strided_slice %70 {offsets = [0, 240], sizes = [3, 16], strides = [1, 1]} : vector<3x256xf32> to vector<3x16xf32>
    %118 = tpu.concatenate %116, %117, %117, %117, %117 in 1 : vector<3x192xf32>, vector<3x16xf32>, vector<3x16xf32>, vector<3x16xf32>, vector<3x16xf32> -> vector<3x256xf32>
    %119 = vector.extract_strided_slice %22 {offsets = [0, 64], sizes = [3, 192], strides = [1, 1]} : vector<3x256xf32> to vector<3x192xf32>
    %120 = vector.extract_strided_slice %22 {offsets = [0, 240], sizes = [3, 16], strides = [1, 1]} : vector<3x256xf32> to vector<3x16xf32>
    %121 = tpu.concatenate %119, %120, %120, %120, %120 in 1 : vector<3x192xf32>, vector<3x16xf32>, vector<3x16xf32>, vector<3x16xf32>, vector<3x16xf32> -> vector<3x256xf32>
    %122 = vector.extract_strided_slice %46 {offsets = [0, 64], sizes = [3, 192], strides = [1, 1]} : vector<3x256xf32> to vector<3x192xf32>
    %123 = vector.extract_strided_slice %46 {offsets = [0, 240], sizes = [3, 16], strides = [1, 1]} : vector<3x256xf32> to vector<3x16xf32>
    %124 = tpu.concatenate %122, %123, %123, %123, %123 in 1 : vector<3x192xf32>, vector<3x16xf32>, vector<3x16xf32>, vector<3x16xf32>, vector<3x16xf32> -> vector<3x256xf32>
    %125 = arith.addf %73, %76 : vector<3x256xf32>
    %126 = arith.addf %79, %52 : vector<3x256xf32>
    %127 = arith.addf %28, %82 : vector<3x256xf32>
    %128 = arith.addf %85, %88 : vector<3x256xf32>
    %129 = arith.addf %91, %94 : vector<3x256xf32>
    %130 = arith.addf %97, %58 : vector<3x256xf32>
    %131 = arith.addf %34, %100 : vector<3x256xf32>
    %132 = arith.addf %103, %106 : vector<3x256xf32>
    %133 = arith.addf %109, %112 : vector<3x256xf32>
    %134 = arith.addf %115, %70 : vector<3x256xf32>
    %135 = arith.addf %46, %118 : vector<3x256xf32>
    %136 = arith.addf %121, %124 : vector<3x256xf32>
    %137 = arith.addf %125, %126 : vector<3x256xf32>
    %138 = arith.addf %127, %128 : vector<3x256xf32>
    %139 = arith.addf %129, %130 : vector<3x256xf32>
    %140 = arith.addf %131, %132 : vector<3x256xf32>
    %141 = arith.addf %133, %134 : vector<3x256xf32>
    %142 = arith.addf %135, %136 : vector<3x256xf32>
    %143 = arith.addf %137, %138 : vector<3x256xf32>
    %144 = arith.addf %139, %140 : vector<3x256xf32>
    %145 = arith.addf %141, %142 : vector<3x256xf32>
    %146 = arith.addf %143, %144 : vector<3x256xf32>
    %147 = arith.addf %146, %145 : vector<3x256xf32>
    %148 = arith.mulf %73, %73 : vector<3x256xf32>
    %149 = arith.mulf %76, %76 : vector<3x256xf32>
    %150 = arith.mulf %79, %79 : vector<3x256xf32>
    %151 = arith.mulf %52, %52 : vector<3x256xf32>
    %152 = arith.mulf %28, %28 : vector<3x256xf32>
    %153 = arith.mulf %82, %82 : vector<3x256xf32>
    %154 = arith.mulf %85, %85 : vector<3x256xf32>
    %155 = arith.mulf %88, %88 : vector<3x256xf32>
    %156 = arith.mulf %91, %91 : vector<3x256xf32>
    %157 = arith.mulf %94, %94 : vector<3x256xf32>
    %158 = arith.mulf %97, %97 : vector<3x256xf32>
    %159 = arith.mulf %58, %58 : vector<3x256xf32>
    %160 = arith.mulf %34, %34 : vector<3x256xf32>
    %161 = arith.mulf %100, %100 : vector<3x256xf32>
    %162 = arith.mulf %103, %103 : vector<3x256xf32>
    %163 = arith.mulf %106, %106 : vector<3x256xf32>
    %164 = arith.mulf %109, %109 : vector<3x256xf32>
    %165 = arith.mulf %112, %112 : vector<3x256xf32>
    %166 = arith.mulf %115, %115 : vector<3x256xf32>
    %167 = arith.mulf %70, %70 : vector<3x256xf32>
    %168 = arith.mulf %46, %46 : vector<3x256xf32>
    %169 = arith.mulf %118, %118 : vector<3x256xf32>
    %170 = arith.mulf %121, %121 : vector<3x256xf32>
    %171 = arith.mulf %124, %124 : vector<3x256xf32>
    %172 = arith.addf %148, %149 : vector<3x256xf32>
    %173 = arith.addf %150, %151 : vector<3x256xf32>
    %174 = arith.addf %152, %153 : vector<3x256xf32>
    %175 = arith.addf %154, %155 : vector<3x256xf32>
    %176 = arith.addf %156, %157 : vector<3x256xf32>
    %177 = arith.addf %158, %159 : vector<3x256xf32>
    %178 = arith.addf %160, %161 : vector<3x256xf32>
    %179 = arith.addf %162, %163 : vector<3x256xf32>
    %180 = arith.addf %164, %165 : vector<3x256xf32>
    %181 = arith.addf %166, %167 : vector<3x256xf32>
    %182 = arith.addf %168, %169 : vector<3x256xf32>
    %183 = arith.addf %170, %171 : vector<3x256xf32>
    %184 = arith.addf %172, %173 : vector<3x256xf32>
    %185 = arith.addf %174, %175 : vector<3x256xf32>
    %186 = arith.addf %176, %177 : vector<3x256xf32>
    %187 = arith.addf %178, %179 : vector<3x256xf32>
    %188 = arith.addf %180, %181 : vector<3x256xf32>
    %189 = arith.addf %182, %183 : vector<3x256xf32>
    %190 = arith.addf %184, %185 : vector<3x256xf32>
    %191 = arith.addf %186, %187 : vector<3x256xf32>
    %192 = arith.addf %188, %189 : vector<3x256xf32>
    %193 = arith.addf %190, %191 : vector<3x256xf32>
    %194 = arith.addf %193, %192 : vector<3x256xf32>
    %cst = arith.constant 0.0416666679 : f32
    %195 = vector.broadcast %cst : f32 to vector<3x256xf32>
    %196 = arith.mulf %147, %195 : vector<3x256xf32>
    %197 = arith.mulf %147, %196 : vector<3x256xf32>
    %198 = arith.subf %194, %197 : vector<3x256xf32>
    %cst_6 = arith.constant 0.0434782617 : f32
    %199 = vector.broadcast %cst_6 : f32 to vector<3x256xf32>
    %200 = arith.mulf %198, %199 : vector<3x256xf32>
    %cst_7 = arith.constant 0.000000e+00 : f32
    %201 = vector.broadcast %cst_7 : f32 to vector<3x256xf32>
    %202 = arith.maximumf %200, %201 : vector<3x256xf32>
    %203 = math.sqrt %202 : vector<3x256xf32>
    %cst_8 = arith.constant 9.99999993E-9 : f32
    %204 = vector.broadcast %cst_8 : f32 to vector<3x256xf32>
    %205 = arith.addf %203, %204 : vector<3x256xf32>
    %206 = tpu.reciprocal %205 {approx = true} : vector<3x256xf32> -> vector<3x256xf32>
    %207 = arith.mulf %206, %206 : vector<3x256xf32>
    %cst_9 = arith.constant -3.70370364 : f32
    %208 = vector.broadcast %cst_9 : f32 to vector<3x256xf32>
    %209 = arith.mulf %207, %208 : vector<3x256xf32>
    %210 = arith.subf %73, %22 : vector<3x256xf32>
    %211 = arith.mulf %210, %210 : vector<3x256xf32>
    %212 = arith.mulf %211, %209 : vector<3x256xf32>
    %cst_10 = arith.constant dense<0.000000e+00> : vector<256xf32>
    %213 = vector.multi_reduction <add>, %212, %cst_10 [0] : vector<3x256xf32> to vector<256xf32>
    %214 = vector.shape_cast %213 : vector<256xf32> to vector<1x256xf32>
    %215 = arith.subf %76, %22 : vector<3x256xf32>
    %216 = arith.mulf %215, %215 : vector<3x256xf32>
    %217 = arith.mulf %216, %209 : vector<3x256xf32>
    %cst_11 = arith.constant dense<0.000000e+00> : vector<256xf32>
    %218 = vector.multi_reduction <add>, %217, %cst_11 [0] : vector<3x256xf32> to vector<256xf32>
    %219 = vector.shape_cast %218 : vector<256xf32> to vector<1x256xf32>
    %220 = arith.subf %79, %22 : vector<3x256xf32>
    %221 = arith.mulf %220, %220 : vector<3x256xf32>
    %222 = arith.mulf %221, %209 : vector<3x256xf32>
    %cst_12 = arith.constant dense<0.000000e+00> : vector<256xf32>
    %223 = vector.multi_reduction <add>, %222, %cst_12 [0] : vector<3x256xf32> to vector<256xf32>
    %224 = vector.shape_cast %223 : vector<256xf32> to vector<1x256xf32>
    %225 = arith.subf %52, %22 : vector<3x256xf32>
    %226 = arith.mulf %225, %225 : vector<3x256xf32>
    %227 = arith.mulf %226, %209 : vector<3x256xf32>
    %cst_13 = arith.constant dense<0.000000e+00> : vector<256xf32>
    %228 = vector.multi_reduction <add>, %227, %cst_13 [0] : vector<3x256xf32> to vector<256xf32>
    %229 = vector.shape_cast %228 : vector<256xf32> to vector<1x256xf32>
    %230 = arith.subf %28, %22 : vector<3x256xf32>
    %231 = arith.mulf %230, %230 : vector<3x256xf32>
    %232 = arith.mulf %231, %209 : vector<3x256xf32>
    %cst_14 = arith.constant dense<0.000000e+00> : vector<256xf32>
    %233 = vector.multi_reduction <add>, %232, %cst_14 [0] : vector<3x256xf32> to vector<256xf32>
    %234 = vector.shape_cast %233 : vector<256xf32> to vector<1x256xf32>
    %235 = arith.subf %82, %22 : vector<3x256xf32>
    %236 = arith.mulf %235, %235 : vector<3x256xf32>
    %237 = arith.mulf %236, %209 : vector<3x256xf32>
    %cst_15 = arith.constant dense<0.000000e+00> : vector<256xf32>
    %238 = vector.multi_reduction <add>, %237, %cst_15 [0] : vector<3x256xf32> to vector<256xf32>
    %239 = vector.shape_cast %238 : vector<256xf32> to vector<1x256xf32>
    %240 = arith.subf %85, %22 : vector<3x256xf32>
    %241 = arith.mulf %240, %240 : vector<3x256xf32>
    %242 = arith.mulf %241, %209 : vector<3x256xf32>
    %cst_16 = arith.constant dense<0.000000e+00> : vector<256xf32>
    %243 = vector.multi_reduction <add>, %242, %cst_16 [0] : vector<3x256xf32> to vector<256xf32>
    %244 = vector.shape_cast %243 : vector<256xf32> to vector<1x256xf32>
    %245 = arith.subf %88, %22 : vector<3x256xf32>
    %246 = arith.mulf %245, %245 : vector<3x256xf32>
    %247 = arith.mulf %246, %209 : vector<3x256xf32>
    %cst_17 = arith.constant dense<0.000000e+00> : vector<256xf32>
    %248 = vector.multi_reduction <add>, %247, %cst_17 [0] : vector<3x256xf32> to vector<256xf32>
    %249 = vector.shape_cast %248 : vector<256xf32> to vector<1x256xf32>
    %250 = arith.subf %91, %22 : vector<3x256xf32>
    %251 = arith.mulf %250, %250 : vector<3x256xf32>
    %252 = arith.mulf %251, %209 : vector<3x256xf32>
    %cst_18 = arith.constant dense<0.000000e+00> : vector<256xf32>
    %253 = vector.multi_reduction <add>, %252, %cst_18 [0] : vector<3x256xf32> to vector<256xf32>
    %254 = vector.shape_cast %253 : vector<256xf32> to vector<1x256xf32>
    %255 = arith.subf %94, %22 : vector<3x256xf32>
    %256 = arith.mulf %255, %255 : vector<3x256xf32>
    %257 = arith.mulf %256, %209 : vector<3x256xf32>
    %cst_19 = arith.constant dense<0.000000e+00> : vector<256xf32>
    %258 = vector.multi_reduction <add>, %257, %cst_19 [0] : vector<3x256xf32> to vector<256xf32>
    %259 = vector.shape_cast %258 : vector<256xf32> to vector<1x256xf32>
    %260 = arith.subf %97, %22 : vector<3x256xf32>
    %261 = arith.mulf %260, %260 : vector<3x256xf32>
    %262 = arith.mulf %261, %209 : vector<3x256xf32>
    %cst_20 = arith.constant dense<0.000000e+00> : vector<256xf32>
    %263 = vector.multi_reduction <add>, %262, %cst_20 [0] : vector<3x256xf32> to vector<256xf32>
    %264 = vector.shape_cast %263 : vector<256xf32> to vector<1x256xf32>
    %265 = arith.subf %58, %22 : vector<3x256xf32>
    %266 = arith.mulf %265, %265 : vector<3x256xf32>
    %267 = arith.mulf %266, %209 : vector<3x256xf32>
    %cst_21 = arith.constant dense<0.000000e+00> : vector<256xf32>
    %268 = vector.multi_reduction <add>, %267, %cst_21 [0] : vector<3x256xf32> to vector<256xf32>
    %269 = vector.shape_cast %268 : vector<256xf32> to vector<1x256xf32>
    %270 = arith.subf %34, %22 : vector<3x256xf32>
    %271 = arith.mulf %270, %270 : vector<3x256xf32>
    %272 = arith.mulf %271, %209 : vector<3x256xf32>
    %cst_22 = arith.constant dense<0.000000e+00> : vector<256xf32>
    %273 = vector.multi_reduction <add>, %272, %cst_22 [0] : vector<3x256xf32> to vector<256xf32>
    %274 = vector.shape_cast %273 : vector<256xf32> to vector<1x256xf32>
    %275 = arith.subf %100, %22 : vector<3x256xf32>
    %276 = arith.mulf %275, %275 : vector<3x256xf32>
    %277 = arith.mulf %276, %209 : vector<3x256xf32>
    %cst_23 = arith.constant dense<0.000000e+00> : vector<256xf32>
    %278 = vector.multi_reduction <add>, %277, %cst_23 [0] : vector<3x256xf32> to vector<256xf32>
    %279 = vector.shape_cast %278 : vector<256xf32> to vector<1x256xf32>
    %280 = arith.subf %103, %22 : vector<3x256xf32>
    %281 = arith.mulf %280, %280 : vector<3x256xf32>
    %282 = arith.mulf %281, %209 : vector<3x256xf32>
    %cst_24 = arith.constant dense<0.000000e+00> : vector<256xf32>
    %283 = vector.multi_reduction <add>, %282, %cst_24 [0] : vector<3x256xf32> to vector<256xf32>
    %284 = vector.shape_cast %283 : vector<256xf32> to vector<1x256xf32>
    %285 = arith.subf %106, %22 : vector<3x256xf32>
    %286 = arith.mulf %285, %285 : vector<3x256xf32>
    %287 = arith.mulf %286, %209 : vector<3x256xf32>
    %cst_25 = arith.constant dense<0.000000e+00> : vector<256xf32>
    %288 = vector.multi_reduction <add>, %287, %cst_25 [0] : vector<3x256xf32> to vector<256xf32>
    %289 = vector.shape_cast %288 : vector<256xf32> to vector<1x256xf32>
    %290 = arith.subf %109, %22 : vector<3x256xf32>
    %291 = arith.mulf %290, %290 : vector<3x256xf32>
    %292 = arith.mulf %291, %209 : vector<3x256xf32>
    %cst_26 = arith.constant dense<0.000000e+00> : vector<256xf32>
    %293 = vector.multi_reduction <add>, %292, %cst_26 [0] : vector<3x256xf32> to vector<256xf32>
    %294 = vector.shape_cast %293 : vector<256xf32> to vector<1x256xf32>
    %295 = arith.subf %112, %22 : vector<3x256xf32>
    %296 = arith.mulf %295, %295 : vector<3x256xf32>
    %297 = arith.mulf %296, %209 : vector<3x256xf32>
    %cst_27 = arith.constant dense<0.000000e+00> : vector<256xf32>
    %298 = vector.multi_reduction <add>, %297, %cst_27 [0] : vector<3x256xf32> to vector<256xf32>
    %299 = vector.shape_cast %298 : vector<256xf32> to vector<1x256xf32>
    %300 = arith.subf %115, %22 : vector<3x256xf32>
    %301 = arith.mulf %300, %300 : vector<3x256xf32>
    %302 = arith.mulf %301, %209 : vector<3x256xf32>
    %cst_28 = arith.constant dense<0.000000e+00> : vector<256xf32>
    %303 = vector.multi_reduction <add>, %302, %cst_28 [0] : vector<3x256xf32> to vector<256xf32>
    %304 = vector.shape_cast %303 : vector<256xf32> to vector<1x256xf32>
    %305 = arith.subf %70, %22 : vector<3x256xf32>
    %306 = arith.mulf %305, %305 : vector<3x256xf32>
    %307 = arith.mulf %306, %209 : vector<3x256xf32>
    %cst_29 = arith.constant dense<0.000000e+00> : vector<256xf32>
    %308 = vector.multi_reduction <add>, %307, %cst_29 [0] : vector<3x256xf32> to vector<256xf32>
    %309 = vector.shape_cast %308 : vector<256xf32> to vector<1x256xf32>
    %310 = arith.subf %46, %22 : vector<3x256xf32>
    %311 = arith.mulf %310, %310 : vector<3x256xf32>
    %312 = arith.mulf %311, %209 : vector<3x256xf32>
    %cst_30 = arith.constant dense<0.000000e+00> : vector<256xf32>
    %313 = vector.multi_reduction <add>, %312, %cst_30 [0] : vector<3x256xf32> to vector<256xf32>
    %314 = vector.shape_cast %313 : vector<256xf32> to vector<1x256xf32>
    %315 = arith.subf %118, %22 : vector<3x256xf32>
    %316 = arith.mulf %315, %315 : vector<3x256xf32>
    %317 = arith.mulf %316, %209 : vector<3x256xf32>
    %cst_31 = arith.constant dense<0.000000e+00> : vector<256xf32>
    %318 = vector.multi_reduction <add>, %317, %cst_31 [0] : vector<3x256xf32> to vector<256xf32>
    %319 = vector.shape_cast %318 : vector<256xf32> to vector<1x256xf32>
    %320 = arith.subf %121, %22 : vector<3x256xf32>
    %321 = arith.mulf %320, %320 : vector<3x256xf32>
    %322 = arith.mulf %321, %209 : vector<3x256xf32>
    %cst_32 = arith.constant dense<0.000000e+00> : vector<256xf32>
    %323 = vector.multi_reduction <add>, %322, %cst_32 [0] : vector<3x256xf32> to vector<256xf32>
    %324 = vector.shape_cast %323 : vector<256xf32> to vector<1x256xf32>
    %325 = arith.subf %124, %22 : vector<3x256xf32>
    %326 = arith.mulf %325, %325 : vector<3x256xf32>
    %327 = arith.mulf %326, %209 : vector<3x256xf32>
    %cst_33 = arith.constant dense<0.000000e+00> : vector<256xf32>
    %328 = vector.multi_reduction <add>, %327, %cst_33 [0] : vector<3x256xf32> to vector<256xf32>
    %329 = vector.shape_cast %328 : vector<256xf32> to vector<1x256xf32>
    %330 = arith.maximumf %214, %219 : vector<1x256xf32>
    %331 = arith.maximumf %224, %229 : vector<1x256xf32>
    %332 = arith.maximumf %234, %239 : vector<1x256xf32>
    %333 = arith.maximumf %244, %249 : vector<1x256xf32>
    %334 = arith.maximumf %254, %259 : vector<1x256xf32>
    %335 = arith.maximumf %264, %269 : vector<1x256xf32>
    %336 = arith.maximumf %274, %279 : vector<1x256xf32>
    %337 = arith.maximumf %284, %289 : vector<1x256xf32>
    %338 = arith.maximumf %294, %299 : vector<1x256xf32>
    %339 = arith.maximumf %304, %309 : vector<1x256xf32>
    %340 = arith.maximumf %314, %319 : vector<1x256xf32>
    %341 = arith.maximumf %324, %329 : vector<1x256xf32>
    %342 = arith.maximumf %330, %331 : vector<1x256xf32>
    %343 = arith.maximumf %332, %333 : vector<1x256xf32>
    %344 = arith.maximumf %334, %335 : vector<1x256xf32>
    %345 = arith.maximumf %336, %337 : vector<1x256xf32>
    %346 = arith.maximumf %338, %339 : vector<1x256xf32>
    %347 = arith.maximumf %340, %341 : vector<1x256xf32>
    %348 = arith.maximumf %342, %343 : vector<1x256xf32>
    %349 = arith.maximumf %344, %345 : vector<1x256xf32>
    %350 = arith.maximumf %346, %347 : vector<1x256xf32>
    %351 = arith.maximumf %348, %349 : vector<1x256xf32>
    %352 = arith.maximumf %351, %350 : vector<1x256xf32>
    %353 = arith.subf %214, %352 : vector<1x256xf32>
    %354 = math.exp %353 : vector<1x256xf32>
    %355 = arith.subf %219, %352 : vector<1x256xf32>
    %356 = math.exp %355 : vector<1x256xf32>
    %357 = arith.subf %224, %352 : vector<1x256xf32>
    %358 = math.exp %357 : vector<1x256xf32>
    %359 = arith.subf %229, %352 : vector<1x256xf32>
    %360 = math.exp %359 : vector<1x256xf32>
    %361 = arith.subf %234, %352 : vector<1x256xf32>
    %362 = math.exp %361 : vector<1x256xf32>
    %363 = arith.subf %239, %352 : vector<1x256xf32>
    %364 = math.exp %363 : vector<1x256xf32>
    %365 = arith.subf %244, %352 : vector<1x256xf32>
    %366 = math.exp %365 : vector<1x256xf32>
    %367 = arith.subf %249, %352 : vector<1x256xf32>
    %368 = math.exp %367 : vector<1x256xf32>
    %369 = arith.subf %254, %352 : vector<1x256xf32>
    %370 = math.exp %369 : vector<1x256xf32>
    %371 = arith.subf %259, %352 : vector<1x256xf32>
    %372 = math.exp %371 : vector<1x256xf32>
    %373 = arith.subf %264, %352 : vector<1x256xf32>
    %374 = math.exp %373 : vector<1x256xf32>
    %375 = arith.subf %269, %352 : vector<1x256xf32>
    %376 = math.exp %375 : vector<1x256xf32>
    %377 = arith.subf %274, %352 : vector<1x256xf32>
    %378 = math.exp %377 : vector<1x256xf32>
    %379 = arith.subf %279, %352 : vector<1x256xf32>
    %380 = math.exp %379 : vector<1x256xf32>
    %381 = arith.subf %284, %352 : vector<1x256xf32>
    %382 = math.exp %381 : vector<1x256xf32>
    %383 = arith.subf %289, %352 : vector<1x256xf32>
    %384 = math.exp %383 : vector<1x256xf32>
    %385 = arith.subf %294, %352 : vector<1x256xf32>
    %386 = math.exp %385 : vector<1x256xf32>
    %387 = arith.subf %299, %352 : vector<1x256xf32>
    %388 = math.exp %387 : vector<1x256xf32>
    %389 = arith.subf %304, %352 : vector<1x256xf32>
    %390 = math.exp %389 : vector<1x256xf32>
    %391 = arith.subf %309, %352 : vector<1x256xf32>
    %392 = math.exp %391 : vector<1x256xf32>
    %393 = arith.subf %314, %352 : vector<1x256xf32>
    %394 = math.exp %393 : vector<1x256xf32>
    %395 = arith.subf %319, %352 : vector<1x256xf32>
    %396 = math.exp %395 : vector<1x256xf32>
    %397 = arith.subf %324, %352 : vector<1x256xf32>
    %398 = math.exp %397 : vector<1x256xf32>
    %399 = arith.subf %329, %352 : vector<1x256xf32>
    %400 = math.exp %399 : vector<1x256xf32>
    %401 = arith.addf %354, %356 : vector<1x256xf32>
    %402 = arith.addf %358, %360 : vector<1x256xf32>
    %403 = arith.addf %362, %364 : vector<1x256xf32>
    %404 = arith.addf %366, %368 : vector<1x256xf32>
    %405 = arith.addf %370, %372 : vector<1x256xf32>
    %406 = arith.addf %374, %376 : vector<1x256xf32>
    %407 = arith.addf %378, %380 : vector<1x256xf32>
    %408 = arith.addf %382, %384 : vector<1x256xf32>
    %409 = arith.addf %386, %388 : vector<1x256xf32>
    %410 = arith.addf %390, %392 : vector<1x256xf32>
    %411 = arith.addf %394, %396 : vector<1x256xf32>
    %412 = arith.addf %398, %400 : vector<1x256xf32>
    %413 = arith.addf %401, %402 : vector<1x256xf32>
    %414 = arith.addf %403, %404 : vector<1x256xf32>
    %415 = arith.addf %405, %406 : vector<1x256xf32>
    %416 = arith.addf %407, %408 : vector<1x256xf32>
    %417 = arith.addf %409, %410 : vector<1x256xf32>
    %418 = arith.addf %411, %412 : vector<1x256xf32>
    %419 = arith.addf %413, %414 : vector<1x256xf32>
    %420 = arith.addf %415, %416 : vector<1x256xf32>
    %421 = arith.addf %417, %418 : vector<1x256xf32>
    %422 = arith.addf %419, %420 : vector<1x256xf32>
    %423 = arith.addf %422, %421 : vector<1x256xf32>
    %424 = tpu.reciprocal %423 {approx = true} : vector<1x256xf32> -> vector<1x256xf32>
    %425 = arith.mulf %354, %424 : vector<1x256xf32>
    %426 = arith.mulf %356, %424 : vector<1x256xf32>
    %427 = arith.mulf %358, %424 : vector<1x256xf32>
    %428 = arith.mulf %360, %424 : vector<1x256xf32>
    %429 = arith.mulf %362, %424 : vector<1x256xf32>
    %430 = arith.mulf %364, %424 : vector<1x256xf32>
    %431 = arith.mulf %366, %424 : vector<1x256xf32>
    %432 = arith.mulf %368, %424 : vector<1x256xf32>
    %433 = arith.mulf %370, %424 : vector<1x256xf32>
    %434 = arith.mulf %372, %424 : vector<1x256xf32>
    %435 = arith.mulf %374, %424 : vector<1x256xf32>
    %436 = arith.mulf %376, %424 : vector<1x256xf32>
    %437 = arith.mulf %378, %424 : vector<1x256xf32>
    %438 = arith.mulf %380, %424 : vector<1x256xf32>
    %439 = arith.mulf %382, %424 : vector<1x256xf32>
    %440 = arith.mulf %384, %424 : vector<1x256xf32>
    %441 = arith.mulf %386, %424 : vector<1x256xf32>
    %442 = arith.mulf %388, %424 : vector<1x256xf32>
    %443 = arith.mulf %390, %424 : vector<1x256xf32>
    %444 = arith.mulf %392, %424 : vector<1x256xf32>
    %445 = arith.mulf %394, %424 : vector<1x256xf32>
    %446 = arith.mulf %396, %424 : vector<1x256xf32>
    %447 = arith.mulf %398, %424 : vector<1x256xf32>
    %448 = arith.mulf %400, %424 : vector<1x256xf32>
    %c0_34 = arith.constant 0 : index
    %c0_35 = arith.constant 0 : index
    %449 = memref.load %arg3[%c0_34, %c0_35] : memref<1x1xf32, #tpu.memory_space<smem>>
    %c0_36 = arith.constant 0 : index
    %c0_37 = arith.constant 0 : index
    %c0_38 = arith.constant 0 : index
    %450 = vector.load %arg2[%c0_36, %c0_37, %c0_38] : memref<1x4x256xf32, #tpu.memory_space<vmem>>, vector<1x4x256xf32>
    %451 = vector.shape_cast %450 : vector<1x4x256xf32> to vector<4x256xf32>
    %452 = vector.extract_strided_slice %451 {offsets = [0, 1], sizes = [4, 255], strides = [1, 1]} : vector<4x256xf32> to vector<4x255xf32>
    %453 = vector.extract_strided_slice %451 {offsets = [0, 255], sizes = [4, 1], strides = [1, 1]} : vector<4x256xf32> to vector<4x1xf32>
    %454 = tpu.concatenate %452, %453 in 1 : vector<4x255xf32>, vector<4x1xf32> -> vector<4x256xf32>
    %455 = vector.shape_cast %20 : vector<1x256xi1> to vector<1x256xi1>
    %456 = vector.broadcast %455 : vector<1x256xi1> to vector<4x256xi1>
    %457 = arith.select %456, %451, %454 : vector<4x256xi1>, vector<4x256xf32>
    %458 = vector.extract_strided_slice %457 {offsets = [0, 1], sizes = [4, 255], strides = [1, 1]} : vector<4x256xf32> to vector<4x255xf32>
    %459 = vector.extract_strided_slice %457 {offsets = [0, 255], sizes = [4, 1], strides = [1, 1]} : vector<4x256xf32> to vector<4x1xf32>
    %460 = tpu.concatenate %458, %459 in 1 : vector<4x255xf32>, vector<4x1xf32> -> vector<4x256xf32>
    %461 = vector.shape_cast %20 : vector<1x256xi1> to vector<1x256xi1>
    %462 = vector.broadcast %461 : vector<1x256xi1> to vector<4x256xi1>
    %463 = arith.select %462, %457, %460 : vector<4x256xi1>, vector<4x256xf32>
    %464 = vector.extract_strided_slice %463 {offsets = [0, 1], sizes = [4, 255], strides = [1, 1]} : vector<4x256xf32> to vector<4x255xf32>
    %465 = vector.extract_strided_slice %463 {offsets = [0, 255], sizes = [4, 1], strides = [1, 1]} : vector<4x256xf32> to vector<4x1xf32>
    %466 = tpu.concatenate %464, %465 in 1 : vector<4x255xf32>, vector<4x1xf32> -> vector<4x256xf32>
    %467 = vector.shape_cast %20 : vector<1x256xi1> to vector<1x256xi1>
    %468 = vector.broadcast %467 : vector<1x256xi1> to vector<4x256xi1>
    %469 = arith.select %468, %463, %466 : vector<4x256xi1>, vector<4x256xf32>
    %470 = vector.extract_strided_slice %469 {offsets = [0, 1], sizes = [4, 255], strides = [1, 1]} : vector<4x256xf32> to vector<4x255xf32>
    %471 = vector.extract_strided_slice %469 {offsets = [0, 255], sizes = [4, 1], strides = [1, 1]} : vector<4x256xf32> to vector<4x1xf32>
    %472 = tpu.concatenate %470, %471 in 1 : vector<4x255xf32>, vector<4x1xf32> -> vector<4x256xf32>
    %473 = vector.shape_cast %20 : vector<1x256xi1> to vector<1x256xi1>
    %474 = vector.broadcast %473 : vector<1x256xi1> to vector<4x256xi1>
    %475 = arith.select %474, %469, %472 : vector<4x256xi1>, vector<4x256xf32>
    %476 = vector.extract_strided_slice %451 {offsets = [0, 0], sizes = [4, 1], strides = [1, 1]} : vector<4x256xf32> to vector<4x1xf32>
    %477 = vector.extract_strided_slice %451 {offsets = [0, 0], sizes = [4, 255], strides = [1, 1]} : vector<4x256xf32> to vector<4x255xf32>
    %478 = tpu.concatenate %476, %477 in 1 : vector<4x1xf32>, vector<4x255xf32> -> vector<4x256xf32>
    %479 = vector.shape_cast %18 : vector<1x256xi1> to vector<1x256xi1>
    %480 = vector.broadcast %479 : vector<1x256xi1> to vector<4x256xi1>
    %481 = arith.select %480, %451, %478 : vector<4x256xi1>, vector<4x256xf32>
    %482 = vector.extract_strided_slice %481 {offsets = [0, 0], sizes = [4, 1], strides = [1, 1]} : vector<4x256xf32> to vector<4x1xf32>
    %483 = vector.extract_strided_slice %481 {offsets = [0, 0], sizes = [4, 255], strides = [1, 1]} : vector<4x256xf32> to vector<4x255xf32>
    %484 = tpu.concatenate %482, %483 in 1 : vector<4x1xf32>, vector<4x255xf32> -> vector<4x256xf32>
    %485 = vector.shape_cast %18 : vector<1x256xi1> to vector<1x256xi1>
    %486 = vector.broadcast %485 : vector<1x256xi1> to vector<4x256xi1>
    %487 = arith.select %486, %481, %484 : vector<4x256xi1>, vector<4x256xf32>
    %488 = vector.extract_strided_slice %487 {offsets = [0, 0], sizes = [4, 1], strides = [1, 1]} : vector<4x256xf32> to vector<4x1xf32>
    %489 = vector.extract_strided_slice %487 {offsets = [0, 0], sizes = [4, 255], strides = [1, 1]} : vector<4x256xf32> to vector<4x255xf32>
    %490 = tpu.concatenate %488, %489 in 1 : vector<4x1xf32>, vector<4x255xf32> -> vector<4x256xf32>
    %491 = vector.shape_cast %18 : vector<1x256xi1> to vector<1x256xi1>
    %492 = vector.broadcast %491 : vector<1x256xi1> to vector<4x256xi1>
    %493 = arith.select %492, %487, %490 : vector<4x256xi1>, vector<4x256xf32>
    %494 = vector.extract_strided_slice %493 {offsets = [0, 0], sizes = [4, 1], strides = [1, 1]} : vector<4x256xf32> to vector<4x1xf32>
    %495 = vector.extract_strided_slice %493 {offsets = [0, 0], sizes = [4, 255], strides = [1, 1]} : vector<4x256xf32> to vector<4x255xf32>
    %496 = tpu.concatenate %494, %495 in 1 : vector<4x1xf32>, vector<4x255xf32> -> vector<4x256xf32>
    %497 = vector.shape_cast %18 : vector<1x256xi1> to vector<1x256xi1>
    %498 = vector.broadcast %497 : vector<1x256xi1> to vector<4x256xi1>
    %499 = arith.select %498, %493, %496 : vector<4x256xi1>, vector<4x256xf32>
    %500 = vector.extract_strided_slice %481 {offsets = [0, 0], sizes = [4, 16], strides = [1, 1]} : vector<4x256xf32> to vector<4x16xf32>
    %501 = vector.extract_strided_slice %481 {offsets = [0, 0], sizes = [4, 240], strides = [1, 1]} : vector<4x256xf32> to vector<4x240xf32>
    %502 = tpu.concatenate %500, %501 in 1 : vector<4x16xf32>, vector<4x240xf32> -> vector<4x256xf32>
    %503 = vector.extract_strided_slice %451 {offsets = [0, 0], sizes = [4, 16], strides = [1, 1]} : vector<4x256xf32> to vector<4x16xf32>
    %504 = vector.extract_strided_slice %451 {offsets = [0, 0], sizes = [4, 240], strides = [1, 1]} : vector<4x256xf32> to vector<4x240xf32>
    %505 = tpu.concatenate %503, %504 in 1 : vector<4x16xf32>, vector<4x240xf32> -> vector<4x256xf32>
    %506 = vector.extract_strided_slice %457 {offsets = [0, 0], sizes = [4, 16], strides = [1, 1]} : vector<4x256xf32> to vector<4x16xf32>
    %507 = vector.extract_strided_slice %457 {offsets = [0, 0], sizes = [4, 240], strides = [1, 1]} : vector<4x256xf32> to vector<4x240xf32>
    %508 = tpu.concatenate %506, %507 in 1 : vector<4x16xf32>, vector<4x240xf32> -> vector<4x256xf32>
    %509 = vector.extract_strided_slice %481 {offsets = [0, 16], sizes = [4, 240], strides = [1, 1]} : vector<4x256xf32> to vector<4x240xf32>
    %510 = vector.extract_strided_slice %481 {offsets = [0, 240], sizes = [4, 16], strides = [1, 1]} : vector<4x256xf32> to vector<4x16xf32>
    %511 = tpu.concatenate %509, %510 in 1 : vector<4x240xf32>, vector<4x16xf32> -> vector<4x256xf32>
    %512 = vector.extract_strided_slice %451 {offsets = [0, 16], sizes = [4, 240], strides = [1, 1]} : vector<4x256xf32> to vector<4x240xf32>
    %513 = vector.extract_strided_slice %451 {offsets = [0, 240], sizes = [4, 16], strides = [1, 1]} : vector<4x256xf32> to vector<4x16xf32>
    %514 = tpu.concatenate %512, %513 in 1 : vector<4x240xf32>, vector<4x16xf32> -> vector<4x256xf32>
    %515 = vector.extract_strided_slice %457 {offsets = [0, 16], sizes = [4, 240], strides = [1, 1]} : vector<4x256xf32> to vector<4x240xf32>
    %516 = vector.extract_strided_slice %457 {offsets = [0, 240], sizes = [4, 16], strides = [1, 1]} : vector<4x256xf32> to vector<4x16xf32>
    %517 = tpu.concatenate %515, %516 in 1 : vector<4x240xf32>, vector<4x16xf32> -> vector<4x256xf32>
    %518 = vector.extract_strided_slice %487 {offsets = [0, 0], sizes = [4, 16], strides = [1, 1]} : vector<4x256xf32> to vector<4x16xf32>
    %519 = vector.extract_strided_slice %487 {offsets = [0, 0], sizes = [4, 224], strides = [1, 1]} : vector<4x256xf32> to vector<4x224xf32>
    %520 = tpu.concatenate %518, %518, %519 in 1 : vector<4x16xf32>, vector<4x16xf32>, vector<4x224xf32> -> vector<4x256xf32>
    %521 = vector.extract_strided_slice %451 {offsets = [0, 0], sizes = [4, 16], strides = [1, 1]} : vector<4x256xf32> to vector<4x16xf32>
    %522 = vector.extract_strided_slice %451 {offsets = [0, 0], sizes = [4, 224], strides = [1, 1]} : vector<4x256xf32> to vector<4x224xf32>
    %523 = tpu.concatenate %521, %521, %522 in 1 : vector<4x16xf32>, vector<4x16xf32>, vector<4x224xf32> -> vector<4x256xf32>
    %524 = vector.extract_strided_slice %463 {offsets = [0, 0], sizes = [4, 16], strides = [1, 1]} : vector<4x256xf32> to vector<4x16xf32>
    %525 = vector.extract_strided_slice %463 {offsets = [0, 0], sizes = [4, 224], strides = [1, 1]} : vector<4x256xf32> to vector<4x224xf32>
    %526 = tpu.concatenate %524, %524, %525 in 1 : vector<4x16xf32>, vector<4x16xf32>, vector<4x224xf32> -> vector<4x256xf32>
    %527 = vector.extract_strided_slice %487 {offsets = [0, 32], sizes = [4, 224], strides = [1, 1]} : vector<4x256xf32> to vector<4x224xf32>
    %528 = vector.extract_strided_slice %487 {offsets = [0, 240], sizes = [4, 16], strides = [1, 1]} : vector<4x256xf32> to vector<4x16xf32>
    %529 = tpu.concatenate %527, %528, %528 in 1 : vector<4x224xf32>, vector<4x16xf32>, vector<4x16xf32> -> vector<4x256xf32>
    %530 = vector.extract_strided_slice %451 {offsets = [0, 32], sizes = [4, 224], strides = [1, 1]} : vector<4x256xf32> to vector<4x224xf32>
    %531 = vector.extract_strided_slice %451 {offsets = [0, 240], sizes = [4, 16], strides = [1, 1]} : vector<4x256xf32> to vector<4x16xf32>
    %532 = tpu.concatenate %530, %531, %531 in 1 : vector<4x224xf32>, vector<4x16xf32>, vector<4x16xf32> -> vector<4x256xf32>
    %533 = vector.extract_strided_slice %463 {offsets = [0, 32], sizes = [4, 224], strides = [1, 1]} : vector<4x256xf32> to vector<4x224xf32>
    %534 = vector.extract_strided_slice %463 {offsets = [0, 240], sizes = [4, 16], strides = [1, 1]} : vector<4x256xf32> to vector<4x16xf32>
    %535 = tpu.concatenate %533, %534, %534 in 1 : vector<4x224xf32>, vector<4x16xf32>, vector<4x16xf32> -> vector<4x256xf32>
    %536 = vector.extract_strided_slice %499 {offsets = [0, 0], sizes = [4, 16], strides = [1, 1]} : vector<4x256xf32> to vector<4x16xf32>
    %537 = vector.extract_strided_slice %499 {offsets = [0, 0], sizes = [4, 192], strides = [1, 1]} : vector<4x256xf32> to vector<4x192xf32>
    %538 = tpu.concatenate %536, %536, %536, %536, %537 in 1 : vector<4x16xf32>, vector<4x16xf32>, vector<4x16xf32>, vector<4x16xf32>, vector<4x192xf32> -> vector<4x256xf32>
    %539 = vector.extract_strided_slice %451 {offsets = [0, 0], sizes = [4, 16], strides = [1, 1]} : vector<4x256xf32> to vector<4x16xf32>
    %540 = vector.extract_strided_slice %451 {offsets = [0, 0], sizes = [4, 192], strides = [1, 1]} : vector<4x256xf32> to vector<4x192xf32>
    %541 = tpu.concatenate %539, %539, %539, %539, %540 in 1 : vector<4x16xf32>, vector<4x16xf32>, vector<4x16xf32>, vector<4x16xf32>, vector<4x192xf32> -> vector<4x256xf32>
    %542 = vector.extract_strided_slice %475 {offsets = [0, 0], sizes = [4, 16], strides = [1, 1]} : vector<4x256xf32> to vector<4x16xf32>
    %543 = vector.extract_strided_slice %475 {offsets = [0, 0], sizes = [4, 192], strides = [1, 1]} : vector<4x256xf32> to vector<4x192xf32>
    %544 = tpu.concatenate %542, %542, %542, %542, %543 in 1 : vector<4x16xf32>, vector<4x16xf32>, vector<4x16xf32>, vector<4x16xf32>, vector<4x192xf32> -> vector<4x256xf32>
    %545 = vector.extract_strided_slice %499 {offsets = [0, 64], sizes = [4, 192], strides = [1, 1]} : vector<4x256xf32> to vector<4x192xf32>
    %546 = vector.extract_strided_slice %499 {offsets = [0, 240], sizes = [4, 16], strides = [1, 1]} : vector<4x256xf32> to vector<4x16xf32>
    %547 = tpu.concatenate %545, %546, %546, %546, %546 in 1 : vector<4x192xf32>, vector<4x16xf32>, vector<4x16xf32>, vector<4x16xf32>, vector<4x16xf32> -> vector<4x256xf32>
    %548 = vector.extract_strided_slice %451 {offsets = [0, 64], sizes = [4, 192], strides = [1, 1]} : vector<4x256xf32> to vector<4x192xf32>
    %549 = vector.extract_strided_slice %451 {offsets = [0, 240], sizes = [4, 16], strides = [1, 1]} : vector<4x256xf32> to vector<4x16xf32>
    %550 = tpu.concatenate %548, %549, %549, %549, %549 in 1 : vector<4x192xf32>, vector<4x16xf32>, vector<4x16xf32>, vector<4x16xf32>, vector<4x16xf32> -> vector<4x256xf32>
    %551 = vector.extract_strided_slice %475 {offsets = [0, 64], sizes = [4, 192], strides = [1, 1]} : vector<4x256xf32> to vector<4x192xf32>
    %552 = vector.extract_strided_slice %475 {offsets = [0, 240], sizes = [4, 16], strides = [1, 1]} : vector<4x256xf32> to vector<4x16xf32>
    %553 = tpu.concatenate %551, %552, %552, %552, %552 in 1 : vector<4x192xf32>, vector<4x16xf32>, vector<4x16xf32>, vector<4x16xf32>, vector<4x16xf32> -> vector<4x256xf32>
    %554 = vector.broadcast %425 : vector<1x256xf32> to vector<4x256xf32>
    %555 = arith.mulf %502, %554 : vector<4x256xf32>
    %556 = vector.broadcast %426 : vector<1x256xf32> to vector<4x256xf32>
    %557 = arith.mulf %505, %556 : vector<4x256xf32>
    %558 = vector.broadcast %427 : vector<1x256xf32> to vector<4x256xf32>
    %559 = arith.mulf %508, %558 : vector<4x256xf32>
    %560 = vector.broadcast %428 : vector<1x256xf32> to vector<4x256xf32>
    %561 = arith.mulf %481, %560 : vector<4x256xf32>
    %562 = vector.broadcast %429 : vector<1x256xf32> to vector<4x256xf32>
    %563 = arith.mulf %457, %562 : vector<4x256xf32>
    %564 = vector.broadcast %430 : vector<1x256xf32> to vector<4x256xf32>
    %565 = arith.mulf %511, %564 : vector<4x256xf32>
    %566 = vector.broadcast %431 : vector<1x256xf32> to vector<4x256xf32>
    %567 = arith.mulf %514, %566 : vector<4x256xf32>
    %568 = vector.broadcast %432 : vector<1x256xf32> to vector<4x256xf32>
    %569 = arith.mulf %517, %568 : vector<4x256xf32>
    %570 = vector.broadcast %433 : vector<1x256xf32> to vector<4x256xf32>
    %571 = arith.mulf %520, %570 : vector<4x256xf32>
    %572 = vector.broadcast %434 : vector<1x256xf32> to vector<4x256xf32>
    %573 = arith.mulf %523, %572 : vector<4x256xf32>
    %574 = vector.broadcast %435 : vector<1x256xf32> to vector<4x256xf32>
    %575 = arith.mulf %526, %574 : vector<4x256xf32>
    %576 = vector.broadcast %436 : vector<1x256xf32> to vector<4x256xf32>
    %577 = arith.mulf %487, %576 : vector<4x256xf32>
    %578 = vector.broadcast %437 : vector<1x256xf32> to vector<4x256xf32>
    %579 = arith.mulf %463, %578 : vector<4x256xf32>
    %580 = vector.broadcast %438 : vector<1x256xf32> to vector<4x256xf32>
    %581 = arith.mulf %529, %580 : vector<4x256xf32>
    %582 = vector.broadcast %439 : vector<1x256xf32> to vector<4x256xf32>
    %583 = arith.mulf %532, %582 : vector<4x256xf32>
    %584 = vector.broadcast %440 : vector<1x256xf32> to vector<4x256xf32>
    %585 = arith.mulf %535, %584 : vector<4x256xf32>
    %586 = vector.broadcast %441 : vector<1x256xf32> to vector<4x256xf32>
    %587 = arith.mulf %538, %586 : vector<4x256xf32>
    %588 = vector.broadcast %442 : vector<1x256xf32> to vector<4x256xf32>
    %589 = arith.mulf %541, %588 : vector<4x256xf32>
    %590 = vector.broadcast %443 : vector<1x256xf32> to vector<4x256xf32>
    %591 = arith.mulf %544, %590 : vector<4x256xf32>
    %592 = vector.broadcast %444 : vector<1x256xf32> to vector<4x256xf32>
    %593 = arith.mulf %499, %592 : vector<4x256xf32>
    %594 = vector.broadcast %445 : vector<1x256xf32> to vector<4x256xf32>
    %595 = arith.mulf %475, %594 : vector<4x256xf32>
    %596 = vector.broadcast %446 : vector<1x256xf32> to vector<4x256xf32>
    %597 = arith.mulf %547, %596 : vector<4x256xf32>
    %598 = vector.broadcast %447 : vector<1x256xf32> to vector<4x256xf32>
    %599 = arith.mulf %550, %598 : vector<4x256xf32>
    %600 = vector.broadcast %448 : vector<1x256xf32> to vector<4x256xf32>
    %601 = arith.mulf %553, %600 : vector<4x256xf32>
    %602 = arith.addf %555, %557 : vector<4x256xf32>
    %603 = arith.addf %559, %561 : vector<4x256xf32>
    %604 = arith.addf %563, %565 : vector<4x256xf32>
    %605 = arith.addf %567, %569 : vector<4x256xf32>
    %606 = arith.addf %571, %573 : vector<4x256xf32>
    %607 = arith.addf %575, %577 : vector<4x256xf32>
    %608 = arith.addf %579, %581 : vector<4x256xf32>
    %609 = arith.addf %583, %585 : vector<4x256xf32>
    %610 = arith.addf %587, %589 : vector<4x256xf32>
    %611 = arith.addf %591, %593 : vector<4x256xf32>
    %612 = arith.addf %595, %597 : vector<4x256xf32>
    %613 = arith.addf %599, %601 : vector<4x256xf32>
    %614 = arith.addf %602, %603 : vector<4x256xf32>
    %615 = arith.addf %604, %605 : vector<4x256xf32>
    %616 = arith.addf %606, %607 : vector<4x256xf32>
    %617 = arith.addf %608, %609 : vector<4x256xf32>
    %618 = arith.addf %610, %611 : vector<4x256xf32>
    %619 = arith.addf %612, %613 : vector<4x256xf32>
    %620 = arith.addf %614, %615 : vector<4x256xf32>
    %621 = arith.addf %616, %617 : vector<4x256xf32>
    %622 = arith.addf %618, %619 : vector<4x256xf32>
    %623 = arith.addf %620, %621 : vector<4x256xf32>
    %624 = arith.addf %623, %622 : vector<4x256xf32>
    %625 = vector.broadcast %449 : f32 to vector<4x256xf32>
    %626 = arith.mulf %624, %625 : vector<4x256xf32>
    %627 = vector.extract_strided_slice %626 {offsets = [0, 1], sizes = [4, 255], strides = [1, 1]} : vector<4x256xf32> to vector<4x255xf32>
    %628 = vector.extract_strided_slice %626 {offsets = [0, 255], sizes = [4, 1], strides = [1, 1]} : vector<4x256xf32> to vector<4x1xf32>
    %629 = tpu.concatenate %627, %628 in 1 : vector<4x255xf32>, vector<4x1xf32> -> vector<4x256xf32>
    %630 = vector.shape_cast %20 : vector<1x256xi1> to vector<1x256xi1>
    %631 = vector.broadcast %630 : vector<1x256xi1> to vector<4x256xi1>
    %632 = arith.select %631, %626, %629 : vector<4x256xi1>, vector<4x256xf32>
    %633 = vector.extract_strided_slice %632 {offsets = [0, 1], sizes = [4, 255], strides = [1, 1]} : vector<4x256xf32> to vector<4x255xf32>
    %634 = vector.extract_strided_slice %632 {offsets = [0, 255], sizes = [4, 1], strides = [1, 1]} : vector<4x256xf32> to vector<4x1xf32>
    %635 = tpu.concatenate %633, %634 in 1 : vector<4x255xf32>, vector<4x1xf32> -> vector<4x256xf32>
    %636 = vector.shape_cast %20 : vector<1x256xi1> to vector<1x256xi1>
    %637 = vector.broadcast %636 : vector<1x256xi1> to vector<4x256xi1>
    %638 = arith.select %637, %632, %635 : vector<4x256xi1>, vector<4x256xf32>
    %639 = vector.extract_strided_slice %638 {offsets = [0, 1], sizes = [4, 255], strides = [1, 1]} : vector<4x256xf32> to vector<4x255xf32>
    %640 = vector.extract_strided_slice %638 {offsets = [0, 255], sizes = [4, 1], strides = [1, 1]} : vector<4x256xf32> to vector<4x1xf32>
    %641 = tpu.concatenate %639, %640 in 1 : vector<4x255xf32>, vector<4x1xf32> -> vector<4x256xf32>
    %642 = vector.shape_cast %20 : vector<1x256xi1> to vector<1x256xi1>
    %643 = vector.broadcast %642 : vector<1x256xi1> to vector<4x256xi1>
    %644 = arith.select %643, %638, %641 : vector<4x256xi1>, vector<4x256xf32>
    %645 = vector.extract_strided_slice %644 {offsets = [0, 1], sizes = [4, 255], strides = [1, 1]} : vector<4x256xf32> to vector<4x255xf32>
    %646 = vector.extract_strided_slice %644 {offsets = [0, 255], sizes = [4, 1], strides = [1, 1]} : vector<4x256xf32> to vector<4x1xf32>
    %647 = tpu.concatenate %645, %646 in 1 : vector<4x255xf32>, vector<4x1xf32> -> vector<4x256xf32>
    %648 = vector.shape_cast %20 : vector<1x256xi1> to vector<1x256xi1>
    %649 = vector.broadcast %648 : vector<1x256xi1> to vector<4x256xi1>
    %650 = arith.select %649, %644, %647 : vector<4x256xi1>, vector<4x256xf32>
    %651 = vector.extract_strided_slice %626 {offsets = [0, 0], sizes = [4, 1], strides = [1, 1]} : vector<4x256xf32> to vector<4x1xf32>
    %652 = vector.extract_strided_slice %626 {offsets = [0, 0], sizes = [4, 255], strides = [1, 1]} : vector<4x256xf32> to vector<4x255xf32>
    %653 = tpu.concatenate %651, %652 in 1 : vector<4x1xf32>, vector<4x255xf32> -> vector<4x256xf32>
    %654 = vector.shape_cast %18 : vector<1x256xi1> to vector<1x256xi1>
    %655 = vector.broadcast %654 : vector<1x256xi1> to vector<4x256xi1>
    %656 = arith.select %655, %626, %653 : vector<4x256xi1>, vector<4x256xf32>
    %657 = vector.extract_strided_slice %656 {offsets = [0, 0], sizes = [4, 1], strides = [1, 1]} : vector<4x256xf32> to vector<4x1xf32>
    %658 = vector.extract_strided_slice %656 {offsets = [0, 0], sizes = [4, 255], strides = [1, 1]} : vector<4x256xf32> to vector<4x255xf32>
    %659 = tpu.concatenate %657, %658 in 1 : vector<4x1xf32>, vector<4x255xf32> -> vector<4x256xf32>
    %660 = vector.shape_cast %18 : vector<1x256xi1> to vector<1x256xi1>
    %661 = vector.broadcast %660 : vector<1x256xi1> to vector<4x256xi1>
    %662 = arith.select %661, %656, %659 : vector<4x256xi1>, vector<4x256xf32>
    %663 = vector.extract_strided_slice %662 {offsets = [0, 0], sizes = [4, 1], strides = [1, 1]} : vector<4x256xf32> to vector<4x1xf32>
    %664 = vector.extract_strided_slice %662 {offsets = [0, 0], sizes = [4, 255], strides = [1, 1]} : vector<4x256xf32> to vector<4x255xf32>
    %665 = tpu.concatenate %663, %664 in 1 : vector<4x1xf32>, vector<4x255xf32> -> vector<4x256xf32>
    %666 = vector.shape_cast %18 : vector<1x256xi1> to vector<1x256xi1>
    %667 = vector.broadcast %666 : vector<1x256xi1> to vector<4x256xi1>
    %668 = arith.select %667, %662, %665 : vector<4x256xi1>, vector<4x256xf32>
    %669 = vector.extract_strided_slice %668 {offsets = [0, 0], sizes = [4, 1], strides = [1, 1]} : vector<4x256xf32> to vector<4x1xf32>
    %670 = vector.extract_strided_slice %668 {offsets = [0, 0], sizes = [4, 255], strides = [1, 1]} : vector<4x256xf32> to vector<4x255xf32>
    %671 = tpu.concatenate %669, %670 in 1 : vector<4x1xf32>, vector<4x255xf32> -> vector<4x256xf32>
    %672 = vector.shape_cast %18 : vector<1x256xi1> to vector<1x256xi1>
    %673 = vector.broadcast %672 : vector<1x256xi1> to vector<4x256xi1>
    %674 = arith.select %673, %668, %671 : vector<4x256xi1>, vector<4x256xf32>
    %675 = vector.extract_strided_slice %656 {offsets = [0, 0], sizes = [4, 16], strides = [1, 1]} : vector<4x256xf32> to vector<4x16xf32>
    %676 = vector.extract_strided_slice %656 {offsets = [0, 0], sizes = [4, 240], strides = [1, 1]} : vector<4x256xf32> to vector<4x240xf32>
    %677 = tpu.concatenate %675, %676 in 1 : vector<4x16xf32>, vector<4x240xf32> -> vector<4x256xf32>
    %678 = vector.extract_strided_slice %626 {offsets = [0, 0], sizes = [4, 16], strides = [1, 1]} : vector<4x256xf32> to vector<4x16xf32>
    %679 = vector.extract_strided_slice %626 {offsets = [0, 0], sizes = [4, 240], strides = [1, 1]} : vector<4x256xf32> to vector<4x240xf32>
    %680 = tpu.concatenate %678, %679 in 1 : vector<4x16xf32>, vector<4x240xf32> -> vector<4x256xf32>
    %681 = vector.extract_strided_slice %632 {offsets = [0, 0], sizes = [4, 16], strides = [1, 1]} : vector<4x256xf32> to vector<4x16xf32>
    %682 = vector.extract_strided_slice %632 {offsets = [0, 0], sizes = [4, 240], strides = [1, 1]} : vector<4x256xf32> to vector<4x240xf32>
    %683 = tpu.concatenate %681, %682 in 1 : vector<4x16xf32>, vector<4x240xf32> -> vector<4x256xf32>
    %684 = vector.extract_strided_slice %656 {offsets = [0, 16], sizes = [4, 240], strides = [1, 1]} : vector<4x256xf32> to vector<4x240xf32>
    %685 = vector.extract_strided_slice %656 {offsets = [0, 240], sizes = [4, 16], strides = [1, 1]} : vector<4x256xf32> to vector<4x16xf32>
    %686 = tpu.concatenate %684, %685 in 1 : vector<4x240xf32>, vector<4x16xf32> -> vector<4x256xf32>
    %687 = vector.extract_strided_slice %626 {offsets = [0, 16], sizes = [4, 240], strides = [1, 1]} : vector<4x256xf32> to vector<4x240xf32>
    %688 = vector.extract_strided_slice %626 {offsets = [0, 240], sizes = [4, 16], strides = [1, 1]} : vector<4x256xf32> to vector<4x16xf32>
    %689 = tpu.concatenate %687, %688 in 1 : vector<4x240xf32>, vector<4x16xf32> -> vector<4x256xf32>
    %690 = vector.extract_strided_slice %632 {offsets = [0, 16], sizes = [4, 240], strides = [1, 1]} : vector<4x256xf32> to vector<4x240xf32>
    %691 = vector.extract_strided_slice %632 {offsets = [0, 240], sizes = [4, 16], strides = [1, 1]} : vector<4x256xf32> to vector<4x16xf32>
    %692 = tpu.concatenate %690, %691 in 1 : vector<4x240xf32>, vector<4x16xf32> -> vector<4x256xf32>
    %693 = vector.extract_strided_slice %662 {offsets = [0, 0], sizes = [4, 16], strides = [1, 1]} : vector<4x256xf32> to vector<4x16xf32>
    %694 = vector.extract_strided_slice %662 {offsets = [0, 0], sizes = [4, 224], strides = [1, 1]} : vector<4x256xf32> to vector<4x224xf32>
    %695 = tpu.concatenate %693, %693, %694 in 1 : vector<4x16xf32>, vector<4x16xf32>, vector<4x224xf32> -> vector<4x256xf32>
    %696 = vector.extract_strided_slice %626 {offsets = [0, 0], sizes = [4, 16], strides = [1, 1]} : vector<4x256xf32> to vector<4x16xf32>
    %697 = vector.extract_strided_slice %626 {offsets = [0, 0], sizes = [4, 224], strides = [1, 1]} : vector<4x256xf32> to vector<4x224xf32>
    %698 = tpu.concatenate %696, %696, %697 in 1 : vector<4x16xf32>, vector<4x16xf32>, vector<4x224xf32> -> vector<4x256xf32>
    %699 = vector.extract_strided_slice %638 {offsets = [0, 0], sizes = [4, 16], strides = [1, 1]} : vector<4x256xf32> to vector<4x16xf32>
    %700 = vector.extract_strided_slice %638 {offsets = [0, 0], sizes = [4, 224], strides = [1, 1]} : vector<4x256xf32> to vector<4x224xf32>
    %701 = tpu.concatenate %699, %699, %700 in 1 : vector<4x16xf32>, vector<4x16xf32>, vector<4x224xf32> -> vector<4x256xf32>
    %702 = vector.extract_strided_slice %662 {offsets = [0, 32], sizes = [4, 224], strides = [1, 1]} : vector<4x256xf32> to vector<4x224xf32>
    %703 = vector.extract_strided_slice %662 {offsets = [0, 240], sizes = [4, 16], strides = [1, 1]} : vector<4x256xf32> to vector<4x16xf32>
    %704 = tpu.concatenate %702, %703, %703 in 1 : vector<4x224xf32>, vector<4x16xf32>, vector<4x16xf32> -> vector<4x256xf32>
    %705 = vector.extract_strided_slice %626 {offsets = [0, 32], sizes = [4, 224], strides = [1, 1]} : vector<4x256xf32> to vector<4x224xf32>
    %706 = vector.extract_strided_slice %626 {offsets = [0, 240], sizes = [4, 16], strides = [1, 1]} : vector<4x256xf32> to vector<4x16xf32>
    %707 = tpu.concatenate %705, %706, %706 in 1 : vector<4x224xf32>, vector<4x16xf32>, vector<4x16xf32> -> vector<4x256xf32>
    %708 = vector.extract_strided_slice %638 {offsets = [0, 32], sizes = [4, 224], strides = [1, 1]} : vector<4x256xf32> to vector<4x224xf32>
    %709 = vector.extract_strided_slice %638 {offsets = [0, 240], sizes = [4, 16], strides = [1, 1]} : vector<4x256xf32> to vector<4x16xf32>
    %710 = tpu.concatenate %708, %709, %709 in 1 : vector<4x224xf32>, vector<4x16xf32>, vector<4x16xf32> -> vector<4x256xf32>
    %711 = vector.extract_strided_slice %674 {offsets = [0, 0], sizes = [4, 16], strides = [1, 1]} : vector<4x256xf32> to vector<4x16xf32>
    %712 = vector.extract_strided_slice %674 {offsets = [0, 0], sizes = [4, 192], strides = [1, 1]} : vector<4x256xf32> to vector<4x192xf32>
    %713 = tpu.concatenate %711, %711, %711, %711, %712 in 1 : vector<4x16xf32>, vector<4x16xf32>, vector<4x16xf32>, vector<4x16xf32>, vector<4x192xf32> -> vector<4x256xf32>
    %714 = vector.extract_strided_slice %626 {offsets = [0, 0], sizes = [4, 16], strides = [1, 1]} : vector<4x256xf32> to vector<4x16xf32>
    %715 = vector.extract_strided_slice %626 {offsets = [0, 0], sizes = [4, 192], strides = [1, 1]} : vector<4x256xf32> to vector<4x192xf32>
    %716 = tpu.concatenate %714, %714, %714, %714, %715 in 1 : vector<4x16xf32>, vector<4x16xf32>, vector<4x16xf32>, vector<4x16xf32>, vector<4x192xf32> -> vector<4x256xf32>
    %717 = vector.extract_strided_slice %650 {offsets = [0, 0], sizes = [4, 16], strides = [1, 1]} : vector<4x256xf32> to vector<4x16xf32>
    %718 = vector.extract_strided_slice %650 {offsets = [0, 0], sizes = [4, 192], strides = [1, 1]} : vector<4x256xf32> to vector<4x192xf32>
    %719 = tpu.concatenate %717, %717, %717, %717, %718 in 1 : vector<4x16xf32>, vector<4x16xf32>, vector<4x16xf32>, vector<4x16xf32>, vector<4x192xf32> -> vector<4x256xf32>
    %720 = vector.extract_strided_slice %674 {offsets = [0, 64], sizes = [4, 192], strides = [1, 1]} : vector<4x256xf32> to vector<4x192xf32>
    %721 = vector.extract_strided_slice %674 {offsets = [0, 240], sizes = [4, 16], strides = [1, 1]} : vector<4x256xf32> to vector<4x16xf32>
    %722 = tpu.concatenate %720, %721, %721, %721, %721 in 1 : vector<4x192xf32>, vector<4x16xf32>, vector<4x16xf32>, vector<4x16xf32>, vector<4x16xf32> -> vector<4x256xf32>
    %723 = vector.extract_strided_slice %626 {offsets = [0, 64], sizes = [4, 192], strides = [1, 1]} : vector<4x256xf32> to vector<4x192xf32>
    %724 = vector.extract_strided_slice %626 {offsets = [0, 240], sizes = [4, 16], strides = [1, 1]} : vector<4x256xf32> to vector<4x16xf32>
    %725 = tpu.concatenate %723, %724, %724, %724, %724 in 1 : vector<4x192xf32>, vector<4x16xf32>, vector<4x16xf32>, vector<4x16xf32>, vector<4x16xf32> -> vector<4x256xf32>
    %726 = vector.extract_strided_slice %650 {offsets = [0, 64], sizes = [4, 192], strides = [1, 1]} : vector<4x256xf32> to vector<4x192xf32>
    %727 = vector.extract_strided_slice %650 {offsets = [0, 240], sizes = [4, 16], strides = [1, 1]} : vector<4x256xf32> to vector<4x16xf32>
    %728 = tpu.concatenate %726, %727, %727, %727, %727 in 1 : vector<4x192xf32>, vector<4x16xf32>, vector<4x16xf32>, vector<4x16xf32>, vector<4x16xf32> -> vector<4x256xf32>
    %729 = vector.broadcast %425 : vector<1x256xf32> to vector<4x256xf32>
    %730 = arith.mulf %677, %729 : vector<4x256xf32>
    %731 = vector.broadcast %426 : vector<1x256xf32> to vector<4x256xf32>
    %732 = arith.mulf %680, %731 : vector<4x256xf32>
    %733 = vector.broadcast %427 : vector<1x256xf32> to vector<4x256xf32>
    %734 = arith.mulf %683, %733 : vector<4x256xf32>
    %735 = vector.broadcast %428 : vector<1x256xf32> to vector<4x256xf32>
    %736 = arith.mulf %656, %735 : vector<4x256xf32>
    %737 = vector.broadcast %429 : vector<1x256xf32> to vector<4x256xf32>
    %738 = arith.mulf %632, %737 : vector<4x256xf32>
    %739 = vector.broadcast %430 : vector<1x256xf32> to vector<4x256xf32>
    %740 = arith.mulf %686, %739 : vector<4x256xf32>
    %741 = vector.broadcast %431 : vector<1x256xf32> to vector<4x256xf32>
    %742 = arith.mulf %689, %741 : vector<4x256xf32>
    %743 = vector.broadcast %432 : vector<1x256xf32> to vector<4x256xf32>
    %744 = arith.mulf %692, %743 : vector<4x256xf32>
    %745 = vector.broadcast %433 : vector<1x256xf32> to vector<4x256xf32>
    %746 = arith.mulf %695, %745 : vector<4x256xf32>
    %747 = vector.broadcast %434 : vector<1x256xf32> to vector<4x256xf32>
    %748 = arith.mulf %698, %747 : vector<4x256xf32>
    %749 = vector.broadcast %435 : vector<1x256xf32> to vector<4x256xf32>
    %750 = arith.mulf %701, %749 : vector<4x256xf32>
    %751 = vector.broadcast %436 : vector<1x256xf32> to vector<4x256xf32>
    %752 = arith.mulf %662, %751 : vector<4x256xf32>
    %753 = vector.broadcast %437 : vector<1x256xf32> to vector<4x256xf32>
    %754 = arith.mulf %638, %753 : vector<4x256xf32>
    %755 = vector.broadcast %438 : vector<1x256xf32> to vector<4x256xf32>
    %756 = arith.mulf %704, %755 : vector<4x256xf32>
    %757 = vector.broadcast %439 : vector<1x256xf32> to vector<4x256xf32>
    %758 = arith.mulf %707, %757 : vector<4x256xf32>
    %759 = vector.broadcast %440 : vector<1x256xf32> to vector<4x256xf32>
    %760 = arith.mulf %710, %759 : vector<4x256xf32>
    %761 = vector.broadcast %441 : vector<1x256xf32> to vector<4x256xf32>
    %762 = arith.mulf %713, %761 : vector<4x256xf32>
    %763 = vector.broadcast %442 : vector<1x256xf32> to vector<4x256xf32>
    %764 = arith.mulf %716, %763 : vector<4x256xf32>
    %765 = vector.broadcast %443 : vector<1x256xf32> to vector<4x256xf32>
    %766 = arith.mulf %719, %765 : vector<4x256xf32>
    %767 = vector.broadcast %444 : vector<1x256xf32> to vector<4x256xf32>
    %768 = arith.mulf %674, %767 : vector<4x256xf32>
    %769 = vector.broadcast %445 : vector<1x256xf32> to vector<4x256xf32>
    %770 = arith.mulf %650, %769 : vector<4x256xf32>
    %771 = vector.broadcast %446 : vector<1x256xf32> to vector<4x256xf32>
    %772 = arith.mulf %722, %771 : vector<4x256xf32>
    %773 = vector.broadcast %447 : vector<1x256xf32> to vector<4x256xf32>
    %774 = arith.mulf %725, %773 : vector<4x256xf32>
    %775 = vector.broadcast %448 : vector<1x256xf32> to vector<4x256xf32>
    %776 = arith.mulf %728, %775 : vector<4x256xf32>
    %777 = arith.addf %730, %732 : vector<4x256xf32>
    %778 = arith.addf %734, %736 : vector<4x256xf32>
    %779 = arith.addf %738, %740 : vector<4x256xf32>
    %780 = arith.addf %742, %744 : vector<4x256xf32>
    %781 = arith.addf %746, %748 : vector<4x256xf32>
    %782 = arith.addf %750, %752 : vector<4x256xf32>
    %783 = arith.addf %754, %756 : vector<4x256xf32>
    %784 = arith.addf %758, %760 : vector<4x256xf32>
    %785 = arith.addf %762, %764 : vector<4x256xf32>
    %786 = arith.addf %766, %768 : vector<4x256xf32>
    %787 = arith.addf %770, %772 : vector<4x256xf32>
    %788 = arith.addf %774, %776 : vector<4x256xf32>
    %789 = arith.addf %777, %778 : vector<4x256xf32>
    %790 = arith.addf %779, %780 : vector<4x256xf32>
    %791 = arith.addf %781, %782 : vector<4x256xf32>
    %792 = arith.addf %783, %784 : vector<4x256xf32>
    %793 = arith.addf %785, %786 : vector<4x256xf32>
    %794 = arith.addf %787, %788 : vector<4x256xf32>
    %795 = arith.addf %789, %790 : vector<4x256xf32>
    %796 = arith.addf %791, %792 : vector<4x256xf32>
    %797 = arith.addf %793, %794 : vector<4x256xf32>
    %798 = arith.addf %795, %796 : vector<4x256xf32>
    %799 = arith.addf %798, %797 : vector<4x256xf32>
    %800 = vector.broadcast %449 : f32 to vector<4x256xf32>
    %801 = arith.mulf %799, %800 : vector<4x256xf32>
    %c0_39 = arith.constant 0 : index
    %c0_40 = arith.constant 0 : index
    %c0_41 = arith.constant 0 : index
    %802 = vector.load %arg4[%c0_39, %c0_40, %c0_41] : memref<1x4x256xf32, #tpu.memory_space<vmem>>, vector<1x4x256xf32>
    %803 = vector.shape_cast %802 : vector<1x4x256xf32> to vector<4x256xf32>
    %804 = vector.shape_cast %801 : vector<4x256xf32> to vector<1x4x256xf32>
    tpu.vector_store %arg4[%c0_39, %c0_40, %c0_41], %804 {strides = array<i32>} : memref<1x4x256xf32, #tpu.memory_space<vmem>>, vector<1x4x256xf32>,
    return
  }
  func.func @transform_0(%arg0: i32) -> (i32, i32, i32) {
    %c0_i32 = arith.constant 0 : i32
    %c0_i32_0 = arith.constant 0 : i32
    %c0_i32_1 = arith.constant 0 : i32
    return %arg0, %c0_i32, %c0_i32_0 : i32, i32, i32
  }
  func.func @transform_1(%arg0: i32) -> (i32, i32, i32) {
    %c0_i32 = arith.constant 0 : i32
    %c0_i32_0 = arith.constant 0 : i32
    %c0_i32_1 = arith.constant 0 : i32
    return %arg0, %c0_i32, %c0_i32_0 : i32, i32, i32
  }
  func.func @transform_2(%arg0: i32) -> (i32, i32) {
    %c0_i32 = arith.constant 0 : i32
    %c0_i32_0 = arith.constant 0 : i32
    %c0_i32_1 = arith.constant 0 : i32
    return %c0_i32, %c0_i32_0 : i32, i32
  }
  func.func @transform_3(%arg0: i32) -> (i32, i32, i32) {
    %c0_i32 = arith.constant 0 : i32
    %c0_i32_0 = arith.constant 0 : i32
    %c0_i32_1 = arith.constant 0 : i32
    return %arg0, %c0_i32, %c0_i32_0 : i32, i32, i32
  }
}

</mosaic_0001>

<bundles_post_ra>
// kernel: tpu_custom_call.1
= control target key start
LH: loop header
LB: loop body
LE: loop exit
PB: predicated region body
PF: predicated region fallthrough
CT: control target
= control target key end

     0   :  { %s5350_s0 = inlined_call_operand.vmem [shape: f32[2,3,256], index: 0, kind: input, shape index: {}]   ;;  %s5351_s1 = inlined_call_operand.vmem [shape: f32[2,4,256], index: 1, kind: input, shape index: {}]   ;;  %s5352_s2 = inlined_call_operand.<no memory space> [shape: f32[1,1], index: 2, kind: input, shape index: {}]   ;;  %s5353_s3 = inlined_call_operand.hbm [shape: f32[2,4,256], index: 3, kind: output, shape index: {}]  }
   0x1   :  { %8 = sst [smem:[#allocation2]] %s5352_s2 }
   0x2   :  { %9 = vsyncpa [#allocation4], 0 }
   0x3   :  { %11 = vsyncpa [#allocation4 + $0x1], 0  ;;  %s2633_s14 = smov 0   ;;  %s2635_s15 = smov 0  }
   0x4   :  { %s2637_s16 = smov 0   ;;  %s2639_s17 = smov 0  }
   0x5 LB: > { %s2654_s2 = sadd.s32 4294967295, %s2598_s17   ;;  %s2360_s18 = sadd.s32 4294967294, %s2598_s17   ;;  %s2598_s17 = sphi %s2639_s17, %s5902_s17   ;;  %s2594_s16 = sphi %s2637_s16, %s5901_s16   ;;  %s2590_s15 = sphi %s2635_s15, %s5900_s15   ;;  %s2586_s14 = sphi %s2633_s14, %s5899_s14  }
   0x6   : > { %s2658_s19 = sadd.s32 1, %s2598_s17   ;;  %s97_s20 = sadd.s32 1, %s2594_s16 }
   0x7   : > { %s94_s21 = ssub.s32 %s2598_s17, %s2658_s19  ;;  %p107_p0 = scmp.ne.s32.totalorder %s2594_s16, %s2590_s15 }
   0x8   : > { %p95_p1 = scmp.eq.s32.totalorder %s94_s21, 0  ;;  %p108_p2 = scmp.eq.s32.totalorder %s2654_s2, 1 }
   0x9   : > { %p113_p3 = scmp.ne.s32.totalorder %s2590_s15, %s2586_s14  ;;  %p114_p4 = scmp.eq.s32.totalorder %s2360_s18, 1 }
   0xa   : > { %s2669_s22 = scalar_select %p95_p1, %s2594_s16, %s97_s20  }
   0xb   : > { %p2671_p5 = por %p108_p2, %p107_p0  ;;  %p2675_p6 = por %p114_p4, %p113_p3 }
   0xc   : > { %p2363_p7 = scmp.ge.s32.totalorder %s2598_s17, 1  ;;  %p151_p8 = scmp.lt.s32.totalorder %s2598_s17, 3 }
   0xe   : > { %p152_p9 = pnand %p2363_p7, %p151_p8 }
  0x10   : > { %155 = sbr.rel (%p152_p9) target bundleno = 1710 (0x6ae), region = 32 }
  0x15   : > { %p180_p10 = scmp.lt.s32.totalorder %s2654_s2, 1  ;;  %s2600_s30 = smov 127   ;;  %v190_v2 = vlaneseq  ;;  %vm280_vm0 = vcmask 7168   ;;  %vm228_vm1 = vcmask 1039360   ;;  %v5520_v9 = vmov 0 }
  0x16   : > { %s2601_s4 = smov 1   ;;  %v5523_v10 = vmov 0  ;;  %v5526_v11 = vmov 0  ;;  %v5529_v13 = vmov 0  ;;  %s2602_s8 = smov 16   ;;  %vm331_vm6 = vcmask 130048  }
  0x17   : > { %s2683_s25 = scalar_select %p180_p10, %s2654_s2, 1  ;;  %v191_v3 = vand.u32 127, %v190_v2  ;;  %vm356_vm7 = vcmask 916480   ;;  %vm414_vm8 = vcmask 785408   ;;  %vm384_vm9 = vcmask 261120  }
  0x18   : > { %s2603_s9 = smov 112   ;;  %s2604_s10 = smov 64   ;;  %vm465_vm10 = vcmask 392192   ;;  %vm459_vm11 = vcmask 523264   ;;  %vm513_vm12 = vcmask 654336   ;;  %vm714_vm15 = vcmask 1042432  }
  0x19   : > { %s2374_s26 = sshll.u32 %s2683_s25, 3  ;;  %v192_v4 = vadd.s32 128, %v191_v3  ;;  %v197_v5 = vand.u32 15, %v191_v3  ;;  %s2605_s11 = smov 96  }
  0x1a   : > { %s2691_s29 = scalar_lea.vmem %s5350_s0, %s2374_s26  ;;  %s2765_s7 = scalar_lea.vmem %s5351_s1, %s2374_s26 }
  0x1b   : > { %v2694_v0 = vld [vmem:[%s2691_s29] sm:$0x77]  ;;  %v204_v6 = vand.u32 15, %v192_v4  ;;  %vm2708_vm2 = vcmp.eq.s32.totalorder %v197_v5, 15  ;;  %vm2716_vm4 = vcmp.eq.s32.totalorder %v197_v5, 0  ;;  %s2606_s12 = smov 80  }
  0x1c   : > { %5518 = vst [vmem:[#allocation6_spill] sm:$0xff] %v2694_v0  ;;  %224 = vrot.lane.b32.xlu0 %v2694_v0, %s2600_s30  ;;  %276 = vrot.lane.b32.xlu1 %v2694_v0, %s2601_s4  ;;  %v2702_v1 = vcombine.high %v2694_v0, %v2694_v0  ;;  %v5521_v9 = vsel %vm2708_vm2, 4294967295, %v5520_v9  ;;  %v5527_v11 = vsel %vm2716_vm4, 4294967295, %v5526_v11  ;;  %v2775_v29 = vld [vmem:[%s2765_s7] sm:$0xff]  ;;  %s2607_s13 = smov 32   ;;  %s2608_s18 = smov 48  }
  0x1d   : > { %5522 = vst [vmem:[#allocation8_spill] sm:$0xff] %v5521_v9  ;;  %vm2712_vm3 = vcmp.eq.s32.totalorder %v204_v6, 15  ;;  %5528 = vst [vmem:[#allocation10_spill] sm:$0xff] %v5527_v11  ;;  %vm2720_vm5 = vcmp.eq.s32.totalorder %v204_v6, 0  ;;  %v2797_v35 = vcombine.high %v2775_v29, %v2775_v29  ;;  %s1475_s20 = sld [smem:[#allocation2]]  ;;  %s177_s21 = sand.u32 1, %s2590_s15  }
  0x1e   : > { %5519 = vst [vmem:[#allocation7_spill] sm:$0xff] %v2702_v1  ;;  %v5524_v10 = vsel %vm2712_vm3, 4294967295, %v5523_v10  ;;  %v5530_v13 = vsel %vm2720_vm5, 4294967295, %v5529_v13  ;;  %s2364_s25 = sshll.u32 %s177_s21, 3  ;;  %s2376_s26 = sshll.u32 %s2654_s2, 7 }
  0x1f   : > { %5525 = vst [vmem:[#allocation9_spill] sm:$0xff] %v5524_v10  ;;  %5531 = vst [vmem:[#allocation11_spill] sm:$0xff] %v5530_v13  ;;  %s179_s27 = scalar_lea.vmem [#allocation3], %s2364_s25  ;;  %s2275_s5 = scalar_lea.sflag [#allocation4], %s177_s21 }
  0x20   : > { %226 = vrot.lane.b32.xlu0 %v2702_v1, %s2600_s30  ;;  %278 = vrot.lane.b32.xlu1 %v2702_v1, %s2601_s4  ;;  %5538 = vst [vmem:[#allocation18_spill] sm:$0xff] %v2797_v35  ;;  %s2289_s28 = sshll.u32 %s179_s27, 4  ;;  %s2609_s2 = smov [#allocation3]   ;;  %s2290_s28 = int_to_ptr.vmem [resolvable:$true] %s2289_s28 }
  0x21   : > { %s2538_s6 = scalar_lea.vmem %s2290_s28, 128 }
  0x22   : > { %p2539_p11 = scmp.ne.s32.totalorder %s2290_s28, %s2538_s6 }
  0x24   : > { %p2540_p12 = pnand %p2539_p11, %p2671_p5 }
  0x26   : > { %p2541_p13 = pneg %p2540_p12 }
  0x8e   : > { %v225_v7 = vpop.permute.xlu0 %224  ;;  %v277_v8 = vpop.permute.xlu1 %276 }
  0x8f   : > { %v284_v15 = vsel %vm280_vm0, %v2694_v0, %v277_v8 }
  0x90   : > { %v2747_v21 = vsel %vm2716_vm4, %v2694_v0, %v284_v15 }
  0x91   : > { %5533 = vst [vmem:[#allocation13_spill] sm:$0xff] %v2747_v21  ;;  %v3130_v10 = vmul.f32 %v2747_v21, %v2747_v21 }
  0x92   : > { %v227_v12 = vpop.permute.xlu0 %226  ;;  %v279_v14 = vpop.permute.xlu1 %278 }
  0x93   : > { %v229_v16 = vsel %vm228_vm1, %v225_v7, %v227_v12  ;;  %v233_v17 = vsel %vm228_vm1, %v227_v12, %v2702_v1  ;;  %v281_v18 = vsel %vm280_vm0, %v277_v8, %v279_v14 }
  0x94   : > { %v2733_v19 = vsel %vm2708_vm2, %v2694_v0, %v229_v16  ;;  %v2738_v20 = vsel %vm2712_vm3, %v2702_v1, %v233_v17  ;;  %v2752_v22 = vsel %vm2720_vm5, %v2702_v1, %v281_v18 }
  0x95   : > { %5532 = vst [vmem:[#allocation12_spill] sm:$0xff] %v2738_v20  ;;  %244 = vrot.lane.b32.xlu1 %v2738_v20, %s2600_s30  ;;  %242 = vrot.lane.b32.xlu0 %v2733_v19, %s2600_s30  ;;  %5534 = vst [vmem:[#allocation14_spill] sm:$0xff] %v2752_v22 }
  0x99   : > { %295 = vrot.lane.b32.xlu1 %v2752_v22, %s2601_s4  ;;  %293 = vrot.lane.b32.xlu0 %v2747_v21, %s2601_s4 }
 0x107   : > { %v245_v23 = vpop.permute.xlu1 %244  ;;  %v243_v24 = vpop.permute.xlu0 %242 }
 0x108   : > { %v249_v25 = vsel %vm228_vm1, %v245_v23, %v2738_v20  ;;  %v246_v34 = vsel %vm228_vm1, %v243_v24, %v245_v23 }
 0x109   : > { %v2770_v26 = vsel %vm2712_vm3, %v2702_v1, %v249_v25  ;;  %v2802_v36 = vsel %vm2708_vm2, %v2694_v0, %v246_v34 }
 0x10a   : > { %5535 = vst [vmem:[#allocation15_spill] sm:$0xff] %v2770_v26  ;;  %256 = vrot.lane.b32.xlu1 %v2770_v26, %s2600_s30 }
 0x10b   : > { %v296_v27 = vpop.permute.xlu1 %295  ;;  %v294_v28 = vpop.permute.xlu0 %293 }
 0x10c   : > { %v297_v30 = vsel %vm280_vm0, %v294_v28, %v296_v27  ;;  %v300_v31 = vsel %vm280_vm0, %v2747_v21, %v294_v28 }
 0x10d   : > { %v2783_v32 = vsel %vm2716_vm4, %v2694_v0, %v300_v31  ;;  %v2788_v33 = vsel %vm2720_vm5, %v2702_v1, %v297_v30 }
 0x10e   : > { %5536 = vst [vmem:[#allocation16_spill] sm:$0xff] %v2783_v32  ;;  %5537 = vst [vmem:[#allocation17_spill] sm:$0xff] %v2788_v33  ;;  %305 = vrot.lane.b32.xlu0 %v2783_v32, %s2601_s4  ;;  %307 = vrot.lane.b32.xlu1 %v2788_v33, %s2601_s4 }
 0x112   : > { %254 = vrot.lane.b32.xlu0 %v2802_v36, %s2600_s30  ;;  %1481 = vrot.lane.b32.xlu1 %v2797_v35, %s2600_s30 }
 0x116   : > { %1479 = vrot.lane.b32.xlu0 %v2775_v29, %s2600_s30  ;;  %1528 = vrot.lane.b32.xlu1 %v2797_v35, %s2601_s4 }
 0x11a   : > { %1526 = vrot.lane.b32.xlu0 %v2775_v29, %s2601_s4 }
 0x17c   : > { %v257_v37 = vpop.permute.xlu1 %256 }
 0x17d   : > { %v261_v55 = vsel %vm228_vm1, %v257_v37, %v2770_v26 }
 0x17e   : > { %v263_v58 = vsel %vm2712_vm3, %v2702_v1, %v261_v55 }
 0x180   : > { %v306_v38 = vpop.permute.xlu0 %305  ;;  %v308_v39 = vpop.permute.xlu1 %307 }
 0x181   : > { %v312_v53 = vsel %vm280_vm0, %v2783_v32, %v306_v38  ;;  %v309_v59 = vsel %vm280_vm0, %v306_v38, %v308_v39 }
 0x182   : > { %v313_v54 = vsel %vm2716_vm4, %v2694_v0, %v312_v53  ;;  %v314_v60 = vsel %vm2720_vm5, %v2702_v1, %v309_v59 }
 0x184   : > { %v255_v40 = vpop.permute.xlu0 %254  ;;  %v1482_v41 = vpop.permute.xlu1 %1481 }
 0x185   : > { %v1487_v42 = vsel %vm228_vm1, %v1482_v41, %v2797_v35  ;;  %v258_v56 = vsel %vm228_vm1, %v255_v40, %v257_v37 }
 0x186   : > { %v2819_v43 = vsel %vm2712_vm3, %v2797_v35, %v1487_v42  ;;  %v262_v57 = vsel %vm2708_vm2, %v2694_v0, %v258_v56 }
 0x187   : > { %5539 = vst [vmem:[#allocation19_spill] sm:$0xff] %v2819_v43  ;;  %1494 = vrot.lane.b32.xlu1 %v2819_v43, %s2600_s30 }
 0x188   : > { %v1480_v44 = vpop.permute.xlu0 %1479  ;;  %v1529_v47 = vpop.permute.xlu1 %1528 }
 0x189   : > { %v1483_v45 = vsel %vm228_vm1, %v1480_v44, %v1482_v41 }
 0x18a   : > { %v2827_v46 = vsel %vm2708_vm2, %v2775_v29, %v1483_v45 }
 0x18b   : > { %5540 = vst [vmem:[#allocation20_spill] sm:$0xff] %v2827_v46  ;;  %1492 = vrot.lane.b32.xlu0 %v2827_v46, %s2600_s30 }
 0x18c   : > { %v1527_v48 = vpop.permute.xlu0 %1526 }
 0x18d   : > { %v1533_v49 = vsel %vm280_vm0, %v2775_v29, %v1527_v48  ;;  %v1530_v50 = vsel %vm280_vm0, %v1527_v48, %v1529_v47 }
 0x18e   : > { %v2837_v51 = vsel %vm2716_vm4, %v2775_v29, %v1533_v49  ;;  %v2842_v52 = vsel %vm2720_vm5, %v2797_v35, %v1530_v50 }
 0x18f   : > { %5541 = vst [vmem:[#allocation21_spill] sm:$0xff] %v2837_v51  ;;  %5542 = vst [vmem:[#allocation22_spill] sm:$0xff] %v2842_v52  ;;  %1538 = vrot.lane.b32.xlu0 %v2837_v51, %s2601_s4  ;;  %1540 = vrot.lane.b32.xlu1 %v2842_v52, %s2601_s4 }
 0x193   : > { %336 = vrot.lane.b32.xlu0 %v2694_v0, %s2602_s8  ;;  %363 = vrot.lane.b32.xlu1 %v2702_v1, %s2603_s9 }
 0x197   : > { %377 = vrot.lane.b32.xlu0 %v2783_v32, %s2602_s8  ;;  %473 = vrot.lane.b32.xlu1 %v2702_v1, %s2604_s10 }
 0x19b   : > { %425 = vrot.lane.b32.xlu0 %v2702_v1, %s2605_s11  ;;  %518 = vrot.lane.b32.xlu1 %v2702_v1, %s2606_s12 }
 0x19f   : > { %329 = vrot.lane.b32.xlu0 %v2752_v22, %s2602_s8  ;;  %327 = vrot.lane.b32.xlu1 %v2747_v21, %s2602_s8 }
 0x1a3   : > { %344 = vrot.lane.b32.xlu0 %v2733_v19, %s2602_s8  ;;  %338 = vrot.lane.b32.xlu1 %v2702_v1, %s2602_s8 }
 0x1a7   : > { %352 = vrot.lane.b32.xlu0 %v2747_v21, %s2603_s9  ;;  %346 = vrot.lane.b32.xlu1 %v2738_v20, %s2602_s8 }
 0x1ab   : > { %412 = vrot.lane.b32.xlu0 %v2788_v33, %s2605_s11  ;;  %398 = vrot.lane.b32.xlu1 %v2802_v36, %s2602_s8 }
 0x1af   : > { %439 = vrot.lane.b32.xlu0 %v2770_v26, %s2603_s9  ;;  %418 = vrot.lane.b32.xlu1 %v2788_v33, %s2603_s9 }
 0x1b3   : > { %317 = vrot.lane.b32.xlu0 %v313_v54, %s2601_s4  ;;  %434 = vrot.lane.b32.xlu1 %v2770_v26, %s2605_s11 }
 0x1b7   : > { %266 = vrot.lane.b32.xlu0 %v262_v57, %s2600_s30  ;;  %268 = vrot.lane.b32.xlu1 %v263_v58, %s2600_s30 }
 0x1bb   : > { %361 = vrot.lane.b32.xlu0 %v2694_v0, %s2603_s9  ;;  %319 = vrot.lane.b32.xlu1 %v314_v60, %s2601_s4 }
 0x1bf   : > { %371 = vrot.lane.b32.xlu0 %v2738_v20, %s2603_s9  ;;  %354 = vrot.lane.b32.xlu1 %v2752_v22, %s2603_s9 }
 0x1c3   : > { %382 = vrot.lane.b32.xlu0 %v2788_v33, %s2607_s13  ;;  %369 = vrot.lane.b32.xlu1 %v2733_v19, %s2603_s9 }
 0x1c7   : > { %392 = vrot.lane.b32.xlu0 %v2702_v1, %s2607_s13  ;;  %380 = vrot.lane.b32.xlu1 %v2783_v32, %s2607_s13 }
 0x1cb   : > { %403 = vrot.lane.b32.xlu0 %v2770_v26, %s2607_s13  ;;  %390 = vrot.lane.b32.xlu1 %v2694_v0, %s2607_s13 }
 0x1cf   : > { %423 = vrot.lane.b32.xlu0 %v2694_v0, %s2605_s11  ;;  %401 = vrot.lane.b32.xlu1 %v2802_v36, %s2607_s13 }
 0x1d3   : > { %471 = vrot.lane.b32.xlu0 %v2694_v0, %s2604_s10  ;;  %410 = vrot.lane.b32.xlu1 %v2783_v32, %s2605_s11 }
 0x1d7   : > { %432 = vrot.lane.b32.xlu1 %v2802_v36, %s2605_s11 }
 0x1db   : > { %468 = vrot.lane.b32.xlu1 %v2694_v0, %s2608_s18 }
 0x1f9   : > { %v1495_v61 = vpop.permute.xlu1 %1494 }
 0x1fa   : > { %v1499_v48 = vsel %vm228_vm1, %v1495_v61, %v2819_v43 }
 0x1fb   : > { %v3021_v49 = vsel %vm2712_vm3, %v2797_v35, %v1499_v48 }
 0x1fc   : > { %5555 = vst [vmem:[#allocation35_spill] sm:$0xff] %v3021_v49 }
 0x1fd   : > { %v1493_v62 = vpop.permute.xlu0 %1492 }
 0x201   : > { %v1539_v63 = vpop.permute.xlu0 %1538  ;;  %v1541_v2 = vpop.permute.xlu1 %1540 }
 0x202   : > { %v1542_v50 = vsel %vm280_vm0, %v1539_v63, %v1541_v2  ;;  %v1545_v56 = vsel %vm280_vm0, %v2837_v51, %v1539_v63 }
 0x203   : > { %v3035_v53 = vsel %vm2720_vm5, %v2797_v35, %v1542_v50  ;;  %v3054_v57 = vsel %vm2716_vm4, %v2775_v29, %v1545_v56 }
 0x204   : > { %5556 = vst [vmem:[#allocation36_spill] sm:$0xff] %v3035_v53  ;;  %5558 = vst [vmem:[#allocation38_spill] sm:$0xff] %v3054_v57 }
 0x205   : > { %v2934_v3 = vpop.permute.xlu0 %336  ;;  %v2936_v4 = vpop.permute.xlu1 %363 }
 0x206   : > { %5543 = vst [vmem:[#allocation23_spill] sm:$0xff] %v2934_v3 }
 0x209   : > { %v2938_v5 = vpop.permute.xlu0 %377  ;;  %v2940_v6 = vpop.permute.xlu1 %473 }
 0x20d   : > { %v2942_v7 = vpop.permute.xlu0 %425  ;;  %v2944_v8 = vpop.permute.xlu1 %518 }
 0x20e   : > { %5544 = vst [vmem:[#allocation24_spill] sm:$0xff] %v2944_v8 }
 0x211   : > { %v2946_v12 = vpop.permute.xlu0 %329  ;;  %v2948_v14 = vpop.permute.xlu1 %327 }
 0x212   : > { %5545 = vst [vmem:[#allocation25_spill] sm:$0xff] %v2946_v12  ;;  %5546 = vst [vmem:[#allocation26_spill] sm:$0xff] %v2948_v14 }
 0x215   : > { %v2950_v15 = vpop.permute.xlu0 %344  ;;  %v2952_v16 = vpop.permute.xlu1 %338 }
 0x216   : > { %5547 = vst [vmem:[#allocation27_spill] sm:$0xff] %v2950_v15  ;;  %5548 = vst [vmem:[#allocation28_spill] sm:$0xff] %v2952_v16 }
 0x219   : > { %v2954_v17 = vpop.permute.xlu0 %352  ;;  %v2956_v18 = vpop.permute.xlu1 %346 }
 0x21a   : > { %5549 = vst [vmem:[#allocation29_spill] sm:$0xff] %v2956_v18 }
 0x21d   : > { %v2958_v23 = vpop.permute.xlu0 %412  ;;  %v2960_v24 = vpop.permute.xlu1 %398 }
 0x221   : > { %v2962_v25 = vpop.permute.xlu0 %439  ;;  %v2964_v27 = vpop.permute.xlu1 %418 }
 0x222   : > { %5550 = vst [vmem:[#allocation30_spill] sm:$0xff] %v2962_v25  ;;  %5551 = vst [vmem:[#allocation31_spill] sm:$0xff] %v2964_v27 }
 0x225   : > { %v318_v28 = vpop.permute.xlu0 %317  ;;  %v2966_v30 = vpop.permute.xlu1 %434 }
 0x226   : > { %v324_v31 = vsel %vm280_vm0, %v313_v54, %v318_v28  ;;  %v1496_v54 = vsel %vm228_vm1, %v1493_v62, %v1495_v61 }
 0x227   : > { %v2972_v34 = vsel %vm2716_vm4, %v2694_v0, %v324_v31  ;;  %v3045_v55 = vsel %vm2708_vm2, %v2775_v29, %v1496_v54 }
 0x228   : > { %5552 = vst [vmem:[#allocation32_spill] sm:$0xff] %v2972_v34  ;;  %448 = vrot.lane.b32.xlu0 %v2972_v34, %s2607_s13  ;;  %445 = vrot.lane.b32.xlu1 %v2972_v34, %s2602_s8  ;;  %5557 = vst [vmem:[#allocation37_spill] sm:$0xff] %v3045_v55 }
 0x229   : > { %v269_v37 = vpop.permute.xlu1 %268  ;;  %v267_v40 = vpop.permute.xlu0 %266 }
 0x22a   : > { %v273_v38 = vsel %vm228_vm1, %v269_v37, %v263_v58  ;;  %v270_v45 = vsel %vm228_vm1, %v267_v40, %v269_v37 }
 0x22b   : > { %v2987_v42 = vsel %vm2712_vm3, %v2702_v1, %v273_v38  ;;  %v3002_v47 = vsel %vm2708_vm2, %v2694_v0, %v270_v45 }
 0x22c   : > { %451 = vrot.lane.b32.xlu0 %v2972_v34, %s2608_s18  ;;  %455 = vrot.lane.b32.xlu1 %v2972_v34, %s2604_s10  ;;  %5553 = vst [vmem:[#allocation33_spill] sm:$0xff] %v2987_v42 }
 0x22d   : > { %v320_v39 = vpop.permute.xlu1 %319  ;;  %v3060_v59 = vpop.permute.xlu0 %361 }
 0x22e   : > { %v321_v41 = vsel %vm280_vm0, %v318_v28, %v320_v39 }
 0x22f   : > { %v2992_v44 = vsel %vm2720_vm5, %v2702_v1, %v321_v41 }
 0x230   : > { %5554 = vst [vmem:[#allocation34_spill] sm:$0xff] %v2992_v44  ;;  %493 = vrot.lane.b32.xlu1 %v2987_v42, %s2604_s10  ;;  %457 = vrot.lane.b32.xlu0 %v2992_v44, %s2604_s10 }
 0x231   : > { %v3058_v58 = vpop.permute.xlu1 %354  ;;  %v3064_v61 = vpop.permute.xlu0 %371 }
 0x234   : > { %484 = vrot.lane.b32.xlu1 %v3002_v47, %s2607_s13  ;;  %481 = vrot.lane.b32.xlu0 %v3002_v47, %s2602_s8 }
 0x235   : > { %v3062_v60 = vpop.permute.xlu1 %369  ;;  %v3068_v63 = vpop.permute.xlu0 %382 }
 0x236   : > { %5559 = vst [vmem:[#allocation39_spill] sm:$0xff] %v3068_v63 }
 0x238   : > { %529 = vrot.lane.b32.xlu1 %v2987_v42, %s2605_s11  ;;  %503 = vrot.lane.b32.xlu0 %v2992_v44, %s2606_s12 }
 0x239   : > { %v3066_v62 = vpop.permute.xlu1 %380  ;;  %v3072_v28 = vpop.permute.xlu0 %392 }
 0x23a   : > { %5560 = vst [vmem:[#allocation40_spill] sm:$0xff] %v3072_v28 }
 0x23c   : > { %509 = vrot.lane.b32.xlu1 %v2992_v44, %s2603_s9  ;;  %526 = vrot.lane.b32.xlu0 %v2987_v42, %s2606_s12 }
 0x23d   : > { %v3070_v2 = vpop.permute.xlu1 %390  ;;  %v3076_v37 = vpop.permute.xlu0 %403 }
 0x23e   : > { %5561 = vst [vmem:[#allocation41_spill] sm:$0xff] %v3076_v37 }
 0x240   : > { %1506 = vrot.lane.b32.xlu1 %v3021_v49, %s2600_s30  ;;  %506 = vrot.lane.b32.xlu0 %v2992_v44, %s2605_s11 }
 0x241   : > { %v3074_v31 = vpop.permute.xlu1 %401  ;;  %v3080_v39 = vpop.permute.xlu0 %423 }
 0x244   : > { %491 = vrot.lane.b32.xlu1 %v3002_v47, %s2604_s10  ;;  %487 = vrot.lane.b32.xlu0 %v3002_v47, %s2608_s18 }
 0x245   : > { %v3078_v38 = vpop.permute.xlu1 %410  ;;  %v3082_v41 = vpop.permute.xlu0 %471 }
 0x248   : > { %1552 = vrot.lane.b32.xlu1 %v3035_v53, %s2601_s4  ;;  %532 = vrot.lane.b32.xlu0 %v2987_v42, %s2603_s9 }
 0x249   : > { %v433_v40 = vpop.permute.xlu1 %432 }
 0x24c   : > { %1504 = vrot.lane.b32.xlu0 %v3045_v55, %s2600_s30 }
 0x24d   : > { %v3084_v45 = vpop.permute.xlu1 %468 }
 0x250   : > { %1550 = vrot.lane.b32.xlu0 %v3054_v57, %s2601_s4 }
 0x29a   : > { %v449_v48 = vpop.permute.xlu0 %448  ;;  %v446_v50 = vpop.permute.xlu1 %445 }
 0x29e   : > { %v452_v54 = vpop.permute.xlu0 %451  ;;  %v3086_v56 = vpop.permute.xlu1 %455 }
 0x2a2   : > { %v3088_v44 = vpop.permute.xlu0 %457  ;;  %v3090_v63 = vpop.permute.xlu1 %493 }
 0x2a6   : > { %v485_v16 = vpop.permute.xlu1 %484  ;;  %v482_v42 = vpop.permute.xlu0 %481 }
 0x2a7   : > { %v498_v22 = vsel %vm331_vm6, %v3002_v47, %v482_v42  ;;  %v463_v42 = vsel %vm331_vm6, %v2972_v34, %v446_v50 }
 0x2aa   : > { %v3092_v28 = vpop.permute.xlu1 %529  ;;  %v3094_v18 = vpop.permute.xlu0 %503 }
 0x2ab   : > { %5562 = vst [vmem:[#allocation42_spill] sm:$0xff] %v3092_v28  ;;  %5563 = vst [vmem:[#allocation43_spill] sm:$0xff] %v3094_v18  ;;  %v3121_v18 = vsel %vm331_vm6, %v2694_v0, %v2934_v3  ;;  %v3140_v0 = vmul.f32 %v2783_v32, %v2783_v32  ;;  %v3144_v3 = vmul.f32 %v2802_v36, %v2802_v36 }
 0x2ac   : > { %5570 = vst [vmem:[#allocation50_spill] sm:$0xff] %v3121_v18 }
 0x2ae   : > { %v3096_v12 = vpop.permute.xlu1 %509  ;;  %v3098_v37 = vpop.permute.xlu0 %526 }
 0x2af   : > { %5564 = vst [vmem:[#allocation44_spill] sm:$0xff] %v3096_v12  ;;  %5565 = vst [vmem:[#allocation45_spill] sm:$0xff] %v3098_v37  ;;  %v3116_v12 = vsel %vm331_vm6, %v2733_v19, %v2950_v15 }
 0x2b0   : > { %5569 = vst [vmem:[#allocation49_spill] sm:$0xff] %v3116_v12 }
 0x2b2   : > { %v1507_v27 = vpop.permute.xlu1 %1506  ;;  %v3100_v33 = vpop.permute.xlu0 %506 }
 0x2b3   : > { %5566 = vst [vmem:[#allocation46_spill] sm:$0xff] %v3100_v33  ;;  %v1511_v26 = vsel %vm228_vm1, %v1507_v27, %v3021_v49 }
 0x2b4   : > { %v3107_v20 = vsel %vm2712_vm3, %v2797_v35, %v1511_v26  ;;  %v3126_v26 = vsel %vm331_vm6, %v2747_v21, %v2948_v14 }
 0x2b5   : > { %5567 = vst [vmem:[#allocation47_spill] sm:$0xff] %v3107_v20  ;;  %1518 = vrot.lane.b32.xlu1 %v3107_v20, %s2600_s30  ;;  %5571 = vst [vmem:[#allocation51_spill] sm:$0xff] %v3126_v26  ;;  %v3134_v20 = vmul.f32 %v2733_v19, %v2733_v19  ;;  %v539_v37 = vadd.f32 %v3121_v18, %v3126_v26 }
 0x2b6   : > { %v488_v28 = vpop.permute.xlu0 %487  ;;  %v492_v33 = vpop.permute.xlu1 %491 }
 0x2ba   : > { %v3111_v25 = vpop.permute.xlu0 %532  ;;  %v1553_v9 = vpop.permute.xlu1 %1552 }
 0x2bb   : > { %5568 = vst [vmem:[#allocation48_spill] sm:$0xff] %v3111_v25  ;;  %v541_v25 = vadd.f32 %v3116_v12, %v2747_v21  ;;  %v3154_v21 = vmul.f32 %v3121_v18, %v3121_v18 }
 0x2bd   : > { %v563_v43 = vadd.f32 %v541_v25, %v539_v37  ;;  %v3214_v25 = vsel %vm414_vm8, %v3080_v39, %v2942_v7  ;;  %v3228_v37 = vsel %vm459_vm11, %v492_v33, %v3090_v63  ;;  %v3236_v39 = vsel %vm356_vm7, %v2954_v17, %v3058_v58 }
 0x2be   : > { %v1505_v15 = vpop.permute.xlu0 %1504  ;;  %5576 = vst [vmem:[#allocation56_spill] sm:$0xff] %v3214_v25  ;;  %5579 = vst [vmem:[#allocation59_spill] sm:$0xff] %v3228_v37  ;;  %v3257_v17 = vsel %vm459_vm11, %v3086_v56, %v3088_v44 }
 0x2bf   : > { %v1508_v14 = vsel %vm228_vm1, %v1505_v15, %v1507_v27  ;;  %v388_v15 = vsel %vm331_vm6, %v2783_v32, %v2938_v5  ;;  %v3164_v27 = vmul.f32 %v3126_v26, %v3126_v26  ;;  %v408_v26 = vsel %vm331_vm6, %v2802_v36, %v2960_v24  ;;  %5583 = vst [vmem:[#allocation63_spill] sm:$0xff] %v3257_v17 }
 0x2c0   : > { %v1512_v1 = vsel %vm2708_vm2, %v2775_v29, %v1508_v14  ;;  %v3168_v14 = vmul.f32 %v3116_v12, %v3116_v12  ;;  %v3209_v24 = vsel %vm384_vm9, %v3121_v18, %v3070_v2 }
 0x2c1   : > { %1516 = vrot.lane.b32.xlu0 %v1512_v1, %s2600_s30  ;;  %v499_v1 = vsel %vm384_vm9, %v498_v22, %v485_v16  ;;  %v464_v16 = vsel %vm384_vm9, %v463_v42, %v449_v48  ;;  %5575 = vst [vmem:[#allocation55_spill] sm:$0xff] %v3209_v24 }
 0x2c2   : > { %v1551_v8 = vpop.permute.xlu0 %1550  ;;  %v500_v12 = vsel %vm465_vm10, %v499_v1, %v488_v28  ;;  %v3219_v28 = vsel %vm384_vm9, %v408_v26, %v3074_v31 }
 0x2c3   : > { %v1554_v51 = vsel %vm280_vm0, %v1551_v8, %v1553_v9  ;;  %v1557_v5 = vsel %vm280_vm0, %v3054_v57, %v1551_v8  ;;  %v3191_v9 = vsel %vm356_vm7, %v3062_v60, %v3064_v61  ;;  %v3195_v8 = vsel %vm414_vm8, %v433_v40, %v2966_v30  ;;  %5577 = vst [vmem:[#allocation57_spill] sm:$0xff] %v3219_v28 }
 0x2c4   : > { %v3183_v50 = vsel %vm2716_vm4, %v2775_v29, %v1557_v5  ;;  %v1559_v22 = vsel %vm2720_vm5, %v2797_v35, %v1554_v51  ;;  %5573 = vst [vmem:[#allocation53_spill] sm:$0xff] %v3191_v9  ;;  %5574 = vst [vmem:[#allocation54_spill] sm:$0xff] %v3195_v8  ;;  %v3204_v51 = vsel %vm356_vm7, %v3060_v59, %v2936_v4 }
 0x2c5   : > { %5572 = vst [vmem:[#allocation52_spill] sm:$0xff] %v3183_v50  ;;  %1562 = vrot.lane.b32.xlu0 %v3183_v50, %s2601_s4  ;;  %1564 = vrot.lane.b32.xlu1 %v1559_v22, %s2601_s4  ;;  %v466_v60 = vsel %vm465_vm10, %v464_v16, %v452_v54  ;;  %v3224_v59 = vsel %vm414_vm8, %v3078_v38, %v2958_v23 }
 0x2c6   : > { %5578 = vst [vmem:[#allocation58_spill] sm:$0xff] %v3224_v59  ;;  %v3231_v40 = vsel %vm459_vm11, %v500_v12, %v492_v33  ;;  %v545_v48 = vadd.f32 %v3191_v9, %v3204_v51  ;;  %v553_v54 = vadd.f32 %v3195_v8, %v3214_v25  ;;  %v478_v38 = vsel %vm465_vm10, %v3209_v24, %v3084_v45 }
 0x2c7   : > { %5580 = vst [vmem:[#allocation60_spill] sm:$0xff] %v3231_v40  ;;  %v3248_v33 = vsel %vm459_vm11, %v3082_v41, %v2940_v6  ;;  %v3252_v12 = vsel %vm459_vm11, %v466_v60, %v3086_v56  ;;  %v549_v45 = vadd.f32 %v3219_v28, %v2783_v32  ;;  %v551_v26 = vadd.f32 %v3224_v59, %v2802_v36 }
 0x2c8   : > { %5581 = vst [vmem:[#allocation61_spill] sm:$0xff] %v3248_v33  ;;  %5582 = vst [vmem:[#allocation62_spill] sm:$0xff] %v3252_v12  ;;  %v557_v42 = vadd.f32 %v3231_v40, %v2972_v34  ;;  %v561_v1 = vadd.f32 %v3228_v37, %v3248_v33  ;;  %v543_v56 = vadd.f32 %v3236_v39, %v2733_v19 }
 0x2c9   : > { %1580 = vrot.lane.b32.xlu0 %v2775_v29, %s2602_s8  ;;  %1606 = vrot.lane.b32.xlu1 %v2797_v35, %s2603_s9  ;;  %v3275_v5 = vsel %vm384_vm9, %v388_v15, %v3066_v62  ;;  %v3279_v22 = vsel %vm459_vm11, %v478_v38, %v3082_v41  ;;  %v623_v16 = vmul.f32 %v2972_v34, %v2972_v34 }
 0x2ca   : > { %5584 = vst [vmem:[#allocation64_spill] sm:$0xff] %v3275_v5  ;;  %5585 = vst [vmem:[#allocation65_spill] sm:$0xff] %v3279_v22  ;;  %v547_v60 = vadd.f32 %v3209_v24, %v3275_v5  ;;  %v569_v13 = vadd.f32 %v553_v54, %v551_v26  ;;  %v555_v11 = vadd.f32 %v3279_v22, %v3252_v12 }
 0x2cb   : > { %v559_v50 = vadd.f32 %v3257_v17, %v3002_v47  ;;  %v597_v15 = vmul.f32 %v3204_v51, %v3204_v51  ;;  %v565_v18 = vadd.f32 %v545_v48, %v543_v56  ;;  %v625_v41 = vmul.f32 %v3002_v47, %v3002_v47 }
 0x2cc   : > { %v567_v54 = vadd.f32 %v549_v45, %v547_v60  ;;  %v615_v38 = vmul.f32 %v3195_v8, %v3195_v8  ;;  %v571_v26 = vadd.f32 %v557_v42, %v555_v11  ;;  %v595_v32 = vmul.f32 %v3236_v39, %v3236_v39 }
 0x2cd   : > { %1620 = vrot.lane.b32.xlu0 %v3054_v57, %s2602_s8  ;;  %1640 = vrot.lane.b32.xlu1 %v3045_v55, %s2602_s8  ;;  %v573_v34 = vadd.f32 %v561_v1, %v559_v50  ;;  %v599_v48 = vmul.f32 %v3191_v9, %v3191_v9  ;;  %v605_v56 = vmul.f32 %v3219_v28, %v3219_v28 }
 0x2ce   : > { %v611_v57 = vmul.f32 %v3224_v59, %v3224_v59  ;;  %v613_v45 = vmul.f32 %v3214_v25, %v3214_v25  ;;  %v577_v60 = vadd.f32 %v569_v13, %v567_v54  ;;  %v621_v11 = vmul.f32 %v3231_v40, %v3231_v40 }
 0x2cf   : > { %v3313_v50 = vmul.f32 %v3228_v37, %v3228_v37  ;;  %v575_v42 = vadd.f32 %v565_v18, %v563_v43  ;;  %v603_v1 = vmul.f32 %v3209_v24, %v3209_v24  ;;  %v3319_v55 = vmul.f32 %v3248_v33, %v3248_v33 }
 0x2d0   : > { %v644_v13 = vadd.f32 %v615_v38, %v613_v45  ;;  %v617_v54 = vmul.f32 %v3252_v12, %v3252_v12  ;;  %v3329_v43 = vmul.f32 %v3257_v17, %v3257_v17  ;;  %v579_v18 = vadd.f32 %v573_v34, %v571_v26 }
 0x2d1   : > { %1654 = vrot.lane.b32.xlu0 %v3035_v53, %s2605_s11  ;;  %1659 = vrot.lane.b32.xlu1 %v3035_v53, %s2603_s9  ;;  %v636_v40 = vadd.f32 %v599_v48, %v597_v15  ;;  %v601_v8 = vmul.f32 %v3275_v5, %v3275_v5  ;;  %v640_v59 = vadd.f32 %v3140_v0, %v605_v56 }
 0x2d2   : > { %v642_v28 = vadd.f32 %v611_v57, %v3144_v3  ;;  %v581_v25 = vadd.f32 %v577_v60, %v575_v42  ;;  %v619_v38 = vmul.f32 %v3279_v22, %v3279_v22  ;;  %v648_v45 = vadd.f32 %v623_v16, %v621_v11 }
 0x2d3   : > { %v652_v12 = vadd.f32 %v3313_v50, %v3319_v55  ;;  %v632_v24 = vadd.f32 %v3130_v10, %v3168_v14  ;;  %v634_v34 = vadd.f32 %v595_v32, %v3134_v20  ;;  %v638_v15 = vadd.f32 %v603_v1, %v601_v8 }
 0x2d4   : > { %v660_v0 = vadd.f32 %v644_v13, %v642_v28  ;;  %v646_v3 = vadd.f32 %v619_v38, %v617_v54  ;;  %v650_v57 = vadd.f32 %v625_v41, %v3329_v43  ;;  %v583_v16 = vadd.f32 %v581_v25, %v579_v18  ;;  %v5589_v54 = vld [vmem:[#allocation45_spill] sm:$0xff]  ;;  %v5590_v38 = vld [vmem:[#allocation7_spill] sm:$0xff] }
 0x2d5   : > { %1666 = vrot.lane.b32.xlu0 %v2797_v35, %s2605_s11  ;;  %1675 = vrot.lane.b32.xlu1 %v3021_v49, %s2605_s11  ;;  %v630_v26 = vadd.f32 %v3154_v21, %v3164_v27  ;;  %v656_v48 = vadd.f32 %v636_v40, %v634_v34  ;;  %v658_v56 = vadd.f32 %v640_v59, %v638_v15  ;;  %v5586_v27 = vld [vmem:[#allocation21_spill] sm:$0xff]  ;;  %v5587_v40 = vld [vmem:[#allocation19_spill] sm:$0xff] }
 0x2d6   : > { %v662_v10 = vadd.f32 %v648_v45, %v646_v3  ;;  %v664_v14 = vadd.f32 %v652_v12, %v650_v57  ;;  %v676_v8 = vmul.f32 0.041666668, %v583_v16  ;;  %v5588_v12 = vld [vmem:[#allocation24_spill] sm:$0xff]  ;;  %v430_v1 = vsel %vm414_vm8, %v2942_v7, %v2936_v4  ;;  %v5593_v3 = vld [vmem:[#allocation30_spill] sm:$0xff] }
 0x2d7   : > { %v654_v20 = vadd.f32 %v632_v24, %v630_v26  ;;  %v668_v32 = vadd.f32 %v660_v0, %v658_v56  ;;  %v521_v42 = vsel %vm459_vm11, %v2940_v6, %v5588_v12  ;;  %v535_v18 = vsel %vm459_vm11, %v3090_v63, %v5589_v54  ;;  %v5592_v0 = vld [vmem:[#allocation43_spill] sm:$0xff]  ;;  %v5602_v12 = vld [vmem:[#allocation25_spill] sm:$0xff] }
 0x2d8   : > { %v670_v11 = vadd.f32 %v664_v14, %v662_v10  ;;  %v678_v25 = vmul.f32 %v676_v8, %v583_v16  ;;  %v522_v13 = vsel %vm513_vm12, %v521_v42, %v2942_v7  ;;  %v3380_v6 = vsel %vm356_vm7, %v2936_v4, %v5590_v38  ;;  %v5591_v7 = vld [vmem:[#allocation14_spill] sm:$0xff]  ;;  %v5594_v16 = vld [vmem:[#allocation12_spill] sm:$0xff]  ;;  %v5597_v14 = vld [vmem:[#allocation15_spill] sm:$0xff] }
 0x2d9   : > { %1680 = vrot.lane.b32.xlu0 %v3021_v49, %s2603_s9  ;;  %v666_v60 = vadd.f32 %v656_v48, %v654_v20  ;;  %v3384_v45 = vsel %vm356_vm7, %v430_v1, %v5590_v38  ;;  %v523_v34 = vsel %vm414_vm8, %v522_v13, %v2936_v4  ;;  %v3390_v15 = vmul.f32 %v5591_v7, %v5591_v7  ;;  %v5595_v48 = vld [vmem:[#allocation46_spill] sm:$0xff]  ;;  %v5598_v20 = vld [vmem:[#allocation17_spill] sm:$0xff]  ;;  %v5599_v8 = vld [vmem:[#allocation48_spill] sm:$0xff] }
 0x2da   : > { %v512_v63 = vsel %vm459_vm11, %v3088_v44, %v5592_v0  ;;  %v442_v57 = vsel %vm414_vm8, %v2966_v30, %v5593_v3  ;;  %v3400_v26 = vmul.f32 %v5594_v16, %v5594_v16  ;;  %v5596_v4 = vld [vmem:[#allocation42_spill] sm:$0xff]  ;;  %v3410_v44 = vmul.f32 %v5597_v14, %v5597_v14  ;;  %v5604_v13 = vld [vmem:[#allocation29_spill] sm:$0xff]  ;;  %v5605_v54 = vld [vmem:[#allocation27_spill] sm:$0xff] }
 0x2db   : > { %v672_v28 = vadd.f32 %v668_v32, %v666_v60  ;;  %v514_v56 = vsel %vm513_vm12, %v512_v63, %v5595_v48  ;;  %v536_v10 = vsel %vm513_vm12, %v535_v18, %v5596_v4  ;;  %v3414_v30 = vmul.f32 %v3380_v6, %v3380_v6  ;;  %v5603_v42 = vld [vmem:[#allocation26_spill] sm:$0xff]  ;;  %v5607_v3 = vld [vmem:[#allocation40_spill] sm:$0xff] }
 0x2dc   : > { %v608_v32 = vmul.f32 %v5598_v20, %v5598_v20  ;;  %v537_v60 = vsel %vm414_vm8, %v536_v10, %v5599_v8  ;;  %v3437_v1 = vsel %vm331_vm6, %v5603_v42, %v5602_v12  ;;  %v3442_v18 = vsel %vm331_vm6, %v5605_v54, %v5604_v13  ;;  %v5612_v12 = vld [vmem:[#allocation39_spill] sm:$0xff] }
 0x2dd   : > { %1574 = vrot.lane.b32.xlu0 %v2842_v52, %s2602_s8  ;;  %v674_v41 = vadd.f32 %v672_v28, %v670_v11  ;;  %v614_v11 = vmul.f32 %v3384_v45, %v3384_v45  ;;  %v5600_v28 = vld [vmem:[#allocation31_spill] sm:$0xff]  ;;  %v3458_v63 = vsel %vm356_vm7, %v3058_v58, %v5591_v7  ;;  %v3463_v48 = vsel %vm384_vm9, %v3070_v2, %v5607_v3 }
 0x2de   : > { %v3491_v42 = vsel %vm384_vm9, %v3066_v62, %v5612_v12 }
 0x2df   : > { %v680_v21 = vsub.f32 %v674_v41, %v678_v25  ;;  %v421_v25 = vsel %vm414_vm8, %v2958_v23, %v5600_v28  ;;  %v5601_v41 = vld [vmem:[#allocation41_spill] sm:$0xff]  ;;  %v3446_v23 = vsel %vm356_vm7, %v442_v57, %v5597_v14  ;;  %v542_v28 = vadd.f32 %v3442_v18, %v5591_v7 }
 0x2e0   : > { %v5608_v57 = vld [vmem:[#allocation33_spill] sm:$0xff]  ;;  %v3478_v58 = vsel %vm356_vm7, %v421_v25, %v5598_v20  ;;  %v5613_v25 = vld [vmem:[#allocation34_spill] sm:$0xff]  ;;  %v548_v3 = vadd.f32 %v3463_v48, %v3491_v42 }
 0x2e1   : > { %1588 = vrot.lane.b32.xlu0 %v2827_v46, %s2602_s8  ;;  %v682_v59 = vmul.f32 0.04347826, %v680_v21  ;;  %v3428_v21 = vsel %vm384_vm9, %v3074_v31, %v5601_v41  ;;  %v5606_v31 = vld [vmem:[#allocation44_spill] sm:$0xff]  ;;  %v3467_v4 = vsel %vm356_vm7, %v537_v60, %v5608_v57  ;;  %v554_v41 = vadd.f32 %v3446_v23, %v3384_v45 }
 0x2e2   : > { %v515_v0 = vsel %vm414_vm8, %v514_v56, %v5606_v31  ;;  %5609 = vst [vmem:[#allocation24_spill] sm:$0xff] %v3467_v4  ;;  %v5610_v56 = vld [vmem:[#allocation28_spill] sm:$0xff]  ;;  %v550_v2 = vadd.f32 %v3428_v21, %v5598_v20  ;;  %v544_v31 = vadd.f32 %v3458_v63, %v5594_v16  ;;  %v552_v12 = vadd.f32 %v3478_v58, %v5597_v14 }
 0x2e3   : > { %v3359_v24 = vmax.f32 %v682_v59, 0.0  ;;  %v3432_v59 = vsel %vm356_vm7, %v523_v34, %v5590_v38  ;;  %v3453_v34 = vsel %vm356_vm7, %v3064_v61, %v5594_v16  ;;  %v5611_v61 = vld [vmem:[#allocation23_spill] sm:$0xff]  ;;  %v3495_v13 = vsel %vm356_vm7, %v515_v0, %v5613_v25 }
 0x2e4   : > { %v3474_v10 = vsel %vm331_vm6, %v5611_v61, %v5610_v56  ;;  %v628_v8 = vmul.f32 %v3432_v59, %v3432_v59  ;;  %v546_v54 = vadd.f32 %v3453_v34, %v3380_v6  ;;  %v562_v56 = vadd.f32 %v3467_v4, %v3432_v59 }
 0x2e5   : > { %1596 = vrot.lane.b32.xlu0 %v5586_v27, %s2603_s9  ;;  %2427 = vrsqrt.f32 %v3359_v24  ;;  %v540_v62 = vadd.f32 %v3474_v10, %v3437_v1  ;;  %v588_v61 = vmul.f32 %v3474_v10, %v3474_v10  ;;  %v590_v0 = vmul.f32 %v3442_v18, %v3442_v18 }
 0x2e6   : > { %v558_v46 = vadd.f32 %v3228_v37, %v5613_v25  ;;  %v612_v27 = vmul.f32 %v3478_v58, %v3478_v58  ;;  %v606_v22 = vmul.f32 %v3428_v21, %v3428_v21  ;;  %v600_v37 = vmul.f32 %v3453_v34, %v3453_v34 }
 0x2e7   : > { %vm688_vm13 = vcmp.eq.f32.partialorder %v3359_v24, inf  ;;  %vm690_vm14 = vcmp.eq.f32.partialorder %v3359_v24, 0.0 }
 0x2e9   : > { %1604 = vrot.lane.b32.xlu0 %v2775_v29, %s2603_s9 }
 0x2ed   : > { %1614 = vrot.lane.b32.xlu0 %v5587_v40, %s2603_s9  ;;  %v564_v40 = vadd.f32 %v542_v28, %v540_v62  ;;  %v604_v28 = vmul.f32 %v3463_v48, %v3463_v48 }
 0x2f1   : > { %1625 = vrot.lane.b32.xlu0 %v3035_v53, %s2607_s13  ;;  %v560_v53 = vadd.f32 %v3495_v13, %v5608_v57 }
 0x2f2   : > { %v2428_v60 = vpop.eup %2427 }
 0x2f3   : > { %v687_v52 = vmul.f32 %v2428_v60, %v3359_v24  ;;  %v574_v5 = vadd.f32 %v562_v56, %v560_v53  ;;  %v596_v60 = vmul.f32 %v3458_v63, %v3458_v63  ;;  %v602_v53 = vmul.f32 %v3491_v42, %v3491_v42 }
 0x2f4   : > { %v641_v56 = vadd.f32 %v608_v32, %v606_v22 }
 0x2f5   : > { %1634 = vrot.lane.b32.xlu0 %v2797_v35, %s2607_s13  ;;  %v616_v35 = vmul.f32 %v3446_v23, %v3446_v23  ;;  %v635_v22 = vadd.f32 %v596_v60, %v3400_v26 }
 0x2f9   : > { %1645 = vrot.lane.b32.xlu0 %v3021_v49, %s2607_s13  ;;  %v568_v49 = vadd.f32 %v550_v2, %v548_v3  ;;  %v566_v2 = vadd.f32 %v546_v54, %v544_v31  ;;  %v556_v3 = vadd.f32 %v3248_v33, %v3257_v17  ;;  %v629_v54 = vmul.f32 %v3467_v4, %v3467_v4 }
 0x2fa   : > { %v645_v31 = vadd.f32 %v616_v35, %v614_v11  ;;  %v627_v33 = vmul.f32 %v3495_v13, %v3495_v13  ;;  %v624_v35 = vmul.f32 %v5613_v25, %v5613_v25 }
 0x2fb   : > { %v572_v9 = vadd.f32 %v558_v46, %v556_v3  ;;  %v576_v17 = vadd.f32 %v566_v2, %v564_v40  ;;  %v639_v46 = vadd.f32 %v604_v28, %v602_v53  ;;  %v653_v40 = vadd.f32 %v629_v54, %v628_v8  ;;  %v5615_v54 = vld [vmem:[#allocation13_spill] sm:$0xff] }
 0x2fc   : > { %v586_v2 = vmul.f32 %v3437_v1, %v3437_v1  ;;  %v649_v28 = vadd.f32 %v624_v35, %v3313_v50  ;;  %v5614_v50 = vld [vmem:[#allocation6_spill] sm:$0xff]  ;;  %v5616_v35 = vld [vmem:[#allocation16_spill] sm:$0xff] }
 0x2fd   : > { %1664 = vrot.lane.b32.xlu0 %v2775_v29, %s2605_s11  ;;  %v570_v29 = vadd.f32 %v554_v41, %v552_v12  ;;  %v689_v41 = vsel %vm688_vm13, %v3359_v24, %v687_v52  ;;  %v691_v12 = vand.u32 2147483648, %v3359_v24  ;;  %v626_v52 = vmul.f32 %v5608_v57, %v5608_v57 }
 0x2fe   : > { %v633_v24 = vadd.f32 %v3390_v15, %v590_v0 }
 0x2ff   : > { %v578_v62 = vadd.f32 %v570_v29, %v568_v49  ;;  %v580_v49 = vadd.f32 %v574_v5, %v572_v9  ;;  %v692_v11 = vsel %vm690_vm14, %v691_v12, %v689_v41  ;;  %v637_v29 = vadd.f32 %v600_v37, %v3414_v30 }
 0x300   : > { %v643_v9 = vadd.f32 %v612_v27, %v3410_v44  ;;  %v659_v5 = vadd.f32 %v641_v56, %v639_v46  ;;  %v651_v3 = vadd.f32 %v627_v33, %v626_v52  ;;  %v700_v53 = vadd.f32 1e-08, %v692_v11 }
 0x301   : > { %v582_v32 = vadd.f32 %v578_v62, %v576_v17  ;;  %v631_v41 = vadd.f32 %v588_v61, %v586_v2  ;;  %v657_v37 = vadd.f32 %v637_v29, %v635_v22  ;;  %v647_v17 = vadd.f32 %v3319_v55, %v3329_v43  ;;  %v5619_v2 = vld [vmem:[#allocation51_spill] sm:$0xff] }
 0x302   : > { %v661_v12 = vadd.f32 %v645_v31, %v643_v9  ;;  %v665_v26 = vadd.f32 %v653_v40, %v651_v3  ;;  %2429 = vrcp.f32 %v700_v53  ;;  %v769_v56 = vsub.f32 %v5615_v54, %v5614_v50 }
 0x303   : > { %v584_v4 = vadd.f32 %v582_v32, %v580_v49  ;;  %v655_v30 = vadd.f32 %v633_v24, %v631_v41  ;;  %v663_v60 = vadd.f32 %v649_v28, %v647_v17  ;;  %v789_v61 = vsub.f32 %v2733_v19, %v5614_v50  ;;  %v5620_v28 = vld [vmem:[#allocation49_spill] sm:$0xff] }
 0x304   : > { %v669_v8 = vadd.f32 %v661_v12, %v659_v5  ;;  %v790_v55 = vsub.f32 %v5594_v16, %v5590_v38  ;;  %v770_v43 = vsub.f32 %v5591_v7, %v5590_v38  ;;  %v950_v49 = vsub.f32 %v5597_v14, %v5590_v38  ;;  %v5618_v14 = vld [vmem:[#allocation50_spill] sm:$0xff] }
 0x305   : > { %v677_v15 = vmul.f32 0.041666668, %v584_v4  ;;  %v667_v0 = vadd.f32 %v657_v37, %v655_v30  ;;  %v671_v27 = vadd.f32 %v665_v26, %v663_v60  ;;  %v771_v46 = vmul.f32 %v769_v56, %v769_v56  ;;  %v5622_v26 = vld [vmem:[#allocation32_spill] sm:$0xff] }
 0x306   : > { %v3569_v52 = vmul.f32 %v789_v61, %v789_v61  ;;  %v929_v11 = vsub.f32 %v5616_v35, %v5614_v50  ;;  %v3573_v22 = vmul.f32 %v790_v55, %v790_v55  ;;  %v3575_v16 = vmul.f32 %v770_v43, %v770_v43  ;;  %v3637_v61 = vld [vmem:[%s2691_s29] sm:$0x77] }
 0x307   : > { %v673_v44 = vadd.f32 %v669_v8, %v667_v0  ;;  %v679_v33 = vmul.f32 %v677_v15, %v584_v4  ;;  %v949_v4 = vsub.f32 %v2802_v36, %v5614_v50  ;;  %v3577_v32 = vmul.f32 %v950_v49, %v950_v49  ;;  %v5629_v35 = vld [vmem:[#allocation64_spill] sm:$0xff] }
 0x308   : > { %v930_v7 = vsub.f32 %v5598_v20, %v5590_v38  ;;  %v729_v36 = vsub.f32 %v5618_v14, %v5614_v50  ;;  %v990_v40 = vsub.f32 %v3384_v45, %v5590_v38  ;;  %v708_v24 = vsub.f32 %v5619_v2, %v5614_v50 }
 0x309   : > { %v675_v62 = vadd.f32 %v673_v44, %v671_v27  ;;  %5617 = vst [vmem:[#allocation45_spill] sm:$0xff] %v3577_v32  ;;  %v830_v9 = vsub.f32 %v3380_v6, %v5590_v38  ;;  %v3589_v5 = vmul.f32 %v949_v4, %v949_v4  ;;  %v709_v3 = vsub.f32 %v3437_v1, %v5590_v38 }
 0x30a   : > { %v749_v20 = vsub.f32 %v5620_v28, %v5614_v50  ;;  %v1150_v53 = vsub.f32 %v3432_v59, %v5590_v38  ;;  %v3597_v41 = vmul.f32 %v929_v11, %v929_v11  ;;  %v730_v45 = vsub.f32 %v3474_v10, %v5590_v38 }
 0x30b   : > { %v681_v31 = vsub.f32 %v675_v62, %v679_v33  ;;  %v3603_v6 = vmul.f32 %v930_v7, %v930_v7  ;;  %v750_v17 = vsub.f32 %v3442_v18, %v5590_v38  ;;  %v970_v1 = vsub.f32 %v3478_v58, %v5590_v38 }
 0x30c   : > { %v1089_v30 = vsub.f32 %v5622_v26, %v5614_v50  ;;  %v731_v59 = vmul.f32 %v729_v36, %v729_v36  ;;  %v3611_v8 = vmul.f32 %v990_v40, %v990_v40  ;;  %v710_v60 = vmul.f32 %v708_v24, %v708_v24  ;;  %v5635_v26 = vld [vmem:[#allocation56_spill] sm:$0xff] }
 0x30d   : > { %v683_v19 = vmul.f32 0.04347826, %v681_v31  ;;  %5621 = vst [vmem:[#allocation14_spill] sm:$0xff] %v3603_v6  ;;  %v3613_v10 = vmul.f32 %v830_v9, %v830_v9  ;;  %v3615_v15 = vmul.f32 %v709_v3, %v709_v3  ;;  %v751_v0 = vmul.f32 %v749_v20, %v749_v20  ;;  %v5633_v3 = vld [vmem:[#allocation55_spill] sm:$0xff] }
 0x30e   : > { %5623 = vst [vmem:[#allocation43_spill] sm:$0xff] %v3611_v8  ;;  %v1010_v27 = vsub.f32 %v3446_v23, %v5590_v38  ;;  %v3619_v18 = vmul.f32 %v1150_v53, %v1150_v53  ;;  %v3621_v44 = vmul.f32 %v730_v45, %v730_v45  ;;  %v1109_v58 = vsub.f32 %v3002_v47, %v5614_v50 }
 0x30f   : > { %v2430_v29 = vpop.eup %2429  ;;  %v3601_v37 = vmax.f32 %v683_v19, 0.0  ;;  %5624 = vst [vmem:[#allocation30_spill] sm:$0xff] %v3613_v10  ;;  %v3628_v62 = vmul.f32 %v750_v17, %v750_v17  ;;  %v3630_v54 = vmul.f32 %v970_v1, %v970_v1  ;;  %v3632_v56 = vmul.f32 %v1089_v30, %v1089_v30 }
 0x310   : > { %v704_v12 = vmul.f32 %v2430_v29, %v2430_v29  ;;  %5625 = vst [vmem:[#allocation12_spill] sm:$0xff] %v3619_v18  ;;  %v1110_v23 = vsub.f32 %v5608_v57, %v5590_v38  ;;  %v829_v31 = vsub.f32 %v3204_v51, %v3637_v61  ;;  %v1090_v47 = vsub.f32 %v5613_v25, %v5590_v38  ;;  %v5628_v57 = vld [vmem:[#allocation53_spill] sm:$0xff] }
 0x311   : > { %2431 = vrsqrt.f32 %v3601_v37  ;;  %5626 = vst [vmem:[#allocation46_spill] sm:$0xff] %v3630_v54  ;;  %v850_v50 = vsub.f32 %v3453_v34, %v5590_v38  ;;  %v809_v55 = vsub.f32 %v3236_v39, %v3637_v61  ;;  %v3647_v43 = vmul.f32 %v1010_v27, %v1010_v27 }
 0x312   : > { %v3625_v33 = vmul.f32 -3.7037036, %v704_v12  ;;  %v810_v49 = vsub.f32 %v3458_v63, %v5590_v38  ;;  %v849_v4 = vsub.f32 %v5628_v57, %v3637_v61  ;;  %v869_v51 = vsub.f32 %v5629_v35, %v3637_v61 }
 0x313   : > { %5627 = vst [vmem:[#allocation42_spill] sm:$0xff] %v3647_v43  ;;  %v3655_v11 = vmul.f32 %v1109_v58, %v1109_v58  ;;  %v3660_v39 = vmul.f32 %v1110_v23, %v1110_v23  ;;  %v870_v29 = vsub.f32 %v3491_v42, %v5590_v38  ;;  %v831_v7 = vmul.f32 %v829_v31, %v829_v31 }
 0x314   : > { %v712_v25 = vmul.f32 %v710_v60, %v3625_v33  ;;  %v733_v34 = vmul.f32 %v731_v59, %v3625_v33  ;;  %v753_v19 = vmul.f32 %v751_v0, %v3625_v33  ;;  %v773_v63 = vmul.f32 %v771_v46, %v3625_v33 }
 0x315   : > { %5630 = vst [vmem:[#allocation15_spill] sm:$0xff] %v3660_v39  ;;  %v3665_v14 = vmul.f32 %v1090_v47, %v1090_v47  ;;  %v3667_v36 = vmul.f32 %v850_v50, %v850_v50  ;;  %v811_v40 = vmul.f32 %v809_v55, %v809_v55  ;;  %v3669_v2 = vmul.f32 %v810_v49, %v810_v49  ;;  %v5638_v50 = vld [vmem:[#allocation61_spill] sm:$0xff] }
 0x316   : > { %v851_v24 = vmul.f32 %v849_v4, %v849_v4  ;;  %v3671_v9 = vmul.f32 %v869_v51, %v869_v51  ;;  %v889_v28 = vsub.f32 %v5633_v3, %v3637_v61  ;;  %v890_v42 = vsub.f32 %v3463_v48, %v5590_v38  ;;  %v5636_v48 = vld [vmem:[#allocation57_spill] sm:$0xff] }
 0x317   : > { %5631 = vst [vmem:[#allocation17_spill] sm:$0xff] %v3665_v14  ;;  %5632 = vst [vmem:[#allocation48_spill] sm:$0xff] %v3667_v36  ;;  %v715_v20 = vsel %vm714_vm15, %v712_v25, 0.0  ;;  %v735_v46 = vsel %vm714_vm15, %v733_v34, 0.0  ;;  %v755_v53 = vsel %vm714_vm15, %v753_v19, 0.0  ;;  %v3680_v45 = vmul.f32 %v870_v29, %v870_v29 }
 0x318   : > { %v775_v12 = vsel %vm714_vm15, %v773_v63, 0.0  ;;  %v793_v17 = vmul.f32 %v3569_v52, %v3625_v33  ;;  %v813_v1 = vmul.f32 %v811_v40, %v3625_v33  ;;  %v989_v30 = vsub.f32 %v5635_v26, %v3637_v61 }
 0x319   : > { %5634 = vst [vmem:[#allocation31_spill] sm:$0xff] %v3680_v45  ;;  %v909_v59 = vsub.f32 %v5636_v48, %v3637_v61  ;;  %v910_v60 = vsub.f32 %v3428_v21, %v5590_v38  ;;  %v833_v0 = vmul.f32 %v831_v7, %v3625_v33  ;;  %v716_v27 = vrot.slane %v715_v20, 4  ;;  %v5639_v21 = vld [vmem:[#allocation58_spill] sm:$0xff] }
 0x31a   : > { %v736_v58 = vrot.slane %v735_v46, 4  ;;  %v756_v23 = vrot.slane %v755_v53, 4  ;;  %v853_v31 = vmul.f32 %v851_v24, %v3625_v33  ;;  %v3694_v47 = vmul.f32 %v889_v28, %v889_v28 }
 0x31b   : > { %v3696_v52 = vmul.f32 %v890_v42, %v890_v42  ;;  %v1050_v55 = vsub.f32 %v5638_v50, %v5590_v38  ;;  %v776_v49 = vrot.slane %v775_v12, 4  ;;  %v1149_v4 = vsub.f32 %v5638_v50, %v3637_v61 }
 0x31c   : > { %v969_v35 = vsub.f32 %v5639_v21, %v3637_v61  ;;  %v795_v51 = vsel %vm714_vm15, %v793_v17, 0.0  ;;  %v815_v25 = vsel %vm714_vm15, %v813_v1, 0.0  ;;  %v3706_v34 = vmul.f32 %v989_v30, %v989_v30  ;;  %v5645_v21 = vld [vmem:[#allocation63_spill] sm:$0xff] }
 0x31d   : > { %5637 = vst [vmem:[#allocation41_spill] sm:$0xff] %v3696_v52  ;;  %v911_v19 = vmul.f32 %v909_v59, %v909_v59  ;;  %v3708_v29 = vmul.f32 %v910_v60, %v910_v60  ;;  %v835_v63 = vsel %vm714_vm15, %v833_v0, 0.0  ;;  %v717_v7 = vadd.f32 %v716_v27, %v715_v20  ;;  %v5642_v59 = vld [vmem:[#allocation54_spill] sm:$0xff]  ;;  %v5643_v20 = vld [vmem:[#allocation65_spill] sm:$0xff] }
 0x31e   : > { %v2432_v57 = vpop.eup %2431  ;;  %v737_v40 = vadd.f32 %v736_v58, %v735_v46  ;;  %v757_v24 = vadd.f32 %v756_v23, %v755_v53  ;;  %v855_v3 = vsel %vm714_vm15, %v853_v31, 0.0  ;;  %v777_v28 = vadd.f32 %v776_v49, %v775_v12  ;;  %v5644_v53 = vld [vmem:[#allocation62_spill] sm:$0xff] }
 0x31f   : > { %5640 = vst [vmem:[#allocation25_spill] sm:$0xff] %v3708_v29  ;;  %v796_v42 = vrot.slane %v795_v51, 4  ;;  %v816_v26 = vrot.slane %v815_v25, 4  ;;  %v694_v48 = vmul.f32 %v2432_v57, %v3601_v37  ;;  %v3713_v17 = vmul.f32 %v1050_v55, %v1050_v55 }
 0x320   : > { %v3715_v1 = vmul.f32 %v1149_v4, %v1149_v4  ;;  %v3717_v30 = vmul.f32 %v969_v35, %v969_v35  ;;  %v1009_v60 = vsub.f32 %v5642_v59, %v3637_v61  ;;  %v1049_v46 = vsub.f32 %v5643_v20, %v3637_v61 }
 0x321   : > { %5641 = vst [vmem:[#allocation26_spill] sm:$0xff] %v3713_v17  ;;  %v1029_v0 = vsub.f32 %v5644_v53, %v3637_v61  ;;  %v836_v12 = vrot.slane %v835_v63, 4  ;;  %v856_v27 = vrot.slane %v855_v3, 4  ;;  %v718_v58 = vrot.slane %v717_v7, 2 }
 0x322   : > { %v738_v23 = vrot.slane %v737_v40, 2  ;;  %v758_v31 = vrot.slane %v757_v24, 2  ;;  %vm695_vm13 = vcmp.eq.f32.partialorder %v3601_v37, inf  ;;  %v778_v50 = vrot.slane %v777_v28, 2 }
 0x323   : > { %v797_v55 = vadd.f32 %v796_v42, %v795_v51  ;;  %v817_v49 = vadd.f32 %v816_v26, %v815_v25  ;;  %v696_v57 = vsel %vm695_vm13, %v3601_v37, %v694_v48  ;;  %v1011_v4 = vmul.f32 %v1009_v60, %v1009_v60 }
 0x324   : > { %v1030_v35 = vsub.f32 %v5645_v21, %v5590_v38  ;;  %v1129_v59 = vsub.f32 %v5645_v21, %v3637_v61  ;;  %v698_v20 = vand.u32 2147483648, %v3601_v37  ;;  %v1051_v53 = vmul.f32 %v1049_v46, %v1049_v46 }
 0x325   : > { %v837_v18 = vadd.f32 %v836_v12, %v835_v63  ;;  %v857_v39 = vadd.f32 %v856_v27, %v855_v3  ;;  %vm697_vm14 = vcmp.eq.f32.partialorder %v3601_v37, 0.0  ;;  %v719_v14 = vadd.f32 %v718_v58, %v717_v7  ;;  %v5648_v63 = vld [vmem:[#allocation60_spill] sm:$0xff] }
 0x326   : > { %v739_v17 = vadd.f32 %v738_v23, %v737_v40  ;;  %v759_v51 = vadd.f32 %v758_v31, %v757_v24  ;;  %v699_v25 = vsel %vm697_vm14, %v698_v20, %v696_v57  ;;  %v1031_v42 = vmul.f32 %v1029_v0, %v1029_v0  ;;  %v5649_v40 = vld [vmem:[#allocation59_spill] sm:$0xff] }
 0x327   : > { %v779_v26 = vadd.f32 %v778_v50, %v777_v28  ;;  %v798_v48 = vrot.slane %v797_v55, 2  ;;  %v818_v60 = vrot.slane %v817_v49, 2  ;;  %v3733_v43 = vmul.f32 %v1030_v35, %v1030_v35 }
 0x328   : > { %v3735_v8 = vmul.f32 %v1129_v59, %v1129_v59  ;;  %v3739_v21 = vsub.f32 %v3495_v13, %v5590_v38  ;;  %v1069_v3 = vsub.f32 %v5648_v63, %v3637_v61  ;;  %v838_v37 = vrot.slane %v837_v18, 2 }
 0x329   : > { %5646 = vst [vmem:[#allocation29_spill] sm:$0xff] %v3733_v43  ;;  %v858_v7 = vrot.slane %v857_v39, 2  ;;  %v1169_v24 = vsub.f32 %v5649_v40, %v3637_v61  ;;  %v701_v46 = vadd.f32 1e-08, %v699_v25  ;;  %v720_v28 = vrot.slane %v719_v14, 1 }
 0x32a   : > { %5647 = vst [vmem:[#allocation27_spill] sm:$0xff] %v3739_v21  ;;  %v740_v0 = vrot.slane %v739_v17, 1  ;;  %v760_v12 = vrot.slane %v759_v51, 1  ;;  %v873_v27 = vmul.f32 %v3671_v9, %v3625_v33  ;;  %v780_v58 = vrot.slane %v779_v26, 1 }
 0x32b   : > { %v799_v23 = vadd.f32 %v798_v48, %v797_v55  ;;  %v819_v31 = vadd.f32 %v818_v60, %v817_v49  ;;  %v893_v13 = vmul.f32 %v3694_v47, %v3625_v33  ;;  %v913_v50 = vmul.f32 %v911_v19, %v3625_v33 }
 0x32c   : > { %v933_v57 = vmul.f32 %v3597_v41, %v3625_v33  ;;  %v3754_v61 = vsub.f32 %v5649_v40, %v5590_v38  ;;  %v1071_v35 = vmul.f32 %v1069_v3, %v1069_v3  ;;  %v839_v59 = vadd.f32 %v838_v37, %v837_v18 }
 0x32d   : > { %v859_v20 = vadd.f32 %v858_v7, %v857_v39  ;;  %v1171_v25 = vmul.f32 %v1169_v24, %v1169_v24  ;;  %2433 = vrcp.f32 %v701_v46  ;;  %v3756_v9 = vadd.f32 %v720_v28, %v719_v14 }
 0x32e   : > { %5650 = vst [vmem:[#allocation44_spill] sm:$0xff] %v3754_v61  ;;  %v3758_v55 = vadd.f32 %v740_v0, %v739_v17  ;;  %v3760_v49 = vadd.f32 %v760_v12, %v759_v51  ;;  %v875_v47 = vsel %vm714_vm15, %v873_v27, 0.0  ;;  %v3763_v19 = vadd.f32 %v780_v58, %v779_v26 }
 0x32f   : > { %5651 = vst [vmem:[#allocation40_spill] sm:$0xff] %v3756_v9  ;;  %v800_v41 = vrot.slane %v799_v23, 1  ;;  %v820_v48 = vrot.slane %v819_v31, 1  ;;  %v895_v60 = vsel %vm714_vm15, %v893_v13, 0.0  ;;  %v915_v63 = vsel %vm714_vm15, %v913_v50, 0.0 }
 0x330   : > { %5652 = vst [vmem:[#allocation33_spill] sm:$0xff] %v3758_v55  ;;  %5653 = vst [vmem:[#allocation28_spill] sm:$0xff] %v3760_v49  ;;  %v935_v18 = vsel %vm714_vm15, %v933_v57, 0.0  ;;  %v953_v39 = vmul.f32 %v3589_v5, %v3625_v33  ;;  %v973_v14 = vmul.f32 %v3717_v30, %v3625_v33  ;;  %v876_v17 = vrot.slane %v875_v47, 4 }
 0x331   : > { %5654 = vst [vmem:[#allocation23_spill] sm:$0xff] %v3763_v19  ;;  %v993_v51 = vmul.f32 %v3706_v34, %v3625_v33  ;;  %v1013_v26 = vmul.f32 %v1011_v4, %v3625_v33  ;;  %v1033_v3 = vmul.f32 %v1031_v42, %v3625_v33  ;;  %v840_v37 = vrot.slane %v839_v59, 1 }
 0x332   : > { %v860_v7 = vrot.slane %v859_v20, 1  ;;  %v896_v40 = vrot.slane %v895_v60, 4  ;;  %v1053_v24 = vmul.f32 %v1051_v53, %v3625_v33  ;;  %v3777_v46 = vadd.f32 %v800_v41, %v799_v23 }
 0x333   : > { %v3779_v28 = vadd.f32 %v820_v48, %v819_v31  ;;  %v1073_v5 = vmul.f32 %v1071_v35, %v3625_v33  ;;  %v1093_v30 = vmul.f32 %v3632_v56, %v3625_v33  ;;  %v916_v0 = vrot.slane %v915_v63, 4 }
 0x334   : > { %5655 = vst [vmem:[#allocation39_spill] sm:$0xff] %v3777_v46  ;;  %v936_v34 = vrot.slane %v935_v18, 4  ;;  %v955_v4 = vsel %vm714_vm15, %v953_v39, 0.0  ;;  %v975_v42 = vsel %vm714_vm15, %v973_v14, 0.0  ;;  %v877_v12 = vadd.f32 %v876_v17, %v875_v47 }
 0x335   : > { %5656 = vst [vmem:[#allocation34_spill] sm:$0xff] %v3779_v28  ;;  %v995_v27 = vsel %vm714_vm15, %v993_v51, 0.0  ;;  %v1015_v53 = vsel %vm714_vm15, %v1013_v26, 0.0  ;;  %v1035_v58 = vsel %vm714_vm15, %v1033_v3, 0.0  ;;  %v3789_v23 = vadd.f32 %v840_v37, %v839_v59 }
 0x336   : > { %v3791_v31 = vadd.f32 %v860_v7, %v859_v20  ;;  %v897_v13 = vadd.f32 %v896_v40, %v895_v60  ;;  %v1055_v56 = vsel %vm714_vm15, %v1053_v24, 0.0  ;;  %v956_v50 = vrot.slane %v955_v4, 4 }
 0x337   : > { %5657 = vst [vmem:[#allocation6_spill] sm:$0xff] %v3789_v23  ;;  %v976_v57 = vrot.slane %v975_v42, 4  ;;  %v1075_v35 = vsel %vm714_vm15, %v1073_v5, 0.0  ;;  %v1095_v41 = vsel %vm714_vm15, %v1093_v30, 0.0  ;;  %v996_v47 = vrot.slane %v995_v27, 4 }
 0x338   : > { %5658 = vst [vmem:[#allocation13_spill] sm:$0xff] %v3791_v31  ;;  %v1016_v48 = vrot.slane %v1015_v53, 4  ;;  %v1036_v39 = vrot.slane %v1035_v58, 4  ;;  %v1113_v14 = vmul.f32 %v3655_v11, %v3625_v33  ;;  %v878_v17 = vrot.slane %v877_v12, 2 }
 0x339   : > { %v917_v59 = vadd.f32 %v916_v0, %v915_v63  ;;  %v937_v51 = vadd.f32 %v936_v34, %v935_v18  ;;  %v1056_v20 = vrot.slane %v1055_v56, 4  ;;  %v1076_v60 = vrot.slane %v1075_v35, 4 }
 0x33a   : > { %v2434_v26 = vpop.eup %2433  ;;  %v1096_v3 = vrot.slane %v1095_v41, 4  ;;  %v1133_v37 = vmul.f32 %v3735_v8, %v3625_v33  ;;  %v1153_v7 = vmul.f32 %v3715_v1, %v3625_v33  ;;  %v898_v40 = vrot.slane %v897_v13, 2 }
 0x33b   : > { %v957_v24 = vadd.f32 %v956_v50, %v955_v4  ;;  %v977_v5 = vadd.f32 %v976_v57, %v975_v42  ;;  %v1173_v30 = vmul.f32 %v1171_v25, %v3625_v33  ;;  %v997_v43 = vadd.f32 %v996_v47, %v995_v27 }
 0x33c   : > { %v1017_v11 = vadd.f32 %v1016_v48, %v1015_v53  ;;  %v1037_v54 = vadd.f32 %v1036_v39, %v1035_v58  ;;  %v1115_v63 = vsel %vm714_vm15, %v1113_v14, 0.0  ;;  %v879_v18 = vadd.f32 %v878_v17, %v877_v12 }
 0x33d   : > { %v918_v0 = vrot.slane %v917_v59, 2  ;;  %v938_v34 = vrot.slane %v937_v51, 2  ;;  %v1057_v32 = vadd.f32 %v1056_v20, %v1055_v56  ;;  %v1077_v6 = vadd.f32 %v1076_v60, %v1075_v35 }
 0x33e   : > { %v1097_v29 = vadd.f32 %v1096_v3, %v1095_v41  ;;  %v1135_v8 = vsel %vm714_vm15, %v1133_v37, 0.0  ;;  %v1155_v1 = vsel %vm714_vm15, %v1153_v7, 0.0  ;;  %v899_v52 = vadd.f32 %v898_v40, %v897_v13 }
 0x33f   : > { %v958_v4 = vrot.slane %v957_v24, 2  ;;  %v1116_v42 = vrot.slane %v1115_v63, 4  ;;  %v1175_v33 = vsel %vm714_vm15, %v1173_v30, 0.0  ;;  %v978_v25 = vrot.slane %v977_v5, 2 }
 0x340   : > { %v998_v27 = vrot.slane %v997_v43, 2  ;;  %v1018_v53 = vrot.slane %v1017_v11, 2  ;;  %v1038_v58 = vrot.slane %v1037_v54, 2  ;;  %v919_v50 = vadd.f32 %v918_v0, %v917_v59 }
 0x341   : > { %v1058_v12 = vrot.slane %v1057_v32, 2  ;;  %v1136_v57 = vrot.slane %v1135_v8, 4  ;;  %v1156_v47 = vrot.slane %v1155_v1, 4  ;;  %v939_v56 = vadd.f32 %v938_v34, %v937_v51 }
 0x342   : > { %v1078_v35 = vrot.slane %v1077_v6, 2  ;;  %v1098_v41 = vrot.slane %v1097_v29, 2  ;;  %v1176_v48 = vrot.slane %v1175_v33, 4  ;;  %v880_v39 = vrot.slane %v879_v18, 1 }
 0x343   : > { %v900_v14 = vrot.slane %v899_v52, 1  ;;  %v959_v17 = vadd.f32 %v958_v4, %v957_v24  ;;  %v1117_v13 = vadd.f32 %v1116_v42, %v1115_v63  ;;  %v979_v20 = vadd.f32 %v978_v25, %v977_v5 }
 0x344   : > { %v999_v60 = vadd.f32 %v998_v27, %v997_v43  ;;  %v1019_v3 = vadd.f32 %v1018_v53, %v1017_v11  ;;  %v1039_v37 = vadd.f32 %v1038_v58, %v1037_v54  ;;  %v1059_v7 = vadd.f32 %v1058_v12, %v1057_v32 }
 0x345   : > { %v1137_v40 = vadd.f32 %v1136_v57, %v1135_v8  ;;  %v1157_v30 = vadd.f32 %v1156_v47, %v1155_v1  ;;  %v705_v61 = vmul.f32 %v2434_v26, %v2434_v26  ;;  %v920_v59 = vrot.slane %v919_v50, 1 }
 0x346   : > { %v1079_v0 = vadd.f32 %v1078_v35, %v1077_v6  ;;  %v1099_v21 = vadd.f32 %v1098_v41, %v1097_v29  ;;  %v1177_v45 = vadd.f32 %v1176_v48, %v1175_v33  ;;  %v3807_v51 = vadd.f32 %v880_v39, %v879_v18  ;;  %v3819_v33 = vpop.permute.xlu0 %1516 }
 0x347   : > { %v940_v34 = vrot.slane %v939_v56, 1  ;;  %v960_v38 = vrot.slane %v959_v17, 1  ;;  %v1118_v36 = vrot.slane %v1117_v13, 2  ;;  %v980_v10 = vrot.slane %v979_v20, 1 }
 0x348   : > { %5659 = vst [vmem:[#allocation16_spill] sm:$0xff] %v3807_v51  ;;  %v1000_v24 = vrot.slane %v999_v60, 1  ;;  %v1020_v63 = vrot.slane %v1019_v3, 1  ;;  %v1040_v5 = vrot.slane %v1039_v37, 1  ;;  %v1060_v43 = vrot.slane %v1059_v7, 1 }
 0x349   : > { %v1138_v11 = vrot.slane %v1137_v40, 2  ;;  %v1158_v54 = vrot.slane %v1157_v30, 2  ;;  %v3809_v32 = vmul.f32 -3.7037036, %v705_v61  ;;  %v3811_v8 = vadd.f32 %v900_v14, %v899_v52 }
 0x34a   : > { %v1080_v26 = vrot.slane %v1079_v0, 1  ;;  %v1100_v6 = vrot.slane %v1099_v21, 1  ;;  %v1178_v29 = vrot.slane %v1177_v45, 2  ;;  %v3813_v1 = vadd.f32 %v920_v59, %v919_v50 }
 0x34b   : > { %5660 = vst [vmem:[#allocation50_spill] sm:$0xff] %v3811_v8  ;;  %v3815_v18 = vadd.f32 %v940_v34, %v939_v56  ;;  %v3817_v4 = vadd.f32 %v960_v38, %v959_v17  ;;  %v1119_v42 = vadd.f32 %v1118_v36, %v1117_v13  ;;  %v3821_v25 = vadd.f32 %v980_v10, %v979_v20 }
 0x34c   : > { %5661 = vst [vmem:[#allocation51_spill] sm:$0xff] %v3813_v1  ;;  %v3823_v27 = vadd.f32 %v1000_v24, %v999_v60  ;;  %v3825_v61 = vadd.f32 %v1020_v63, %v1019_v3  ;;  %v3827_v52 = vadd.f32 %v1040_v5, %v1039_v37  ;;  %v3829_v53 = vadd.f32 %v1060_v43, %v1059_v7  ;;  %v3868_v7 = vpop.permute.xlu1 %1518  ;;  %v5669_v5 = vld [vmem:[#allocation30_spill] sm:$0xff] }
 0x34d   : > { %5662 = vst [vmem:[#allocation49_spill] sm:$0xff] %v3815_v18  ;;  %5663 = vst [vmem:[#allocation32_spill] sm:$0xff] %v3817_v4  ;;  %v1139_v58 = vadd.f32 %v1138_v11, %v1137_v40  ;;  %v1159_v50 = vadd.f32 %v1158_v54, %v1157_v30  ;;  %v713_v12 = vmul.f32 %v3615_v15, %v3809_v32  ;;  %v1120_v47 = vrot.slane %v1119_v42, 1  ;;  %v3880_v11 = vld [vmem:[%s2765_s7] sm:$0xff] }
 0x34e   : > { %5664 = vst [vmem:[#allocation53_spill] sm:$0xff] %v3821_v25  ;;  %5665 = vst [vmem:[#allocation64_spill] sm:$0xff] %v3823_v27  ;;  %v3833_v38 = vadd.f32 %v1080_v26, %v1079_v0  ;;  %v3835_v36 = vadd.f32 %v1100_v6, %v1099_v21  ;;  %v1179_v57 = vadd.f32 %v1178_v29, %v1177_v45  ;;  %v5667_v0 = vld [vmem:[#allocation52_spill] sm:$0xff] }
 0x34f   : > { %5666 = vst [vmem:[#allocation55_spill] sm:$0xff] %v3825_v61  ;;  %v1189_v10 = vmax.f32 %v3756_v9, %v3758_v55  ;;  %v1191_v56 = vmax.f32 %v3760_v49, %v3763_v19  ;;  %v734_v35 = vmul.f32 %v3621_v44, %v3809_v32  ;;  %v754_v41 = vmul.f32 %v3628_v62, %v3809_v32  ;;  %v1563_v62 = vpop.permute.xlu0 %1562 }
 0x350   : > { %v1193_v15 = vmax.f32 %v3777_v46, %v3779_v28  ;;  %v1195_v21 = vmax.f32 %v3789_v23, %v3791_v31  ;;  %v774_v45 = vmul.f32 %v3575_v16, %v3809_v32  ;;  %v794_v48 = vmul.f32 %v3573_v22, %v3809_v32 }
 0x351   : > { %v1140_v39 = vrot.slane %v1139_v58, 1  ;;  %v1160_v14 = vrot.slane %v1159_v50, 1  ;;  %v722_v17 = vsel %vm714_vm15, %v713_v12, 0.0  ;;  %v814_v44 = vmul.f32 %v3669_v2, %v3809_v32 }
 0x352   : > { %v1180_v13 = vrot.slane %v1179_v57, 1  ;;  %v1197_v20 = vmax.f32 %v3807_v51, %v3811_v8  ;;  %v1199_v60 = vmax.f32 %v3813_v1, %v3815_v18  ;;  %v1201_v16 = vmax.f32 %v3817_v4, %v3821_v25  ;;  %v5689_v4 = vld [vmem:[#allocation14_spill] sm:$0xff] }
 0x353   : > { %v3862_v22 = vadd.f32 %v1120_v47, %v1119_v42  ;;  %v1203_v3 = vmax.f32 %v3823_v27, %v3825_v61  ;;  %v742_v37 = vsel %vm714_vm15, %v734_v35, 0.0  ;;  %v762_v2 = vsel %vm714_vm15, %v754_v41, 0.0  ;;  %v1565_v41 = vpop.permute.xlu1 %1564 }
 0x354   : > { %v723_v40 = vrot.slane %v722_v17, 4  ;;  %v782_v30 = vsel %vm714_vm15, %v774_v45, 0.0  ;;  %v802_v59 = vsel %vm714_vm15, %v794_v48, 0.0  ;;  %v1569_v34 = vsel %vm280_vm0, %v5667_v0, %v1563_v62 }
 0x355   : > { %v3874_v24 = vadd.f32 %v1140_v39, %v1139_v58  ;;  %v822_v63 = vsel %vm714_vm15, %v814_v44, 0.0  ;;  %v834_v43 = vmul.f32 %v5669_v5, %v3809_v32  ;;  %v3885_v26 = vsel %vm2716_vm4, %v3880_v11, %v1569_v34  ;;  %v5674_v34 = vld [vmem:[#allocation48_spill] sm:$0xff] }
 0x356   : > { %5671 = vst [vmem:[#allocation57_spill] sm:$0xff] %v3885_v26  ;;  %v3887_v6 = vadd.f32 %v1160_v14, %v1159_v50  ;;  %v3889_v29 = vadd.f32 %v1180_v13, %v1179_v57  ;;  %v1205_v42 = vmax.f32 %v3827_v52, %v3829_v53  ;;  %1689 = vrot.lane.b32.xlu0 %v3885_v26, %s2607_s13  ;;  %v743_v58 = vrot.slane %v742_v37, 4 }
 0x357   : > { %5668 = vst [vmem:[#allocation56_spill] sm:$0xff] %v3874_v24  ;;  %1686 = vrot.lane.b32.xlu1 %v3885_v26, %s2602_s8  ;;  %v763_v12 = vrot.slane %v762_v2, 4  ;;  %v783_v47 = vrot.slane %v782_v30, 4  ;;  %v803_v35 = vrot.slane %v802_v59, 4  ;;  %v1207_v50 = vmax.f32 %v3833_v38, %v3835_v36 }
 0x358   : > { %5672 = vst [vmem:[#allocation61_spill] sm:$0xff] %v3887_v6  ;;  %5673 = vst [vmem:[#allocation58_spill] sm:$0xff] %v3889_v29  ;;  %v1213_v45 = vmax.f32 %v1189_v10, %v1191_v56  ;;  %v724_v57 = vadd.f32 %v723_v40, %v722_v17  ;;  %v823_v48 = vrot.slane %v822_v63, 4  ;;  %v1209_v39 = vmax.f32 %v3862_v22, %v3874_v24  ;;  %v5675_v10 = vld [vmem:[#allocation18_spill] sm:$0xff] }
 0x359   : > { %v1215_v14 = vmax.f32 %v1193_v15, %v1195_v21  ;;  %v1217_v44 = vmax.f32 %v1197_v20, %v1199_v60  ;;  %v842_v13 = vsel %vm714_vm15, %v834_v43, 0.0  ;;  %v1219_v0 = vmax.f32 %v1201_v16, %v1203_v3  ;;  %v5676_v43 = vld [vmem:[#allocation7_spill] sm:$0xff] }
 0x35a   : > { %v854_v5 = vmul.f32 %v5674_v34, %v3809_v32  ;;  %v1566_v54 = vsel %vm280_vm0, %v1563_v62, %v1565_v41  ;;  %1692 = vrot.lane.b32.xlu0 %v3885_v26, %s2608_s18  ;;  %v744_v56 = vadd.f32 %v743_v58, %v742_v37  ;;  %v764_v17 = vadd.f32 %v763_v12, %v762_v2  ;;  %v5677_v62 = vld [vmem:[#allocation24_spill] sm:$0xff] }
 0x35b   : > { %1712 = vrot.lane.b32.xlu1 %v5675_v10, %s2604_s10  ;;  %v784_v40 = vadd.f32 %v783_v47, %v782_v30  ;;  %v804_v61 = vadd.f32 %v803_v35, %v802_v59  ;;  %v1211_v15 = vmax.f32 %v3887_v6, %v3889_v29  ;;  %v725_v21 = vrot.slane %v724_v57, 2  ;;  %v5680_v30 = vld [vmem:[#allocation31_spill] sm:$0xff]  ;;  %v5705_v6 = vld [vmem:[#allocation37_spill] sm:$0xff] }
 0x35c   : > { %v824_v20 = vadd.f32 %v823_v48, %v822_v63  ;;  %v843_v60 = vrot.slane %v842_v13, 4  ;;  %v1221_v16 = vmax.f32 %v1205_v42, %v1207_v50  ;;  %v1225_v3 = vmax.f32 %v1213_v45, %v1215_v14  ;;  %v5681_v48 = vld [vmem:[#allocation27_spill] sm:$0xff] }
 0x35d   : > { %v1170_v41 = vsub.f32 %v5677_v62, %v5676_v43  ;;  %v3916_v27 = vsel %vm2720_vm5, %v5675_v10, %v1566_v54  ;;  %v1227_v37 = vmax.f32 %v1217_v44, %v1219_v0  ;;  %v862_v2 = vsel %vm714_vm15, %v854_v5, 0.0  ;;  %v5682_v44 = vld [vmem:[#allocation44_spill] sm:$0xff]  ;;  %v5687_v5 = vld [vmem:[#allocation41_spill] sm:$0xff] }
 0x35e   : > { %5679 = vst [vmem:[#allocation54_spill] sm:$0xff] %v3916_v27  ;;  %v874_v59 = vmul.f32 %v5680_v30, %v3809_v32  ;;  %v1520_v63 = vsel %vm228_vm1, %v3819_v33, %v3868_v7  ;;  %1698 = vrot.lane.b32.xlu0 %v3916_v27, %s2604_s10  ;;  %v745_v42 = vrot.slane %v744_v56, 2  ;;  %v765_v58 = vrot.slane %v764_v17, 2 }
 0x35f   : > { %1756 = vrot.lane.b32.xlu1 %v5675_v10, %s2606_s12  ;;  %v785_v54 = vrot.slane %v784_v40, 2  ;;  %v805_v12 = vrot.slane %v804_v61, 2  ;;  %v1223_v47 = vmax.f32 %v1209_v39, %v1211_v15  ;;  %v726_v35 = vadd.f32 %v725_v21, %v724_v57  ;;  %v5686_v21 = vld [vmem:[#allocation21_spill] sm:$0xff] }
 0x360   : > { %v825_v50 = vrot.slane %v824_v20, 2  ;;  %v844_v45 = vadd.f32 %v843_v60, %v842_v13  ;;  %v3930_v14 = vmul.f32 %v5681_v48, %v5681_v48  ;;  %v3934_v33 = vmul.f32 %v5682_v44, %v5682_v44  ;;  %v5685_v13 = vld [vmem:[#allocation47_spill] sm:$0xff] }
 0x361   : > { %v863_v0 = vrot.slane %v862_v2, 4  ;;  %v3939_v43 = vsel %vm2708_vm2, %v3880_v11, %v1520_v63  ;;  %v1231_v62 = vmax.f32 %v1225_v3, %v1227_v37  ;;  %v882_v39 = vsel %vm714_vm15, %v874_v59, 0.0 }
 0x362   : > { %5684 = vst [vmem:[#allocation65_spill] sm:$0xff] %v3939_v43  ;;  %v3942_v57 = vmul.f32 %v1170_v41, %v1170_v41  ;;  %v1523_v15 = vsel %vm228_vm1, %v3868_v7, %v5685_v13  ;;  %1720 = vrot.lane.b32.xlu0 %v3939_v43, %s2602_s8  ;;  %v746_v60 = vadd.f32 %v745_v42, %v744_v56  ;;  %v727_v3 = vrot.slane %v726_v35, 1  ;;  %v5688_v7 = vld [vmem:[#allocation25_spill] sm:$0xff] }
 0x363   : > { %1572 = vrot.lane.b32.xlu1 %v5686_v21, %s2602_s8  ;;  %v766_v30 = vadd.f32 %v765_v58, %v764_v17  ;;  %v786_v48 = vadd.f32 %v785_v54, %v784_v40  ;;  %v806_v63 = vadd.f32 %v805_v12, %v804_v61  ;;  %v1229_v44 = vmax.f32 %v1221_v16, %v1223_v47 }
 0x364   : > { %v826_v37 = vadd.f32 %v825_v50, %v824_v20  ;;  %v845_v59 = vrot.slane %v844_v45, 2  ;;  %v864_v41 = vadd.f32 %v863_v0, %v862_v2  ;;  %v883_v34 = vrot.slane %v882_v39, 4 }
 0x365   : > { %v894_v25 = vmul.f32 %v5687_v5, %v3809_v32  ;;  %v914_v13 = vmul.f32 %v5688_v7, %v3809_v32  ;;  %v3955_v21 = vmax.f32 %v1231_v62, %v1229_v44  ;;  %v934_v56 = vmul.f32 %v5689_v4, %v3809_v32  ;;  %v5692_v4 = vld [vmem:[#allocation45_spill] sm:$0xff]  ;;  %v5694_v7 = vld [vmem:[#allocation43_spill] sm:$0xff] }
 0x366   : > { %v3962_v61 = vsel %vm2712_vm3, %v5675_v10, %v1523_v15  ;;  %1742 = vrot.lane.b32.xlu0 %v3916_v27, %s2606_s12  ;;  %v747_v40 = vrot.slane %v746_v60, 1  ;;  %v767_v20 = vrot.slane %v766_v30, 1  ;;  %v787_v16 = vrot.slane %v786_v48, 1  ;;  %v5693_v15 = vld [vmem:[#allocation46_spill] sm:$0xff] }
 0x367   : > { %5691 = vst [vmem:[#allocation62_spill] sm:$0xff] %v3962_v61  ;;  %1582 = vrot.lane.b32.xlu1 %v5675_v10, %s2602_s8  ;;  %v807_v2 = vrot.slane %v806_v63, 1  ;;  %v3968_v42 = vadd.f32 %v727_v3, %v726_v35  ;;  %v827_v58 = vrot.slane %v826_v37, 1  ;;  %v846_v54 = vadd.f32 %v845_v59, %v844_v45  ;;  %v5695_v3 = vld [vmem:[#allocation42_spill] sm:$0xff]  ;;  %v5696_v59 = vld [vmem:[#allocation19_spill] sm:$0xff] }
 0x368   : > { %v954_v12 = vmul.f32 %v5692_v4, %v3809_v32  ;;  %v865_v47 = vrot.slane %v864_v41, 2  ;;  %v884_v50 = vadd.f32 %v883_v34, %v882_v39  ;;  %v902_v0 = vsel %vm714_vm15, %v894_v25, 0.0 }
 0x369   : > { %v922_v5 = vsel %vm714_vm15, %v914_v13, 0.0  ;;  %v942_v62 = vsel %vm714_vm15, %v934_v56, 0.0  ;;  %v974_v44 = vmul.f32 %v5693_v15, %v3809_v32  ;;  %v994_v35 = vmul.f32 %v5694_v7, %v3809_v32 }
 0x36a   : > { %v1014_v45 = vmul.f32 %v5695_v3, %v3809_v32  ;;  %1764 = vrot.lane.b32.xlu0 %v3962_v61, %s2606_s12  ;;  %v3985_v25 = vadd.f32 %v747_v40, %v746_v60  ;;  %v3987_v34 = vadd.f32 %v767_v20, %v766_v30  ;;  %v3989_v39 = vadd.f32 %v787_v16, %v786_v48  ;;  %v5699_v20 = vld [vmem:[#allocation26_spill] sm:$0xff] }
 0x36b   : > { %1590 = vrot.lane.b32.xlu1 %v5696_v59, %s2602_s8  ;;  %v3991_v13 = vadd.f32 %v807_v2, %v806_v63  ;;  %v3993_v56 = vadd.f32 %v827_v58, %v826_v37  ;;  %v847_v4 = vrot.slane %v846_v54, 1  ;;  %v903_v15 = vrot.slane %v902_v0, 4  ;;  %v5697_v63 = vld [vmem:[#allocation29_spill] sm:$0xff]  ;;  %v5698_v37 = vld [vmem:[#allocation22_spill] sm:$0xff] }
 0x36c   : > { %v962_v7 = vsel %vm714_vm15, %v954_v12, 0.0  ;;  %v3996_v3 = vadd.f32 %v865_v47, %v864_v41  ;;  %v885_v17 = vrot.slane %v884_v50, 2  ;;  %v923_v59 = vrot.slane %v922_v5, 4  ;;  %v5700_v58 = vld [vmem:[#allocation17_spill] sm:$0xff]  ;;  %v5701_v47 = vld [vmem:[#allocation15_spill] sm:$0xff] }
 0x36d   : > { %v943_v10 = vrot.slane %v942_v62, 4  ;;  %v982_v60 = vsel %vm714_vm15, %v974_v44, 0.0  ;;  %v1002_v30 = vsel %vm714_vm15, %v994_v35, 0.0  ;;  %v1022_v48 = vsel %vm714_vm15, %v1014_v45, 0.0  ;;  %v5702_v45 = vld [vmem:[#allocation12_spill] sm:$0xff] }
 0x36e   : > { %v1034_v40 = vmul.f32 %v5697_v63, %v3809_v32  ;;  %1745 = vrot.lane.b32.xlu0 %v3916_v27, %s2605_s11  ;;  %v963_v41 = vrot.slane %v962_v7, 4  ;;  %v1054_v16 = vmul.f32 %v5699_v20, %v3809_v32  ;;  %v1074_v2 = vmul.f32 %v3934_v33, %v3809_v32 }
 0x36f   : > { %1598 = vrot.lane.b32.xlu1 %v5698_v37, %s2603_s9  ;;  %v1094_v12 = vmul.f32 %v5700_v58, %v3809_v32  ;;  %v1114_v44 = vmul.f32 %v5701_v47, %v3809_v32  ;;  %v1134_v35 = vmul.f32 %v3930_v14, %v3809_v32  ;;  %v1154_v63 = vmul.f32 %v5702_v45, %v3809_v32  ;;  %v5703_v47 = vld [vmem:[#allocation20_spill] sm:$0xff] }
 0x370   : > { %v1174_v37 = vmul.f32 %v3942_v57, %v3809_v32  ;;  %v904_v18 = vadd.f32 %v903_v15, %v902_v0  ;;  %v983_v20 = vrot.slane %v982_v60, 4  ;;  %v1003_v1 = vrot.slane %v1002_v30, 4 }
 0x371   : > { %v1023_v8 = vrot.slane %v1022_v48, 4  ;;  %v4021_v33 = vadd.f32 %v847_v4, %v846_v54  ;;  %v924_v51 = vadd.f32 %v923_v59, %v922_v5  ;;  %v944_v58 = vadd.f32 %v943_v10, %v942_v62 }
 0x372   : > { %v1042_v31 = vsel %vm714_vm15, %v1034_v40, 0.0  ;;  %1726 = vrot.lane.b32.xlu0 %v3939_v43, %s2608_s18  ;;  %v964_v14 = vadd.f32 %v963_v41, %v962_v7  ;;  %v1062_v45 = vsel %vm714_vm15, %v1054_v16, 0.0  ;;  %v1082_v32 = vsel %vm714_vm15, %v1074_v2, 0.0  ;;  %v5704_v2 = vld [vmem:[#allocation38_spill] sm:$0xff] }
 0x373   : > { %1612 = vrot.lane.b32.xlu1 %v5703_v47, %s2603_s9  ;;  %v1102_v57 = vsel %vm714_vm15, %v1094_v12, 0.0  ;;  %v1122_v54 = vsel %vm714_vm15, %v1114_v44, 0.0  ;;  %v1142_v0 = vsel %vm714_vm15, %v1134_v35, 0.0  ;;  %v1162_v10 = vsel %vm714_vm15, %v1154_v63, 0.0 }
 0x374   : > { %v1182_v5 = vsel %vm714_vm15, %v1174_v37, 0.0  ;;  %v984_v62 = vadd.f32 %v983_v20, %v982_v60  ;;  %v1004_v59 = vadd.f32 %v1003_v1, %v1002_v30  ;;  %v1024_v4 = vadd.f32 %v1023_v8, %v1022_v48 }
 0x375   : > { %v1043_v15 = vrot.slane %v1042_v31, 4  ;;  %v4035_v40 = vadd.f32 %v885_v17, %v884_v50  ;;  %v1063_v7 = vrot.slane %v1062_v45, 4  ;;  %v1083_v41 = vrot.slane %v1082_v32, 4 }
 0x376   : > { %v1103_v16 = vrot.slane %v1102_v57, 4  ;;  %1770 = vrot.lane.b32.xlu0 %v3962_v61, %s2603_s9  ;;  %v1123_v12 = vrot.slane %v1122_v54, 4  ;;  %v1143_v44 = vrot.slane %v1142_v0, 4  ;;  %v1163_v35 = vrot.slane %v1162_v10, 4 }
 0x377   : > { %1623 = vrot.lane.b32.xlu1 %v5704_v2, %s2607_s13  ;;  %v1183_v63 = vrot.slane %v1182_v5, 4  ;;  %v905_v37 = vrot.slane %v904_v18, 2  ;;  %v925_v60 = vrot.slane %v924_v51, 2  ;;  %v945_v1 = vrot.slane %v944_v58, 2 }
 0x378   : > { %v965_v8 = vrot.slane %v964_v14, 2  ;;  %v985_v30 = vrot.slane %v984_v62, 2  ;;  %v1005_v17 = vrot.slane %v1004_v59, 2  ;;  %v1025_v50 = vrot.slane %v1024_v4, 2 }
 0x379   : > { %v1044_v48 = vadd.f32 %v1043_v15, %v1042_v31  ;;  %v867_v20 = vrot.slane %v3996_v3, 1  ;;  %v1064_v47 = vadd.f32 %v1063_v7, %v1062_v45  ;;  %v1084_v23 = vadd.f32 %v1083_v41, %v1082_v32 }
 0x37a   : > { %v1104_v27 = vadd.f32 %v1103_v16, %v1102_v57  ;;  %1710 = vrot.lane.b32.xlu0 %v3880_v11, %s2604_s10  ;;  %v1124_v28 = vadd.f32 %v1123_v12, %v1122_v54  ;;  %v1144_v46 = vadd.f32 %v1143_v44, %v1142_v0  ;;  %v1164_v19 = vadd.f32 %v1163_v35, %v1162_v10  ;;  %v4052_v44 = vpop.permute.xlu0 %1580 }
 0x37b   : > { %1632 = vrot.lane.b32.xlu1 %v3880_v11, %s2607_s13  ;;  %v1184_v49 = vadd.f32 %v1183_v63, %v1182_v5  ;;  %v887_v55 = vrot.slane %v4035_v40, 1  ;;  %v906_v9 = vadd.f32 %v905_v37, %v904_v18  ;;  %v926_v43 = vadd.f32 %v925_v60, %v924_v51 }
 0x37c   : > { %v946_v31 = vadd.f32 %v945_v1, %v944_v58  ;;  %v966_v15 = vadd.f32 %v965_v8, %v964_v14  ;;  %v986_v29 = vadd.f32 %v985_v30, %v984_v62  ;;  %v1006_v45 = vadd.f32 %v1005_v17, %v1004_v59 }
 0x37d   : > { %v1026_v32 = vadd.f32 %v1025_v50, %v1024_v4  ;;  %v1045_v57 = vrot.slane %v1044_v48, 2  ;;  %v1065_v7 = vrot.slane %v1064_v47, 2  ;;  %v1085_v41 = vrot.slane %v1084_v23, 2 }
 0x37e   : > { %v1105_v16 = vrot.slane %v1104_v27, 2  ;;  %v1125_v54 = vrot.slane %v1124_v28, 2  ;;  %v1145_v0 = vrot.slane %v1144_v46, 2  ;;  %v1165_v10 = vrot.slane %v1164_v19, 2 }
 0x37f   : > { %1643 = vrot.lane.b32.xlu1 %v5705_v6, %s2607_s13  ;;  %v1185_v5 = vrot.slane %v1184_v49, 2  ;;  %v4050_v12 = vadd.f32 %v867_v20, %v3996_v3  ;;  %v907_v51 = vrot.slane %v906_v9, 1  ;;  %v927_v18 = vrot.slane %v926_v43, 1 }
 0x380   : > { %v947_v58 = vrot.slane %v946_v31, 1  ;;  %v967_v14 = vrot.slane %v966_v15, 1  ;;  %v987_v62 = vrot.slane %v986_v29, 1  ;;  %v1007_v59 = vrot.slane %v1006_v45, 1 }
 0x381   : > { %v1027_v4 = vrot.slane %v1026_v32, 1  ;;  %v1046_v35 = vadd.f32 %v1045_v57, %v1044_v48  ;;  %v1066_v63 = vadd.f32 %v1065_v7, %v1064_v47  ;;  %v1086_v37 = vadd.f32 %v1085_v41, %v1084_v23 }
 0x382   : > { %v1106_v60 = vadd.f32 %v1105_v16, %v1104_v27  ;;  %v1126_v1 = vadd.f32 %v1125_v54, %v1124_v28  ;;  %v1146_v8 = vadd.f32 %v1145_v0, %v1144_v46  ;;  %v1166_v3 = vadd.f32 %v1165_v10, %v1164_v19 }
 0x383   : > { %1652 = vrot.lane.b32.xlu1 %v5704_v2, %s2605_s11  ;;  %v1186_v30 = vadd.f32 %v1185_v5, %v1184_v49  ;;  %v4057_v17 = vadd.f32 %v887_v55, %v4035_v40  ;;  %v4059_v50 = vadd.f32 %v907_v51, %v906_v9  ;;  %v4061_v20 = vadd.f32 %v927_v18, %v926_v43 }
 0x384   : > { %v4063_v24 = vadd.f32 %v947_v58, %v946_v31  ;;  %v4065_v48 = vadd.f32 %v967_v14, %v966_v15  ;;  %v4067_v23 = vadd.f32 %v987_v62, %v986_v29  ;;  %v4069_v27 = vadd.f32 %v1007_v59, %v1006_v45  ;;  %v4075_v31 = vpop.permute.xlu0 %1620 }
 0x385   : > { %v4071_v47 = vadd.f32 %v1027_v4, %v1026_v32  ;;  %v1047_v46 = vrot.slane %v1046_v35, 1  ;;  %v1067_v19 = vrot.slane %v1066_v63, 1  ;;  %v1087_v49 = vrot.slane %v1086_v37, 1 }
 0x386   : > { %v1107_v28 = vrot.slane %v1106_v60, 1  ;;  %v1127_v9 = vrot.slane %v1126_v1, 1  ;;  %v1147_v55 = vrot.slane %v1146_v8, 1  ;;  %v1167_v43 = vrot.slane %v1166_v3, 1 }
 0x387   : > { %1673 = vrot.lane.b32.xlu1 %v5705_v6, %s2605_s11  ;;  %v1187_v40 = vrot.slane %v1186_v30, 1  ;;  %v1190_v29 = vmax.f32 %v3968_v42, %v3985_v25  ;;  %v1192_v15 = vmax.f32 %v3987_v34, %v3989_v39  ;;  %v1194_v45 = vmax.f32 %v3991_v13, %v3993_v56 }
 0x388   : > { %v1196_v32 = vmax.f32 %v4021_v33, %v4050_v12  ;;  %v1198_v57 = vmax.f32 %v4057_v17, %v4059_v50  ;;  %v1200_v7 = vmax.f32 %v4061_v20, %v4063_v24  ;;  %v1202_v41 = vmax.f32 %v4065_v48, %v4067_v23 }
 0x389   : > { %v1204_v16 = vmax.f32 %v4069_v27, %v4071_v47  ;;  %v4093_v54 = vadd.f32 %v1047_v46, %v1046_v35  ;;  %v4095_v0 = vadd.f32 %v1067_v19, %v1066_v63  ;;  %v4097_v10 = vadd.f32 %v1087_v49, %v1086_v37  ;;  %v4111_v63 = vpop.permute.xlu0 %1654 }
 0x38a   : > { %v4099_v5 = vadd.f32 %v1107_v28, %v1106_v60  ;;  %v4103_v51 = vadd.f32 %v1127_v9, %v1126_v1  ;;  %v4105_v18 = vadd.f32 %v1147_v55, %v1146_v8  ;;  %v4107_v58 = vadd.f32 %v1167_v43, %v1166_v3  ;;  %5706 = vst [vmem:[#allocation63_spill] sm:$0xff] %v4111_v63 }
 0x38b   : > { %1707 = vrot.lane.b32.xlu1 %v3880_v11, %s2608_s18  ;;  %v4109_v14 = vadd.f32 %v1187_v40, %v1186_v30  ;;  %v1214_v62 = vmax.f32 %v1190_v29, %v1192_v15  ;;  %v1216_v59 = vmax.f32 %v1194_v45, %v1196_v32  ;;  %v1218_v4 = vmax.f32 %v1198_v57, %v1200_v7  ;;  %v5707_v40 = vld [vmem:[#allocation56_spill] sm:$0xff]  ;;  %v5708_v15 = vld [vmem:[#allocation61_spill] sm:$0xff]  ;;  %v5709_v57 = vld [vmem:[#allocation58_spill] sm:$0xff] }
 0x38c   : > { %v1220_v35 = vmax.f32 %v1202_v41, %v1204_v16  ;;  %v1331_v37 = vsub.f32 %v3827_v52, %v3955_v21  ;;  %v1206_v11 = vmax.f32 %v4093_v54, %v4095_v0  ;;  %v1208_v60 = vmax.f32 %v4097_v10, %v4099_v5  ;;  %v5710_v41 = vld [vmem:[#allocation65_spill] sm:$0xff] }
 0x38d   : > { %v1210_v1 = vmax.f32 %v4103_v51, %v4105_v18  ;;  %v1212_v8 = vmax.f32 %v4107_v58, %v4109_v14  ;;  %v1337_v3 = vsub.f32 %v3829_v53, %v3955_v21  ;;  %v1343_v52 = vsub.f32 %v3833_v38, %v3955_v21  ;;  %v4135_v43 = vpop.permute.xlu0 %1666 }
 0x38e   : > { %v1226_v30 = vmax.f32 %v1214_v62, %v1216_v59  ;;  %v1228_v46 = vmax.f32 %v1218_v4, %v1220_v35  ;;  %v1349_v19 = vsub.f32 %v3835_v36, %v3955_v21  ;;  %v1333_v49 = vmul.f32 1.442695, %v1331_v37  ;;  %v5711_v62 = vld [vmem:[#allocation40_spill] sm:$0xff]  ;;  %v5712_v35 = vld [vmem:[#allocation33_spill] sm:$0xff] }
 0x38f   : > { %1696 = vrot.lane.b32.xlu1 %v3885_v26, %s2604_s10  ;;  %v1355_v28 = vsub.f32 %v3862_v22, %v3955_v21  ;;  %v1222_v9 = vmax.f32 %v1206_v11, %v1208_v60  ;;  %v1224_v55 = vmax.f32 %v1210_v1, %v1212_v8  ;;  %v1339_v53 = vmul.f32 1.442695, %v1337_v3  ;;  %v5713_v1 = vld [vmem:[#allocation28_spill] sm:$0xff] }
 0x390   : > { %v1361_v38 = vsub.f32 %v5707_v40, %v3955_v21  ;;  %v1345_v29 = vmul.f32 1.442695, %v1343_v52  ;;  %v1367_v45 = vsub.f32 %v5708_v15, %v3955_v21  ;;  %v1232_v36 = vmax.f32 %v1226_v30, %v1228_v46  ;;  %v5714_v30 = vld [vmem:[#allocation23_spill] sm:$0xff] }
 0x391   : > { %v1351_v32 = vmul.f32 1.442695, %v1349_v19  ;;  %v1373_v7 = vsub.f32 %v5709_v57, %v3955_v21  ;;  %2435 = vpow2.f32 %v1333_v49  ;;  %v1357_v22 = vmul.f32 1.442695, %v1355_v28  ;;  %v4153_v3 = vpop.permute.xlu0 %1680  ;;  %v5715_v49 = vld [vmem:[#allocation39_spill] sm:$0xff] }
 0x392   : > { %v1230_v16 = vmax.f32 %v1222_v9, %v1224_v55  ;;  %v1235_v59 = vsub.f32 %v5711_v62, %v3955_v21  ;;  %2437 = vpow2.f32 %v1339_v53  ;;  %v1363_v4 = vmul.f32 1.442695, %v1361_v38  ;;  %v5716_v55 = vld [vmem:[#allocation34_spill] sm:$0xff] }
 0x393   : > { %1732 = vrot.lane.b32.xlu1 %v3962_v61, %s2604_s10  ;;  %v1241_v37 = vsub.f32 %v5712_v35, %v3955_v21  ;;  %2439 = vpow2.f32 %v1345_v29  ;;  %v1369_v11 = vmul.f32 1.442695, %v1367_v45  ;;  %v1247_v8 = vsub.f32 %v5713_v1, %v3955_v21  ;;  %v5717_v45 = vld [vmem:[#allocation54_spill] sm:$0xff] }
 0x394   : > { %v4149_v60 = vmax.f32 %v1232_v36, %v1230_v16  ;;  %2441 = vpow2.f32 %v1351_v32  ;;  %v1375_v52 = vmul.f32 1.442695, %v1373_v7  ;;  %v1253_v46 = vsub.f32 %v5714_v30, %v3955_v21 }
 0x395   : > { %2443 = vpow2.f32 %v1357_v22  ;;  %v1237_v19 = vmul.f32 1.442695, %v1235_v59  ;;  %v1259_v28 = vsub.f32 %v5715_v49, %v3955_v21  ;;  %v1243_v9 = vmul.f32 1.442695, %v1241_v37  ;;  %v4171_v57 = vpop.permute.xlu0 %1574  ;;  %v5722_v37 = vld [vmem:[#allocation50_spill] sm:$0xff]  ;;  %v5724_v49 = vld [vmem:[#allocation49_spill] sm:$0xff] }
 0x396   : > { %2445 = vpow2.f32 %v1363_v4  ;;  %v1265_v53 = vsub.f32 %v5716_v55, %v3955_v21  ;;  %v1284_v40 = vsub.f32 %v4057_v17, %v4149_v60  ;;  %v1249_v38 = vmul.f32 1.442695, %v1247_v8  ;;  %5718 = vst [vmem:[#allocation60_spill] sm:$0xff] %v4171_v57  ;;  %v5719_v17 = vld [vmem:[#allocation6_spill] sm:$0xff]  ;;  %v5721_v4 = vld [vmem:[#allocation16_spill] sm:$0xff] }
 0x397   : > { %1723 = vrot.lane.b32.xlu1 %v5710_v41, %s2607_s13  ;;  %2447 = vpow2.f32 %v1369_v11  ;;  %v1332_v29 = vsub.f32 %v4093_v54, %v4149_v60  ;;  %v1255_v15 = vmul.f32 1.442695, %v1253_v46  ;;  %v1338_v36 = vsub.f32 %v4095_v0, %v4149_v60  ;;  %v5720_v54 = vld [vmem:[#allocation13_spill] sm:$0xff] }
 0x398   : > { %2449 = vpow2.f32 %v1375_v52  ;;  %v1261_v32 = vmul.f32 1.442695, %v1259_v28  ;;  %v1267_v7 = vmul.f32 1.442695, %v1265_v53  ;;  %v1271_v22 = vsub.f32 %v5719_v17, %v3955_v21  ;;  %v5723_v52 = vld [vmem:[#allocation51_spill] sm:$0xff] }
 0x399   : > { %2451 = vpow2.f32 %v1237_v19  ;;  %v1287_v16 = vmul.f32 1.442695, %v1284_v40  ;;  %v1277_v62 = vsub.f32 %v5720_v54, %v3955_v21  ;;  %v1335_v59 = vmul.f32 1.442695, %v1332_v29  ;;  %v5726_v40 = vld [vmem:[#allocation32_spill] sm:$0xff] }
 0x39a   : > { %2453 = vpow2.f32 %v1243_v9  ;;  %v1283_v35 = vsub.f32 %v5721_v4, %v3955_v21  ;;  %v1341_v0 = vmul.f32 1.442695, %v1338_v36  ;;  %v1289_v11 = vsub.f32 %v5722_v37, %v3955_v21  ;;  %v4191_v9 = vpop.permute.xlu0 %1588  ;;  %v5728_v36 = vld [vmem:[#allocation53_spill] sm:$0xff] }
 0x39b   : > { %1767 = vrot.lane.b32.xlu1 %v3962_v61, %s2605_s11  ;;  %2455 = vpow2.f32 %v1249_v38  ;;  %v1273_v8 = vmul.f32 1.442695, %v1271_v22  ;;  %v1295_v30 = vsub.f32 %v5723_v52, %v3955_v21  ;;  %v1279_v19 = vmul.f32 1.442695, %v1277_v62  ;;  %v5729_v22 = vld [vmem:[#allocation64_spill] sm:$0xff] }
 0x39c   : > { %2457 = vpow2.f32 %v1255_v15  ;;  %v1301_v28 = vsub.f32 %v5724_v49, %v3955_v21  ;;  %v1285_v53 = vmul.f32 1.442695, %v1283_v35  ;;  %v1307_v38 = vsub.f32 %v5726_v40, %v3955_v21 }
 0x39d   : > { %2459 = vpow2.f32 %v1261_v32  ;;  %v1291_v15 = vmul.f32 1.442695, %v1289_v11  ;;  %v1313_v32 = vsub.f32 %v5728_v36, %v3955_v21  ;;  %v1297_v17 = vmul.f32 1.442695, %v1295_v30 }
 0x39e   : > { %v4183_v1 = vpop.eup %2435  ;;  %2461 = vpow2.f32 %v1267_v7  ;;  %v1303_v62 = vmul.f32 1.442695, %v1301_v28  ;;  %v1236_v37 = vsub.f32 %v3968_v42, %v4149_v60  ;;  %v1242_v52 = vsub.f32 %v3985_v25, %v4149_v60  ;;  %v4217_v30 = vpop.permute.xlu0 %1596 }
 0x39f   : > { %1748 = vrot.lane.b32.xlu1 %v5717_v45, %s2603_s9  ;;  %v4187_v46 = vpop.eup %2437  ;;  %2463 = vpow2.f32 %v1287_v16  ;;  %v1319_v16 = vsub.f32 %v5729_v22, %v3955_v21  ;;  %5733 = vst [vmem:[#allocation7_spill] sm:$0xff] %v4217_v30  ;;  %v1248_v49 = vsub.f32 %v3987_v34, %v4149_v60  ;;  %v1266_v34 = vsub.f32 %v3993_v56, %v4149_v60 }
 0x3a0   : > { %v4193_v55 = vpop.eup %2439  ;;  %2465 = vpow2.f32 %v1335_v59  ;;  %v5731_v59 = vld [vmem:[#allocation55_spill] sm:$0xff]  ;;  %v1239_v25 = vmul.f32 1.442695, %v1236_v37  ;;  %v1245_v36 = vmul.f32 1.442695, %v1242_v52 }
 0x3a1   : > { %5725 = vst [vmem:[#allocation59_spill] sm:$0xff] %v4193_v55  ;;  %v4197_v29 = vpop.eup %2441  ;;  %2467 = vpow2.f32 %v1341_v0  ;;  %v1325_v4 = vsub.f32 %v5731_v59, %v3955_v21  ;;  %v1309_v0 = vmul.f32 1.442695, %v1307_v38  ;;  %v1321_v21 = vmul.f32 1.442695, %v1319_v16 }
 0x3a2   : > { %5727 = vst [vmem:[#allocation52_spill] sm:$0xff] %v4197_v29  ;;  %v4201_v7 = vpop.eup %2443  ;;  %2469 = vpow2.f32 %v1273_v8  ;;  %v1315_v8 = vmul.f32 1.442695, %v1313_v32  ;;  %v1260_v38 = vsub.f32 %v3991_v13, %v4149_v60  ;;  %v1278_v13 = vsub.f32 %v4050_v12, %v4149_v60 }
 0x3a3   : > { %1730 = vrot.lane.b32.xlu1 %v5710_v41, %s2604_s10  ;;  %v4205_v54 = vpop.eup %2445  ;;  %2471 = vpow2.f32 %v1279_v19  ;;  %v1327_v42 = vmul.f32 1.442695, %v1325_v4  ;;  %v4247_v4 = vpop.permute.xlu1 %1606 }
 0x3a4   : > { %5730 = vst [vmem:[#allocation30_spill] sm:$0xff] %v4205_v54  ;;  %v4209_v35 = vpop.eup %2447  ;;  %2473 = vpow2.f32 %v1285_v53  ;;  %v1254_v53 = vsub.f32 %v3989_v39, %v4149_v60  ;;  %v1272_v39 = vsub.f32 %v4021_v33, %v4149_v60  ;;  %v1263_v56 = vmul.f32 1.442695, %v1260_v38 }
 0x3a5   : > { %v4213_v11 = vpop.eup %2449  ;;  %2475 = vpow2.f32 %v1291_v15  ;;  %v1269_v33 = vmul.f32 1.442695, %v1266_v34 }
 0x3a6   : > { %5732 = vst [vmem:[#allocation48_spill] sm:$0xff] %v4213_v11  ;;  %v4219_v19 = vpop.eup %2451  ;;  %2477 = vpow2.f32 %v1297_v17  ;;  %v1251_v17 = vmul.f32 1.442695, %v1248_v49  ;;  %v1257_v16 = vmul.f32 1.442695, %v1254_v53 }
 0x3a7   : > { %v4223_v28 = vpop.eup %2453  ;;  %2479 = vpow2.f32 %v1303_v62  ;;  %v4243_v62 = vpop.permute.xlu0 %1604  ;;  %v1275_v12 = vmul.f32 1.442695, %v1272_v39 }
 0x3a8   : > { %v4227_v40 = vpop.eup %2455  ;;  %2481 = vpow2.f32 %v1309_v0  ;;  %v1290_v0 = vsub.f32 %v4059_v50, %v4149_v60  ;;  %v1308_v50 = vsub.f32 %v4065_v48, %v4149_v60  ;;  %v4275_v39 = vpop.permute.xlu1 %1640 }
 0x3a9   : > { %v4231_v15 = vpop.eup %2457  ;;  %2483 = vpow2.f32 %v1315_v8  ;;  %v1296_v8 = vsub.f32 %v4061_v20, %v4149_v60  ;;  %v1314_v20 = vsub.f32 %v4067_v23, %v4149_v60  ;;  %v1344_v23 = vsub.f32 %v4097_v10, %v4149_v60 }
 0x3aa   : > { %v4235_v32 = vpop.eup %2459  ;;  %2485 = vpow2.f32 %v1321_v21  ;;  %v1302_v21 = vsub.f32 %v4063_v24, %v4149_v60  ;;  %v1320_v24 = vsub.f32 %v4069_v27, %v4149_v60  ;;  %v1350_v27 = vsub.f32 %v4099_v5, %v4149_v60 }
 0x3ab   : > { %v4239_v22 = vpop.eup %2461  ;;  %2487 = vpow2.f32 %v1327_v42  ;;  %v1281_v42 = vmul.f32 1.442695, %v1278_v13  ;;  %v4271_v34 = vpop.permute.xlu0 %1614  ;;  %v1362_v10 = vsub.f32 %v4105_v18, %v4149_v60  ;;  %v1347_v45 = vmul.f32 1.442695, %v1344_v23 }
 0x3ac   : > { %v4245_v59 = vpop.eup %2463  ;;  %2489 = vpow2.f32 %v1239_v25  ;;  %v1293_v25 = vmul.f32 1.442695, %v1290_v0  ;;  %v1305_v48 = vmul.f32 1.442695, %v1302_v21  ;;  %v1368_v5 = vsub.f32 %v4107_v58, %v4149_v60 }
 0x3ad   : > { %5734 = vst [vmem:[#allocation24_spill] sm:$0xff] %v4245_v59  ;;  %v4251_v37 = vpop.eup %2465  ;;  %2491 = vpow2.f32 %v1245_v36  ;;  %v1299_v36 = vmul.f32 1.442695, %v1296_v8  ;;  %v1365_v23 = vmul.f32 1.442695, %v1362_v10 }
 0x3ae   : > { %v4255_v52 = vpop.eup %2467  ;;  %2493 = vpow2.f32 %v1251_v17 }
 0x3af   : > { %v4259_v49 = vpop.eup %2469  ;;  %2495 = vpow2.f32 %v1257_v16  ;;  %v1326_v16 = vsub.f32 %v4071_v47, %v4149_v60  ;;  %v1323_v47 = vmul.f32 1.442695, %v1320_v24  ;;  %v4305_v24 = vpop.permute.xlu1 %1659 }
 0x3b0   : > { %v4263_v53 = vpop.eup %2471  ;;  %2497 = vpow2.f32 %v1263_v56  ;;  %v1311_v56 = vmul.f32 1.442695, %v1308_v50 }
 0x3b1   : > { %5735 = vst [vmem:[#allocation31_spill] sm:$0xff] %v4263_v53  ;;  %v4267_v38 = vpop.eup %2473  ;;  %2499 = vpow2.f32 %v1269_v33  ;;  %v1317_v33 = vmul.f32 1.442695, %v1314_v20 }
 0x3b2   : > { %5736 = vst [vmem:[#allocation27_spill] sm:$0xff] %v4267_v38  ;;  %v4273_v17 = vpop.eup %2475  ;;  %2501 = vpow2.f32 %v1275_v12  ;;  %v1356_v12 = vsub.f32 %v4103_v51, %v4149_v60  ;;  %v1353_v51 = vmul.f32 1.442695, %v1350_v27 }
 0x3b3   : > { %5737 = vst [vmem:[#allocation44_spill] sm:$0xff] %v4273_v17  ;;  %v4279_v13 = vpop.eup %2477  ;;  %2503 = vpow2.f32 %v1281_v42  ;;  %v1329_v42 = vmul.f32 1.442695, %v1326_v16 }
 0x3b4   : > { %5738 = vst [vmem:[#allocation47_spill] sm:$0xff] %v4279_v13  ;;  %v4283_v0 = vpop.eup %2479  ;;  %2505 = vpow2.f32 %v1293_v25  ;;  %v4299_v25 = vpop.permute.xlu0 %1625 }
 0x3b5   : > { %v4287_v8 = vpop.eup %2481  ;;  %2507 = vpow2.f32 %v1299_v36  ;;  %5741 = vst [vmem:[#allocation14_spill] sm:$0xff] %v4299_v25  ;;  %v1374_v36 = vsub.f32 %v4109_v14, %v4149_v60 }
 0x3b6   : > { %5739 = vst [vmem:[#allocation41_spill] sm:$0xff] %v4287_v8  ;;  %v4291_v21 = vpop.eup %2483  ;;  %2509 = vpow2.f32 %v1305_v48  ;;  %v1359_v48 = vmul.f32 1.442695, %v1356_v12  ;;  %v4321_v12 = vpop.permute.xlu1 %1675 }
 0x3b7   : > { %5740 = vst [vmem:[#allocation25_spill] sm:$0xff] %v4291_v21  ;;  %v4295_v50 = vpop.eup %2485  ;;  %2511 = vpow2.f32 %v1311_v56  ;;  %v1371_v56 = vmul.f32 1.442695, %v1368_v5  ;;  %v1377_v27 = vmul.f32 1.442695, %v1374_v36  ;;  %5750 = vst [vmem:[#allocation12_spill] sm:$0xff] %v4321_v12  ;;  %v1383_v5 = vadd.f32 %v4239_v22, %v4235_v32 }
 0x3b8   : > { %v4301_v20 = vpop.eup %2487  ;;  %2513 = vpow2.f32 %v1317_v33  ;;  %v4317_v60 = vpop.permute.xlu0 %1634 }
 0x3b9   : > { %5742 = vst [vmem:[#allocation45_spill] sm:$0xff] %v4301_v20  ;;  %v4307_v18 = vpop.eup %2489  ;;  %2515 = vpow2.f32 %v1323_v47  ;;  %5748 = vst [vmem:[#allocation17_spill] sm:$0xff] %v4317_v60 }
 0x3ba   : > { %5743 = vst [vmem:[#allocation46_spill] sm:$0xff] %v4307_v18  ;;  %v4309_v16 = vpop.eup %2491  ;;  %2517 = vpow2.f32 %v1329_v42  ;;  %v1381_v42 = vadd.f32 %v4231_v15, %v4227_v40 }
 0x3bb   : > { %5744 = vst [vmem:[#allocation43_spill] sm:$0xff] %v4309_v16  ;;  %v4311_v58 = vpop.eup %2493  ;;  %2519 = vpow2.f32 %v1347_v45  ;;  %v1379_v45 = vadd.f32 %v4223_v28, %v4219_v19 }
 0x3bc   : > { %5745 = vst [vmem:[#allocation42_spill] sm:$0xff] %v4311_v58  ;;  %v4313_v25 = vpop.eup %2495  ;;  %2521 = vpow2.f32 %v1353_v51  ;;  %v1385_v51 = vadd.f32 %v4263_v53, %v4259_v49  ;;  %v4351_v57 = vpop.permute.xlu0 %1645 }
 0x3bd   : > { %5746 = vst [vmem:[#allocation29_spill] sm:$0xff] %v4313_v25  ;;  %v4315_v14 = vpop.eup %2497  ;;  %2523 = vpow2.f32 %v1359_v48  ;;  %v1387_v48 = vadd.f32 %v4273_v17, %v4267_v38  ;;  %5757 = vst [vmem:[#allocation33_spill] sm:$0xff] %v4351_v57  ;;  %v1403_v41 = vadd.f32 %v1381_v42, %v1379_v45  ;;  %v1397_v57 = vadd.f32 %v4197_v29, %v4193_v55 }
 0x3be   : > { %5747 = vst [vmem:[#allocation26_spill] sm:$0xff] %v4315_v14  ;;  %v4319_v33 = vpop.eup %2499  ;;  %2525 = vpow2.f32 %v1365_v23  ;;  %v1389_v23 = vadd.f32 %v4283_v0, %v4279_v13  ;;  %v1405_v17 = vadd.f32 %v1385_v51, %v1383_v5  ;;  %v1399_v45 = vadd.f32 %v4205_v54, %v4201_v7 }
 0x3bf   : > { %5749 = vst [vmem:[#allocation15_spill] sm:$0xff] %v4319_v33  ;;  %v4323_v47 = vpop.eup %2501  ;;  %2527 = vpow2.f32 %v1371_v56  ;;  %v1391_v56 = vadd.f32 %v4291_v21, %v4287_v8  ;;  %v1401_v42 = vadd.f32 %v4213_v11, %v4209_v35  ;;  %v1384_v29 = vadd.f32 %v4319_v33, %v4315_v14 }
 0x3c0   : > { %5751 = vst [vmem:[#allocation38_spill] sm:$0xff] %v4323_v47  ;;  %v4327_v10 = vpop.eup %2503  ;;  %2529 = vpow2.f32 %v1377_v27  ;;  %v1393_v27 = vadd.f32 %v4301_v20, %v4295_v50  ;;  %v1407_v13 = vadd.f32 %v1389_v23, %v1387_v48  ;;  %v1415_v51 = vadd.f32 %v1405_v17, %v1403_v41  ;;  %v1665_v55 = vpop.permute.xlu0 %1664 }
 0x3c1   : > { %5752 = vst [vmem:[#allocation37_spill] sm:$0xff] %v4327_v10  ;;  %v4335_v36 = vpop.eup %2505  ;;  %v1380_v48 = vadd.f32 %v4309_v16, %v4307_v18  ;;  %v1413_v18 = vadd.f32 %v1401_v42, %v1399_v45 }
 0x3c2   : > { %5753 = vst [vmem:[#allocation56_spill] sm:$0xff] %v4335_v36  ;;  %v4345_v60 = vpop.eup %2507  ;;  %v1409_v53 = vadd.f32 %v1393_v27, %v1391_v56  ;;  %v1382_v27 = vadd.f32 %v4313_v25, %v4311_v58  ;;  %v1388_v41 = vadd.f32 %v4335_v36, %v4245_v59 }
 0x3c3   : > { %5754 = vst [vmem:[#allocation61_spill] sm:$0xff] %v4345_v60  ;;  %v4349_v61 = vpop.eup %2509 }
 0x3c4   : > { %5756 = vst [vmem:[#allocation40_spill] sm:$0xff] %v4349_v61  ;;  %v4353_v26 = vpop.eup %2511  ;;  %v1417_v56 = vadd.f32 %v1409_v53, %v1407_v13  ;;  %v1390_v17 = vadd.f32 %v4349_v61, %v4345_v60  ;;  %v1404_v60 = vadd.f32 %v1382_v27, %v1380_v48 }
 0x3c5   : > { %v4355_v38 = vpop.eup %2513 }
 0x3c6   : > { %v4357_v21 = vpop.eup %2515  ;;  %v1392_v53 = vadd.f32 %v4355_v38, %v4353_v26  ;;  %v1421_v36 = vadd.f32 %v1417_v56, %v1415_v51 }
 0x3c7   : > { %5758 = vst [vmem:[#allocation28_spill] sm:$0xff] %v4357_v21  ;;  %v4361_v20 = vpop.eup %2517 }
 0x3c8   : > { %v4371_v5 = vpop.eup %2519  ;;  %v1394_v13 = vadd.f32 %v4361_v20, %v4357_v21  ;;  %v4401_v59 = vpop.permute.xlu0 %1689 }
 0x3c9   : > { %v4347_v30 = vpop.permute.xlu1 %1686  ;;  %v4375_v23 = vpop.eup %2521 }
 0x3ca   : > { %5755 = vst [vmem:[#allocation58_spill] sm:$0xff] %v4347_v30  ;;  %v1395_v30 = vadd.f32 %v4187_v46, %v4183_v1  ;;  %v4383_v11 = vpop.eup %2523  ;;  %v1410_v54 = vadd.f32 %v1394_v13, %v1392_v53 }
 0x3cb   : > { %v4395_v33 = vpop.eup %2525 }
 0x3cc   : > { %v1411_v16 = vadd.f32 %v1397_v57, %v1395_v30  ;;  %v4397_v14 = vpop.eup %2527  ;;  %v1398_v57 = vadd.f32 %v4375_v23, %v4371_v5  ;;  %v1400_v30 = vadd.f32 %v4395_v33, %v4383_v11  ;;  %v4415_v48 = vpop.permute.xlu0 %1692 }
 0x3cd   : > { %v4359_v8 = vpop.permute.xlu1 %1712  ;;  %v4399_v25 = vpop.eup %2529 }
 0x3ce   : > { %5759 = vst [vmem:[#allocation23_spill] sm:$0xff] %v4359_v8  ;;  %v1386_v8 = vadd.f32 %v4327_v10, %v4323_v47  ;;  %v1408_v47 = vadd.f32 %v1390_v17, %v1388_v41  ;;  %v1419_v21 = vadd.f32 %v1413_v18, %v1411_v16  ;;  %v1402_v45 = vadd.f32 %v4399_v25, %v4397_v14 }
 0x3d0   : > { %v1406_v61 = vadd.f32 %v1386_v8, %v1384_v29  ;;  %v1423_v42 = vadd.f32 %v1421_v36, %v1419_v21  ;;  %v1418_v29 = vadd.f32 %v1410_v54, %v1408_v47  ;;  %v1414_v16 = vadd.f32 %v1402_v45, %v1400_v30  ;;  %v4419_v17 = vpop.permute.xlu0 %1698  ;;  %v2537_v36 = vld [vmem:[%s2765_s7] sm:$0xff]  ;;  %s2542_s7 = sshll.u32 %s2609_s2, 4  ;;  %s2543_s7 = int_to_ptr.vmem [resolvable:$false] %s2542_s7 }
 0x3d1   : > { %v4393_v58 = vpop.permute.xlu1 %1756  ;;  %v1671_v47 = vsel %vm414_vm8, %v4135_v43, %v4247_v4  ;;  %v5763_v30 = vld [vmem:[#allocation20_spill] sm:$0xff]  ;;  %p2545_p0 = scmp.lt.s32.totalorder %s2290_s28, %s2543_s7 }
 0x3d2   : > { %5760 = vst [vmem:[#allocation39_spill] sm:$0xff] %v4393_v58  ;;  %v1396_v58 = vadd.f32 %v4255_v52, %v4251_v37  ;;  %v1416_v51 = vadd.f32 %v1406_v61, %v1404_v60  ;;  %2531 = vrcp.f32 %v1423_v42  ;;  %v1662_v60 = vsel %vm414_vm8, %v4111_v63, %v4305_v24 }
 0x3d3   : > { %v1595_v45 = vsel %vm331_vm6, %v5763_v30, %v4191_v9  ;;  %v1683_v24 = vsel %vm414_vm8, %v4321_v12, %v4153_v3 }
 0x3d4   : > { %v1412_v18 = vadd.f32 %v1398_v57, %v1396_v58  ;;  %v1422_v56 = vadd.f32 %v1418_v29, %v1416_v51  ;;  %v4425_v54 = vpop.permute.xlu0 %1720  ;;  %v4440_v57 = vsel %vm331_vm6, %v2537_v36, %v4052_v44  ;;  %v4450_v51 = vsel %vm331_vm6, %v5704_v2, %v4075_v31  ;;  %v5769_v31 = vld [vmem:[#allocation36_spill] sm:$0xff] }
 0x3d5   : > { %v4403_v10 = vpop.permute.xlu1 %1572  ;;  %5762 = vst [vmem:[#allocation6_spill] sm:$0xff] %v4440_v57  ;;  %5764 = vst [vmem:[#allocation13_spill] sm:$0xff] %v4450_v51 }
 0x3d6   : > { %v1420_v41 = vadd.f32 %v1414_v16, %v1412_v18 }
 0x3d8   : > { %v1424_v53 = vadd.f32 %v1422_v56, %v1420_v41  ;;  %v4445_v42 = vpop.permute.xlu0 %1742  ;;  %v4468_v56 = vsel %vm331_vm6, %v5705_v6, %v4275_v39  ;;  %v1663_v41 = vsel %vm356_vm7, %v1662_v60, %v5769_v31  ;;  %v1668_v39 = vsel %vm414_vm8, %v1665_v55, %v4135_v43  ;;  %v5773_v60 = vld [vmem:[#allocation35_spill] sm:$0xff] }
 0x3d9   : > { %v4413_v8 = vpop.permute.xlu1 %1582  ;;  %5768 = vst [vmem:[#allocation49_spill] sm:$0xff] %v4468_v56 }
 0x3da   : > { %2533 = vrcp.f32 %v1424_v53  ;;  %v5770_v53 = vld [vmem:[#allocation18_spill] sm:$0xff] }
 0x3db   : > { %v1672_v3 = vsel %vm356_vm7, %v1671_v47, %v5770_v53  ;;  %v1684_v47 = vsel %vm356_vm7, %v1683_v24, %v5773_v60  ;;  %v5777_v24 = vld [vmem:[#allocation19_spill] sm:$0xff] }
 0x3dd   : > { %v4417_v27 = vpop.permute.xlu1 %1590 }
 0x3df   : > { %v4429_v58 = vpop.eup %2531 }
 0x3e0   : > { %v4457_v29 = vmul.f32 %v4429_v58, %v4227_v40  ;;  %v4461_v18 = vmul.f32 %v4429_v58, %v4231_v15  ;;  %v1608_v40 = vsel %vm356_vm7, %v4243_v62, %v4247_v4  ;;  %v4479_v15 = vmul.f32 %v4429_v58, %v4223_v28 }
 0x3e1   : > { %v4421_v13 = vpop.permute.xlu1 %1598  ;;  %v4486_v51 = vmul.f32 %v4429_v58, %v4235_v32  ;;  %v1611_v28 = vsel %vm356_vm7, %v4247_v4, %v5770_v53  ;;  %v4499_v62 = vmul.f32 %v4429_v58, %v4295_v50  ;;  %v5776_v32 = vld [vmem:[#allocation21_spill] sm:$0xff] }
 0x3e2   : > { %5765 = vst [vmem:[#allocation16_spill] sm:$0xff] %v4457_v29  ;;  %5766 = vst [vmem:[#allocation50_spill] sm:$0xff] %v4461_v18  ;;  %v1781_v36 = vmul.f32 %v1595_v45, %v4457_v29  ;;  %v4503_v55 = vmul.f32 %v4440_v57, %v4479_v15  ;;  %v1783_v45 = vmul.f32 %v5776_v32, %v4461_v18  ;;  %v4524_v57 = vpop.permute.xlu0 %1764 }
 0x3e3   : > { %5771 = vst [vmem:[#allocation32_spill] sm:$0xff] %v4479_v15  ;;  %5772 = vst [vmem:[#allocation53_spill] sm:$0xff] %v4486_v51  ;;  %v4512_v29 = vmul.f32 %v4429_v58, %v4219_v19  ;;  %v4522_v15 = vmul.f32 %v1668_v39, %v4499_v62  ;;  %v4528_v18 = vmul.f32 %v4429_v58, %v4239_v22 }
 0x3e4   : > { %5775 = vst [vmem:[#allocation55_spill] sm:$0xff] %v4499_v62  ;;  %5779 = vst [vmem:[#allocation36_spill] sm:$0xff] %v4524_v57  ;;  %v4532_v19 = vmul.f32 %v4429_v58, %v4283_v0  ;;  %v4538_v12 = vmul.f32 %v5763_v30, %v4486_v51  ;;  %v5782_v62 = vld [vmem:[#allocation27_spill] sm:$0xff]  ;;  %v4550_v22 = vmul.f32 %v4429_v58, %v4209_v35  ;;  %v5785_v0 = vld [vmem:[#allocation44_spill] sm:$0xff] }
 0x3e5   : > { %v4423_v61 = vpop.permute.xlu1 %1612  ;;  %5778 = vst [vmem:[#allocation20_spill] sm:$0xff] %v4522_v15  ;;  %v5791_v51 = vld [vmem:[#allocation47_spill] sm:$0xff] }
 0x3e6   : > { %5780 = vst [vmem:[#allocation18_spill] sm:$0xff] %v4532_v19  ;;  %5784 = vst [vmem:[#allocation21_spill] sm:$0xff] %v4550_v22  ;;  %v4570_v35 = vmul.f32 %v4429_v58, %v5791_v51  ;;  %v4592_v51 = vmul.f32 %v4429_v58, %v4187_v46  ;;  %v4611_v46 = vpop.permute.xlu0 %1745 }
 0x3e7   : > { %v4516_v56 = vpop.eup %2533 }
 0x3e8   : > { %5798 = vst [vmem:[#allocation66_spill] sm:$0xff] %v4592_v51  ;;  %v5806_v51 = vld [vmem:[#allocation30_spill] sm:$0xff] }
 0x3e9   : > { %v4427_v21 = vpop.permute.xlu1 %1623 }
 0x3ea   : > { %5761 = vst [vmem:[#allocation34_spill] sm:$0xff] %v4427_v21  ;;  %v4492_v21 = vmul.f32 %v4429_v58, %v4259_v49  ;;  %v1619_v49 = vsel %vm356_vm7, %v4271_v34, %v5777_v24 }
 0x3ec   : > { %5774 = vst [vmem:[#allocation64_spill] sm:$0xff] %v4492_v21  ;;  %v4519_v50 = vmul.f32 %v1608_v40, %v4492_v21  ;;  %v5781_v40 = vld [vmem:[#allocation31_spill] sm:$0xff]  ;;  %v4546_v21 = vmul.f32 %v4429_v58, %v5782_v62  ;;  %v4566_v62 = vmul.f32 %v4516_v56, %v4361_v20  ;;  %v4588_v20 = vmul.f32 %v5704_v2, %v4532_v19  ;;  %v5803_v2 = vld [vmem:[#allocation37_spill] sm:$0xff] }
 0x3ed   : > { %v4463_v16 = vpop.permute.xlu1 %1632  ;;  %v4542_v39 = vmul.f32 %v4429_v58, %v5781_v40  ;;  %v4562_v40 = vmul.f32 %v4429_v58, %v4201_v7  ;;  %v4584_v7 = vmul.f32 %v4516_v56, %v4353_v26  ;;  %v4609_v19 = vmul.f32 %v4516_v56, %v5803_v2 }
 0x3ee   : > { %5767 = vst [vmem:[#allocation51_spill] sm:$0xff] %v4463_v16  ;;  %v4534_v16 = vadd.f32 %v1783_v45, %v1781_v36  ;;  %5783 = vst [vmem:[#allocation35_spill] sm:$0xff] %v4546_v21  ;;  %v4554_v36 = vmul.f32 %v4429_v58, %v5785_v0  ;;  %v5787_v45 = vld [vmem:[#allocation41_spill] sm:$0xff]  ;;  %v1808_v57 = vmul.f32 %v1684_v47, %v4566_v62 }
 0x3ef   : > { %v4558_v30 = vmul.f32 %v4429_v58, %v5787_v45  ;;  %5789 = vst [vmem:[#allocation27_spill] sm:$0xff] %v4562_v40  ;;  %5790 = vst [vmem:[#allocation44_spill] sm:$0xff] %v4566_v62  ;;  %v5792_v0 = vld [vmem:[#allocation25_spill] sm:$0xff] }
 0x3f0   : > { %5786 = vst [vmem:[#allocation19_spill] sm:$0xff] %v4554_v36  ;;  %v4576_v21 = vmul.f32 %v4429_v58, %v5792_v0  ;;  %v5794_v45 = vld [vmem:[#allocation45_spill] sm:$0xff]  ;;  %5796 = vst [vmem:[#allocation25_spill] sm:$0xff] %v4584_v7  ;;  %v4596_v0 = vmul.f32 %v4429_v58, %v4183_v1  ;;  %v5801_v36 = vld [vmem:[#allocation28_spill] sm:$0xff] }
 0x3f1   : > { %v4514_v63 = vpop.permute.xlu1 %1643  ;;  %5788 = vst [vmem:[#allocation31_spill] sm:$0xff] %v4558_v30  ;;  %v4580_v15 = vmul.f32 %v4429_v58, %v5794_v45  ;;  %5797 = vst [vmem:[#allocation45_spill] sm:$0xff] %v4588_v20  ;;  %v4600_v45 = vmul.f32 %v4516_v56, %v4355_v38  ;;  %v4604_v26 = vmul.f32 %v4516_v56, %v5801_v36  ;;  %v5810_v20 = vld [vmem:[#allocation59_spill] sm:$0xff] }
 0x3f2   : > { %5793 = vst [vmem:[#allocation41_spill] sm:$0xff] %v4576_v21  ;;  %5799 = vst [vmem:[#allocation67_spill] sm:$0xff] %v4596_v0  ;;  %v4615_v1 = vmul.f32 %v5705_v6, %v4558_v30  ;;  %v4619_v38 = vmul.f32 %v4429_v58, %v5806_v51  ;;  %v5808_v0 = vld [vmem:[#allocation65_spill] sm:$0xff]  ;;  %v4627_v47 = vmul.f32 %v4429_v58, %v5810_v20  ;;  %v5812_v21 = vld [vmem:[#allocation38_spill] sm:$0xff] }
 0x3f3   : > { %5795 = vst [vmem:[#allocation47_spill] sm:$0xff] %v4580_v15  ;;  %5800 = vst [vmem:[#allocation68_spill] sm:$0xff] %v4600_v45  ;;  %v4623_v36 = vmul.f32 %v5808_v0, %v4562_v40  ;;  %v1804_v2 = vmul.f32 %v1663_v41, %v4600_v45  ;;  %v1806_v62 = vmul.f32 %v1672_v3, %v4604_v26  ;;  %v5818_v3 = vld [vmem:[#allocation48_spill] sm:$0xff] }
 0x3f4   : > { %5802 = vst [vmem:[#allocation28_spill] sm:$0xff] %v4604_v26  ;;  %5804 = vst [vmem:[#allocation37_spill] sm:$0xff] %v4609_v19  ;;  %v4633_v6 = vmul.f32 %v4516_v56, %v5812_v21  ;;  %v1792_v30 = vmul.f32 %v1619_v49, %v4609_v19  ;;  %v1802_v40 = vmul.f32 %v5773_v60, %v4584_v7  ;;  %v5820_v19 = vld [vmem:[#allocation29_spill] sm:$0xff]  ;;  %v5822_v60 = vld [vmem:[#allocation26_spill] sm:$0xff] }
 0x3f5   : > { %v4572_v22 = vpop.permute.xlu1 %1652  ;;  %5805 = vst [vmem:[#allocation69_spill] sm:$0xff] %v4615_v1  ;;  %5807 = vst [vmem:[#allocation30_spill] sm:$0xff] %v4619_v38  ;;  %v5815_v38 = vld [vmem:[#allocation23_spill] sm:$0xff]  ;;  %v4649_v26 = vmul.f32 %v4429_v58, %v5818_v3  ;;  %v1840_v21 = vadd.f32 %v1808_v57, %v1806_v62  ;;  %v4654_v45 = vmul.f32 %v4516_v56, %v5820_v19 }
 0x3f6   : > { %5809 = vst [vmem:[#allocation65_spill] sm:$0xff] %v4623_v36  ;;  %5811 = vst [vmem:[#allocation59_spill] sm:$0xff] %v4627_v47  ;;  %v5814_v36 = vld [vmem:[#allocation39_spill] sm:$0xff]  ;;  %v5816_v47 = vld [vmem:[#allocation52_spill] sm:$0xff]  ;;  %v1790_v49 = vmul.f32 %v1611_v28, %v4633_v6  ;;  %v4658_v7 = vmul.f32 %v4516_v56, %v5822_v60  ;;  %v1838_v62 = vadd.f32 %v1804_v2, %v1802_v40  ;;  %v4693_v40 = vpop.permute.xlu0 %1726 }
 0x3f7   : > { %5813 = vst [vmem:[#allocation38_spill] sm:$0xff] %v4633_v6  ;;  %v1759_v20 = vsel %vm459_vm11, %v5815_v38, %v5814_v36  ;;  %v4645_v41 = vmul.f32 %v4429_v58, %v5816_v47  ;;  %5819 = vst [vmem:[#allocation23_spill] sm:$0xff] %v4649_v26  ;;  %v4662_v36 = vmul.f32 %v4516_v56, %v4397_v14  ;;  %v5825_v47 = vld [vmem:[#allocation46_spill] sm:$0xff]  ;;  %v5826_v58 = vld [vmem:[#allocation43_spill] sm:$0xff] }
 0x3f8   : > { %5821 = vst [vmem:[#allocation52_spill] sm:$0xff] %v4654_v45  ;;  %5823 = vst [vmem:[#allocation48_spill] sm:$0xff] %v4658_v7  ;;  %v4666_v1 = vmul.f32 %v4516_v56, %v5825_v47  ;;  %v4670_v57 = vmul.f32 %v4516_v56, %v5826_v58  ;;  %v5827_v28 = vld [vmem:[#allocation57_spill] sm:$0xff]  ;;  %v4676_v3 = vadd.f32 %v1792_v30, %v1790_v49  ;;  %v5829_v14 = vld [vmem:[#allocation42_spill] sm:$0xff] }
 0x3f9   : > { %v4636_v51 = vpop.permute.xlu1 %1673  ;;  %5817 = vst [vmem:[#allocation39_spill] sm:$0xff] %v4645_v41  ;;  %5824 = vst [vmem:[#allocation29_spill] sm:$0xff] %v4662_v36  ;;  %v4674_v19 = vmul.f32 %v5827_v28, %v4645_v41  ;;  %v1760_v60 = vsel %vm513_vm12, %v1759_v20, %v4135_v43  ;;  %v4682_v6 = vmul.f32 %v4516_v56, %v5829_v14  ;;  %v5830_v26 = vld [vmem:[#allocation15_spill] sm:$0xff]  ;;  %v5832_v30 = vld [vmem:[#allocation24_spill] sm:$0xff] }
 0x3fa   : > { %v1579_v58 = vsel %vm331_vm6, %v5776_v32, %v4403_v10  ;;  %v4691_v41 = vmul.f32 %v4516_v56, %v5830_v26  ;;  %5831 = vst [vmem:[#allocation46_spill] sm:$0xff] %v4693_v40  ;;  %v4697_v2 = vmul.f32 %v4516_v56, %v5832_v30  ;;  %v4701_v43 = vmul.f32 %v4516_v56, %v4255_v52  ;;  %v5833_v49 = vld [vmem:[#allocation22_spill] sm:$0xff]  ;;  %v5834_v26 = vld [vmem:[#allocation56_spill] sm:$0xff] }
 0x3fb   : > { %5828 = vst [vmem:[#allocation26_spill] sm:$0xff] %v4674_v19  ;;  %v4703_v20 = vadd.f32 %v1840_v21, %v1838_v62  ;;  %v1784_v14 = vmul.f32 %v5833_v49, %v4654_v45  ;;  %v1786_v32 = vmul.f32 %v5777_v24, %v4658_v7  ;;  %v4711_v19 = vmul.f32 %v4516_v56, %v5834_v26  ;;  %v5835_v40 = vld [vmem:[#allocation40_spill] sm:$0xff]  ;;  %v5837_v7 = vld [vmem:[#allocation61_spill] sm:$0xff] }
 0x3fc   : > { %v1761_v30 = vsel %vm414_vm8, %v1760_v60, %v4247_v4  ;;  %v1592_v52 = vsel %vm331_vm6, %v4191_v9, %v4417_v27  ;;  %v4720_v21 = vmul.f32 %v4516_v56, %v5835_v40  ;;  %v4724_v62 = vmul.f32 %v4516_v56, %v4383_v11  ;;  %v5839_v27 = vld [vmem:[#allocation58_spill] sm:$0xff]  ;;  %v1771_v40 = vpop.permute.xlu0 %1770 }
 0x3fd   : > { %v4684_v47 = vpop.permute.xlu1 %1707  ;;  %v1777_v24 = vmul.f32 %v1579_v58, %v4512_v29  ;;  %v4729_v26 = vmul.f32 %v4516_v56, %v5837_v7  ;;  %v4735_v4 = vmul.f32 %v4516_v56, %v4251_v37  ;;  %v4739_v9 = vmul.f32 %v4516_v56, %v4399_v25 }
 0x3fe   : > { %5836 = vst [vmem:[#allocation43_spill] sm:$0xff] %v4724_v62  ;;  %v1703_v11 = vsel %vm331_vm6, %v5827_v28, %v5839_v27  ;;  %v1584_v60 = vsel %vm331_vm6, %v4052_v44, %v4413_v8  ;;  %v4749_v7 = vmul.f32 %v4516_v56, %v4395_v33  ;;  %v4753_v37 = vmul.f32 %v4516_v56, %v4375_v23  ;;  %v5841_v8 = vld [vmem:[#allocation60_spill] sm:$0xff] }
 0x3ff   : > { %5838 = vst [vmem:[#allocation57_spill] sm:$0xff] %v4729_v26  ;;  %v1762_v25 = vsel %vm356_vm7, %v1761_v30, %v5770_v53  ;;  %v1782_v58 = vmul.f32 %v1592_v52, %v4682_v6  ;;  %v1603_v28 = vsel %vm356_vm7, %v4421_v13, %v5833_v49  ;;  %v4763_v44 = vmul.f32 %v4516_v56, %v4371_v5  ;;  %v5842_v30 = vld [vmem:[#allocation62_spill] sm:$0xff] }
 0x400   : > { %5840 = vst [vmem:[#allocation42_spill] sm:$0xff] %v4753_v37  ;;  %v1576_v33 = vsel %vm331_vm6, %v4403_v10, %v5841_v8  ;;  %v1616_v23 = vsel %vm356_vm7, %v4423_v61, %v4271_v34  ;;  %v1800_v53 = vmul.f32 %v5769_v31, %v4720_v21  ;;  %v4775_v52 = vmul.f32 %v5842_v30, %v4724_v62  ;;  %v5843_v10 = vld [vmem:[#allocation7_spill] sm:$0xff] }
 0x401   : > { %v4731_v45 = vpop.permute.xlu1 %1696  ;;  %v1704_v5 = vsel %vm384_vm9, %v1703_v11, %v4401_v59  ;;  %v1825_v56 = vadd.f32 %v4503_v55, %v1777_v24  ;;  %v1780_v49 = vmul.f32 %v1584_v60, %v4670_v57  ;;  %v1600_v27 = vsel %vm356_vm7, %v5843_v10, %v4421_v13  ;;  %v5844_v59 = vld [vmem:[#allocation54_spill] sm:$0xff]  ;;  %v5845_v13 = vld [vmem:[#allocation33_spill] sm:$0xff] }
 0x402   : > { %v1705_v61 = vsel %vm465_vm10, %v1704_v5, %v4415_v48  ;;  %v4789_v31 = vmul.f32 %v1762_v25, %v4662_v36  ;;  %v1788_v8 = vmul.f32 %v1603_v28, %v4691_v41  ;;  %v4794_v11 = vmul.f32 %v5844_v59, %v4753_v37  ;;  %v5846_v5 = vld [vmem:[#allocation12_spill] sm:$0xff]  ;;  %v5848_v36 = vld [vmem:[#allocation51_spill] sm:$0xff] }
 0x403   : > { %v1778_v55 = vmul.f32 %v1576_v33, %v4666_v1  ;;  %v1828_v24 = vadd.f32 %v1784_v14, %v1782_v58  ;;  %v1791_v60 = vmul.f32 %v1616_v23, %v4542_v39  ;;  %v1647_v10 = vsel %vm384_vm9, %v4514_v63, %v5845_v13  ;;  %v5847_v13 = vld [vmem:[#allocation17_spill] sm:$0xff] }
 0x404   : > { %v1737_v48 = vsel %vm331_vm6, %v5808_v0, %v4425_v54  ;;  %v1751_v25 = vsel %vm459_vm11, %v4419_v17, %v4445_v42  ;;  %v1787_v28 = vmul.f32 %v1600_v27, %v4528_v18  ;;  %v1677_v14 = vsel %vm414_vm8, %v4636_v51, %v5846_v5  ;;  %v1711_v42 = vpop.permute.xlu0 %1710  ;;  %v5849_v27 = vld [vmem:[#allocation49_spill] sm:$0xff]  ;;  %v5850_v5 = vld [vmem:[#allocation63_spill] sm:$0xff] }
 0x405   : > { %v4784_v34 = vpop.permute.xlu1 %1732  ;;  %v4812_v58 = vadd.f32 %v4534_v16, %v1825_v56  ;;  %v1826_v33 = vadd.f32 %v1780_v49, %v1778_v55  ;;  %v1752_v23 = vsel %vm513_vm12, %v1751_v25, %v4611_v46  ;;  %v1636_v54 = vsel %vm384_vm9, %v5848_v36, %v5847_v13  ;;  %v5851_v49 = vld [vmem:[#allocation14_spill] sm:$0xff] }
 0x406   : > { %v1830_v37 = vadd.f32 %v1788_v8, %v1786_v32  ;;  %v1651_v62 = vsel %vm384_vm9, %v5849_v27, %v4514_v63  ;;  %v1798_v51 = vmul.f32 %v1647_v10, %v4729_v26  ;;  %v1656_v16 = vsel %vm414_vm8, %v4572_v22, %v5850_v5  ;;  %v5852_v55 = vld [vmem:[#allocation34_spill] sm:$0xff]  ;;  %v5853_v63 = vld [vmem:[#allocation13_spill] sm:$0xff] }
 0x407   : > { %v4826_v56 = vadd.f32 %v1828_v24, %v1826_v33  ;;  %v1831_v46 = vadd.f32 %v1791_v60, %v4519_v50  ;;  %v1627_v25 = vsel %vm384_vm9, %v5852_v55, %v5851_v49  ;;  %v1807_v32 = vmul.f32 %v1677_v14, %v4580_v15  ;;  %v5854_v13 = vld [vmem:[#allocation6_spill] sm:$0xff]  ;;  %v5855_v33 = vld [vmem:[#allocation41_spill] sm:$0xff]  ;;  %v5856_v14 = vld [vmem:[#allocation36_spill] sm:$0xff] }
 0x408   : > { %v1829_v8 = vadd.f32 %v1787_v28, %v4538_v12  ;;  %v1631_v10 = vsel %vm384_vm9, %v5853_v63, %v5852_v55  ;;  %v1639_v22 = vsel %vm384_vm9, %v5854_v13, %v5848_v36  ;;  %v1796_v24 = vmul.f32 %v1636_v54, %v4711_v19  ;;  %v5857_v63 = vld [vmem:[#allocation19_spill] sm:$0xff] }
 0x409   : > { %v1724_v0 = vpop.permute.xlu1 %1723  ;;  %v1714_v50 = vsel %vm459_vm11, %v1711_v42, %v5815_v38  ;;  %v1797_v60 = vmul.f32 %v1651_v62, %v4570_v35  ;;  %v1803_v27 = vmul.f32 %v1656_v16, %v5855_v33  ;;  %v1773_v12 = vsel %vm459_vm11, %v4784_v34, %v5856_v14  ;;  %v5858_v38 = vld [vmem:[#allocation20_spill] sm:$0xff]  ;;  %v5859_v16 = vld [vmem:[#allocation35_spill] sm:$0xff] }
 0x40a   : > { %v1852_v5 = vadd.f32 %v4676_v3, %v1830_v37  ;;  %v1794_v49 = vmul.f32 %v1627_v25, %v4697_v2  ;;  %v1836_v55 = vadd.f32 %v1800_v53, %v1798_v51  ;;  %v1851_v54 = vadd.f32 %v1831_v46, %v1829_v8  ;;  %v5860_v37 = vld [vmem:[#allocation45_spill] sm:$0xff] }
 0x40b   : > { %v1795_v13 = vmul.f32 %v1639_v22, %v5857_v63  ;;  %v1839_v15 = vadd.f32 %v1807_v32, %v5858_v38  ;;  %v1793_v33 = vmul.f32 %v1631_v10, %v5859_v16  ;;  %v1812_v26 = vmul.f32 %v1714_v50, %v4701_v43  ;;  %v5861_v53 = vld [vmem:[#allocation69_spill] sm:$0xff] }
 0x40c   : > { %v1834_v14 = vadd.f32 %v1796_v24, %v1794_v49  ;;  %v1717_v3 = vsel %vm465_vm10, %v1639_v22, %v4684_v47  ;;  %v1835_v25 = vadd.f32 %v5860_v37, %v1797_v60  ;;  %v1837_v51 = vadd.f32 %v1803_v27, %v5861_v53 }
 0x40d   : > { %v1768_v28 = vpop.permute.xlu1 %1767  ;;  %v1700_v46 = vsel %vm459_vm11, %v4731_v45, %v4419_v17  ;;  %v1706_v32 = vsel %vm459_vm11, %v1705_v61, %v4731_v45  ;;  %v1738_v10 = vsel %vm384_vm9, %v1737_v48, %v1724_v0  ;;  %v1833_v22 = vadd.f32 %v1795_v13, %v1793_v33  ;;  %v5862_v17 = vld [vmem:[#allocation67_spill] sm:$0xff]  ;;  %v5863_v61 = vld [vmem:[#allocation30_spill] sm:$0xff]  ;;  %v5864_v0 = vld [vmem:[#allocation21_spill] sm:$0xff] }
 0x40e   : > { %v1774_v36 = vsel %vm513_vm12, %v1773_v12, %v1768_v28  ;;  %v1854_v8 = vadd.f32 %v1836_v55, %v1834_v14  ;;  %v1855_v60 = vadd.f32 %v1839_v15, %v1837_v51  ;;  %v1718_v27 = vsel %vm459_vm11, %v1717_v3, %v1711_v42  ;;  %v5865_v33 = vld [vmem:[#allocation46_spill] sm:$0xff] }
 0x40f   : > { %v1775_v62 = vsel %vm414_vm8, %v1774_v36, %v1771_v40  ;;  %v1809_v28 = vmul.f32 %v1706_v32, %v5862_v17  ;;  %v1810_v45 = vmul.f32 %v1700_v46, %v4735_v4  ;;  %v1819_v49 = vmul.f32 %v1700_v46, %v5863_v61 }
 0x410   : > { %v1776_v24 = vsel %vm356_vm7, %v1775_v62, %v5842_v30  ;;  %v1821_v55 = vmul.f32 %v1714_v50, %v5864_v0  ;;  %v1853_v30 = vadd.f32 %v1835_v25, %v1833_v22  ;;  %v1739_v15 = vsel %vm465_vm10, %v1738_v10, %v5865_v33  ;;  %v5867_v50 = vld [vmem:[#allocation59_spill] sm:$0xff]  ;;  %v5870_v10 = vld [vmem:[#allocation26_spill] sm:$0xff] }
 0x411   : > { %v1749_v40 = vpop.permute.xlu1 %1748  ;;  %v1864_v36 = vadd.f32 %v4703_v20, %v1854_v8  ;;  %v5868_v25 = vld [vmem:[#allocation23_spill] sm:$0xff]  ;;  %v1842_v32 = vadd.f32 %v1812_v26, %v1810_v45  ;;  %v5869_v20 = vld [vmem:[#allocation65_spill] sm:$0xff]  ;;  %v1861_v22 = vadd.f32 %v1851_v54, %v4812_v58 }
 0x412   : > { %v1753_v47 = vsel %vm414_vm8, %v1752_v23, %v1749_v40  ;;  %v1824_v23 = vmul.f32 %v1776_v24, %v4739_v9  ;;  %v1863_v51 = vadd.f32 %v1855_v60, %v1853_v30  ;;  %v1845_v40 = vadd.f32 %v1819_v49, %v5869_v20 }
 0x413   : > { %v1754_v12 = vsel %vm356_vm7, %v1753_v47, %v5844_v59  ;;  %v5866_v59 = vld [vmem:[#allocation66_spill] sm:$0xff]  ;;  %v4895_v49 = vstv %s1475_s20 }
 0x414   : > { %v1820_v48 = vmul.f32 %v1754_v12, %v4749_v7  ;;  %v1811_v13 = vmul.f32 %v1718_v27, %v5866_v59  ;;  %v1848_v8 = vadd.f32 %v1824_v23, %v4789_v31 }
 0x415   : > { %v1731_v42 = vpop.permute.xlu1 %1730 }
 0x416   : > { %v1734_v38 = vsel %vm459_vm11, %v1731_v42, %v4784_v34  ;;  %v1740_v62 = vsel %vm459_vm11, %v1739_v15, %v1731_v42  ;;  %v1846_v14 = vadd.f32 %v1820_v48, %v4775_v52  ;;  %v1841_v46 = vadd.f32 %v1811_v13, %v1809_v28 }
 0x417   : > { %v1813_v3 = vmul.f32 %v1740_v62, %v5867_v50  ;;  %v1814_v37 = vmul.f32 %v1734_v38, %v4763_v44  ;;  %v1823_v53 = vmul.f32 %v1734_v38, %v5868_v25  ;;  %v1862_v52 = vadd.f32 %v1852_v5, %v4826_v56 }
 0x418   : > { %v1860_v27 = vadd.f32 %v1848_v8, %v1846_v14  ;;  %v1867_v28 = vadd.f32 %v1863_v51, %v1861_v22 }
 0x419   : > { %v1843_v24 = vadd.f32 %v5870_v10, %v1813_v3  ;;  %v1844_v34 = vadd.f32 %v4794_v11, %v1814_v37  ;;  %v1847_v47 = vadd.f32 %v1823_v53, %v1821_v55  ;;  %v1868_v60 = vadd.f32 %v1864_v36, %v1862_v52 }
 0x41b   : > { %v1857_v12 = vadd.f32 %v1843_v24, %v1841_v46  ;;  %v1858_v48 = vadd.f32 %v1844_v34, %v1842_v32  ;;  %v1859_v33 = vadd.f32 %v1847_v47, %v1845_v40 }
 0x41d   : > { %v1865_v26 = vadd.f32 %v1859_v33, %v1857_v12  ;;  %v1866_v45 = vadd.f32 %v1860_v27, %v1858_v48 }
 0x41f   : > { %v1869_v31 = vadd.f32 %v1867_v28, %v1865_v26  ;;  %v1870_v30 = vadd.f32 %v1868_v60, %v1866_v45 }
 0x421   : > { %v4898_v23 = vmul.f32 %v4895_v49, %v1869_v31  ;;  %v4901_v11 = vmul.f32 %v4895_v49, %v1870_v30 }
 0x423   : > { %1878 = vrot.lane.b32.xlu1 %v4901_v11, %s2600_s30  ;;  %1876 = vrot.lane.b32.xlu0 %v4898_v23, %s2600_s30 }
 0x427   : > { %1924 = vrot.lane.b32.xlu1 %v4901_v11, %s2601_s4  ;;  %1922 = vrot.lane.b32.xlu0 %v4898_v23, %s2601_s4 }
 0x495   : > { %v1879_v58 = vpop.permute.xlu1 %1878  ;;  %v1877_v56 = vpop.permute.xlu0 %1876 }
 0x496   : > { %v1883_v5 = vsel %vm228_vm1, %v1879_v58, %v4901_v11  ;;  %v1880_v54 = vsel %vm228_vm1, %v1877_v56, %v1879_v58 }
 0x497   : > { %v4917_v15 = vsel %vm2712_vm3, %v4901_v11, %v1883_v5  ;;  %v4922_v36 = vsel %vm2708_vm2, %v4898_v23, %v1880_v54 }
 0x498   : > { %1890 = vrot.lane.b32.xlu1 %v4917_v15, %s2600_s30  ;;  %1888 = vrot.lane.b32.xlu0 %v4922_v36, %s2600_s30 }
 0x499   : > { %v1925_v13 = vpop.permute.xlu1 %1924  ;;  %v1923_v38 = vpop.permute.xlu0 %1922 }
 0x49a   : > { %v1926_v62 = vsel %vm280_vm0, %v1923_v38, %v1925_v13  ;;  %v1929_v14 = vsel %vm280_vm0, %v4898_v23, %v1923_v38 }
 0x49b   : > { %v4934_v37 = vsel %vm2716_vm4, %v4898_v23, %v1929_v14  ;;  %v4939_v51 = vsel %vm2720_vm5, %v4901_v11, %v1926_v62 }
 0x49c   : > { %1934 = vrot.lane.b32.xlu0 %v4934_v37, %s2601_s4  ;;  %1936 = vrot.lane.b32.xlu1 %v4939_v51, %s2601_s4 }
 0x50a   : > { %v1891_v46 = vpop.permute.xlu1 %1890  ;;  %v1889_v32 = vpop.permute.xlu0 %1888 }
 0x50b   : > { %v1895_v20 = vsel %vm228_vm1, %v1891_v46, %v4917_v15  ;;  %v1892_v40 = vsel %vm228_vm1, %v1889_v32, %v1891_v46 }
 0x50c   : > { %v4951_v8 = vsel %vm2712_vm3, %v4901_v11, %v1895_v20  ;;  %v4956_v10 = vsel %vm2708_vm2, %v4898_v23, %v1892_v40 }
 0x50d   : > { %1902 = vrot.lane.b32.xlu1 %v4951_v8, %s2600_s30  ;;  %1900 = vrot.lane.b32.xlu0 %v4956_v10, %s2600_s30 }
 0x50e   : > { %v1937_v24 = vpop.permute.xlu1 %1936  ;;  %v1935_v34 = vpop.permute.xlu0 %1934 }
 0x50f   : > { %v1938_v47 = vsel %vm280_vm0, %v1935_v34, %v1937_v24  ;;  %v1941_v52 = vsel %vm280_vm0, %v4934_v37, %v1935_v34  ;;  %v5875_v34 = vld [vmem:[#allocation32_spill] sm:$0xff] }
 0x510   : > { %v4968_v22 = vsel %vm2716_vm4, %v4898_v23, %v1941_v52  ;;  %v4973_v27 = vsel %vm2720_vm5, %v4901_v11, %v1938_v47 }
 0x511   : > { %1946 = vrot.lane.b32.xlu0 %v4968_v22, %s2601_s4  ;;  %1948 = vrot.lane.b32.xlu1 %v4973_v27, %s2601_s4 }
 0x515   : > { %1968 = vrot.lane.b32.xlu0 %v4934_v37, %s2602_s8  ;;  %1970 = vrot.lane.b32.xlu1 %v4939_v51, %s2602_s8 }
 0x519   : > { %1976 = vrot.lane.b32.xlu0 %v4898_v23, %s2602_s8  ;;  %1978 = vrot.lane.b32.xlu1 %v4901_v11, %s2602_s8 }
 0x51d   : > { %1984 = vrot.lane.b32.xlu0 %v4922_v36, %s2602_s8  ;;  %1986 = vrot.lane.b32.xlu1 %v4917_v15, %s2602_s8 }
 0x521   : > { %1992 = vrot.lane.b32.xlu0 %v4934_v37, %s2603_s9  ;;  %1994 = vrot.lane.b32.xlu1 %v4939_v51, %s2603_s9 }
 0x525   : > { %2000 = vrot.lane.b32.xlu0 %v4898_v23, %s2603_s9  ;;  %2002 = vrot.lane.b32.xlu1 %v4901_v11, %s2603_s9 }
 0x529   : > { %2062 = vrot.lane.b32.xlu0 %v4901_v11, %s2605_s11  ;;  %2036 = vrot.lane.b32.xlu1 %v4956_v10, %s2602_s8 }
 0x52d   : > { %2016 = vrot.lane.b32.xlu0 %v4968_v22, %s2602_s8  ;;  %2055 = vrot.lane.b32.xlu1 %v4973_v27, %s2603_s9 }
 0x531   : > { %2050 = vrot.lane.b32.xlu0 %v4973_v27, %s2605_s11  ;;  %2071 = vrot.lane.b32.xlu1 %v4951_v8, %s2605_s11 }
 0x57f   : > { %v1903_v12 = vpop.permute.xlu1 %1902  ;;  %v1901_v48 = vpop.permute.xlu0 %1900 }
 0x580   : > { %v1907_v33 = vsel %vm228_vm1, %v1903_v12, %v4951_v8  ;;  %v1904_v60 = vsel %vm228_vm1, %v1901_v48, %v1903_v12 }
 0x581   : > { %v5017_v28 = vsel %vm2712_vm3, %v4901_v11, %v1907_v33  ;;  %v1908_v26 = vsel %vm2708_vm2, %v4898_v23, %v1904_v60 }
 0x582   : > { %1914 = vrot.lane.b32.xlu1 %v5017_v28, %s2600_s30  ;;  %1912 = vrot.lane.b32.xlu0 %v1908_v26, %s2600_s30 }
 0x583   : > { %v1949_v45 = vpop.permute.xlu1 %1948  ;;  %v1947_v31 = vpop.permute.xlu0 %1946 }
 0x584   : > { %v1950_v30 = vsel %vm280_vm0, %v1947_v31, %v1949_v45  ;;  %v1953_v58 = vsel %vm280_vm0, %v4968_v22, %v1947_v31  ;;  %v5877_v31 = vld [vmem:[#allocation52_spill] sm:$0xff] }
 0x585   : > { %v5031_v56 = vsel %vm2716_vm4, %v4898_v23, %v1953_v58  ;;  %v1955_v5 = vsel %vm2720_vm5, %v4901_v11, %v1950_v30  ;;  %v5878_v30 = vld [vmem:[#allocation16_spill] sm:$0xff] }
 0x586   : > { %1958 = vrot.lane.b32.xlu0 %v5031_v56, %s2601_s4  ;;  %1960 = vrot.lane.b32.xlu1 %v1955_v5, %s2601_s4  ;;  %s2287_s4 = scalar_lea.hbm %s5353_s3, %s2376_s26 }
 0x587   : > { %v1971_v54 = vpop.permute.xlu1 %1970  ;;  %v1969_v13 = vpop.permute.xlu0 %1968 }
 0x588   : > { %v1972_v38 = vsel %vm331_vm6, %v1969_v13, %v1971_v54  ;;  %v1975_v62 = vsel %vm331_vm6, %v4934_v37, %v1969_v13 }
 0x589   : > { %v2173_v40 = vmul.f32 %v1975_v62, %v4512_v29  ;;  %v2174_v24 = vmul.f32 %v1972_v38, %v4666_v1  ;;  %v5876_v1 = vld [vmem:[#allocation50_spill] sm:$0xff] }
 0x58a   : > { %2076 = vrot.lane.b32.xlu0 %v4951_v8, %s2603_s9  ;;  %2108 = vrot.lane.b32.xlu1 %v4901_v11, %s2604_s10  ;;  %v2179_v45 = vmul.f32 %v4934_v37, %v5876_v1 }
 0x58b   : > { %v1979_v14 = vpop.permute.xlu1 %1978  ;;  %v1977_v46 = vpop.permute.xlu0 %1976 }
 0x58c   : > { %v1980_v32 = vsel %vm331_vm6, %v1977_v46, %v1979_v14  ;;  %v5049_v20 = vsel %vm331_vm6, %v4898_v23, %v1977_v46 }
 0x58d   : > { %v2175_v47 = vmul.f32 %v5049_v20, %v5875_v34  ;;  %v2176_v52 = vmul.f32 %v1980_v32, %v4670_v57  ;;  %v2180_v57 = vmul.f32 %v4939_v51, %v5877_v31 }
 0x58e   : > { %2010 = vrot.lane.b32.xlu0 %v4917_v15, %s2603_s9  ;;  %2152 = vrot.lane.b32.xlu1 %v4901_v11, %s2606_s12 }
 0x58f   : > { %v2221_v12 = vadd.f32 %v2175_v47, %v2173_v40  ;;  %v2222_v48 = vadd.f32 %v2176_v52, %v2174_v24  ;;  %v1987_v33 = vpop.permute.xlu1 %1986  ;;  %v1985_v60 = vpop.permute.xlu0 %1984 }
 0x590   : > { %v1988_v26 = vsel %vm331_vm6, %v1985_v60, %v1987_v33  ;;  %v1991_v29 = vsel %vm331_vm6, %v4922_v36, %v1985_v60 }
 0x591   : > { %v2177_v58 = vmul.f32 %v1991_v29, %v5878_v30  ;;  %v2178_v5 = vmul.f32 %v1988_v26, %v4682_v6 }
 0x592   : > { %2021 = vrot.lane.b32.xlu0 %v4973_v27, %s2607_s13  ;;  %2008 = vrot.lane.b32.xlu1 %v4922_v36, %s2603_s9 }
 0x593   : > { %v2223_v54 = vadd.f32 %v2179_v45, %v2177_v58  ;;  %v2224_v13 = vadd.f32 %v2180_v57, %v2178_v5  ;;  %v1995_v38 = vpop.permute.xlu1 %1994  ;;  %v1993_v62 = vpop.permute.xlu0 %1992 }
 0x594   : > { %v5074_v14 = vsel %vm356_vm7, %v1993_v62, %v1995_v38  ;;  %v1999_v53 = vsel %vm356_vm7, %v1995_v38, %v4939_v51  ;;  %v5879_v62 = vld [vmem:[#allocation68_spill] sm:$0xff] }
 0x595   : > { %v5076_v37 = vadd.f32 %v2223_v54, %v2221_v12  ;;  %v5078_v46 = vadd.f32 %v2224_v13, %v2222_v48  ;;  %v2184_v55 = vmul.f32 %v1999_v53, %v4691_v41  ;;  %v2183_v53 = vmul.f32 %v5074_v14, %v4528_v18 }
 0x596   : > { %2030 = vrot.lane.b32.xlu0 %v4901_v11, %s2607_s13  ;;  %2019 = vrot.lane.b32.xlu1 %v4968_v22, %s2607_s13 }
 0x597   : > { %v5098_v6 = vpop.permute.xlu1 %2002  ;;  %v2001_v32 = vpop.permute.xlu0 %2000 }
 0x598   : > { %v2007_v38 = vsel %vm356_vm7, %v5098_v6, %v4901_v11 }
 0x59a   : > { %2041 = vrot.lane.b32.xlu0 %v4951_v8, %s2607_s13  ;;  %2028 = vrot.lane.b32.xlu1 %v4898_v23, %s2607_s13 }
 0x59b   : > { %v5100_v40 = vpop.permute.xlu1 %2036  ;;  %v5102_v24 = vpop.permute.xlu0 %2062 }
 0x59c   : > { %v2067_v1 = vsel %vm414_vm8, %v5102_v24, %v5098_v6 }
 0x59d   : > { %v2068_v3 = vsel %vm356_vm7, %v2067_v1, %v4901_v11 }
 0x59e   : > { %2060 = vrot.lane.b32.xlu0 %v4898_v23, %s2605_s11  ;;  %2039 = vrot.lane.b32.xlu1 %v4956_v10, %s2607_s13 }
 0x59f   : > { %v2056_v34 = vpop.permute.xlu1 %2055  ;;  %v5104_v47 = vpop.permute.xlu0 %2016 }
 0x5a2   : > { %2048 = vrot.lane.b32.xlu1 %v4968_v22, %s2605_s11 }
 0x5a3   : > { %v5106_v52 = vpop.permute.xlu1 %2071  ;;  %v5108_v12 = vpop.permute.xlu0 %2050 }
 0x5a4   : > { %v2058_v60 = vsel %vm414_vm8, %v5108_v12, %v2056_v34 }
 0x5a5   : > { %v2059_v57 = vsel %vm356_vm7, %v2058_v60, %v4973_v27 }
 0x5a6   : > { %2069 = vrot.lane.b32.xlu1 %v4956_v10, %s2605_s11  ;;  %v2200_v34 = vmul.f32 %v2059_v57, %v5879_v62  ;;  %v5884_v62 = vld [vmem:[#allocation38_spill] sm:$0xff] }
 0x5aa   : > { %2103 = vrot.lane.b32.xlu1 %v4898_v23, %s2608_s18 }
 0x5f4   : > { %v1915_v48 = vpop.permute.xlu1 %1914  ;;  %v1913_v33 = vpop.permute.xlu0 %1912 }
 0x5f5   : > { %v1919_v5 = vsel %vm228_vm1, %v1915_v48, %v5017_v28  ;;  %v1916_v54 = vsel %vm228_vm1, %v1913_v33, %v1915_v48  ;;  %v5880_v48 = vld [vmem:[#allocation25_spill] sm:$0xff] }
 0x5f6   : > { %v2198_v33 = vmul.f32 %v4951_v8, %v5880_v48  ;;  %v5151_v60 = vsel %vm2712_vm3, %v4901_v11, %v1919_v5  ;;  %v5885_v48 = vld [vmem:[#allocation37_spill] sm:$0xff] }
 0x5f8   : > { %v1961_v26 = vpop.permute.xlu1 %1960  ;;  %v1959_v29 = vpop.permute.xlu0 %1958 }
 0x5f9   : > { %v1962_v45 = vsel %vm280_vm0, %v1959_v29, %v1961_v26  ;;  %v1965_v31 = vsel %vm280_vm0, %v5031_v56, %v1959_v29  ;;  %v5156_v26 = vsel %vm2708_vm2, %v4898_v23, %v1916_v54  ;;  %v5881_v29 = vld [vmem:[#allocation28_spill] sm:$0xff] }
 0x5fa   : > { %v5123_v30 = vsel %vm2716_vm4, %v4898_v23, %v1965_v31  ;;  %v5128_v58 = vsel %vm2720_vm5, %v4901_v11, %v1962_v45  ;;  %v2202_v1 = vmul.f32 %v2068_v3, %v5881_v29  ;;  %v5882_v45 = vld [vmem:[#allocation44_spill] sm:$0xff]  ;;  %v2004_v29 = vsel %vm356_vm7, %v2001_v32, %v5098_v6 }
 0x5fb   : > { %2082 = vrot.lane.b32.xlu1 %v5123_v30, %s2602_s8  ;;  %2094 = vrot.lane.b32.xlu0 %v5128_v58, %s2604_s10  ;;  %v5887_v32 = vld [vmem:[#allocation64_spill] sm:$0xff] }
 0x5fc   : > { %v5139_v56 = vpop.permute.xlu1 %2108  ;;  %v2077_v13 = vpop.permute.xlu0 %2076 }
 0x5fd   : > { %v2079_v28 = vsel %vm414_vm8, %v5106_v52, %v2077_v13  ;;  %v5883_v13 = vld [vmem:[#allocation48_spill] sm:$0xff] }
 0x5fe   : > { %v2080_v51 = vsel %vm356_vm7, %v2079_v28, %v4951_v8  ;;  %v2234_v8 = vadd.f32 %v2200_v34, %v2198_v33  ;;  %v2182_v3 = vmul.f32 %v4917_v15, %v5883_v13  ;;  %v2186_v28 = vmul.f32 %v2007_v38, %v5884_v62 }
 0x5ff   : > { %v2204_v31 = vmul.f32 %v2080_v51, %v5882_v45  ;;  %2128 = vrot.lane.b32.xlu1 %v5151_v60, %s2604_s10  ;;  %2116 = vrot.lane.b32.xlu0 %v5156_v26, %s2602_s8  ;;  %s2544_s8 = scalar_lea.vmem %s2543_s7, 256 }
 0x600   : > { %v5170_v42 = vpop.permute.xlu1 %2152  ;;  %v2011_v57 = vpop.permute.xlu0 %2010  ;;  %v2226_v41 = vadd.f32 %v2184_v55, %v2182_v3  ;;  %p2546_p1 = scmp.lt.s32.totalorder %s2544_s8, %s2538_s6 }
 0x601   : > { %v2236_v5 = vadd.f32 %v2204_v31, %v2202_v1  ;;  %v2015_v54 = vsel %vm356_vm7, %v2011_v57, %v4917_v15  ;;  %v5886_v1 = vld [vmem:[#allocation53_spill] sm:$0xff] }
 0x602   : > { %v2188_v51 = vmul.f32 %v2015_v54, %v5885_v48  ;;  %v2181_v31 = vmul.f32 %v4922_v36, %v5886_v1  ;;  %v2026_v36 = vsel %vm331_vm6, %v4968_v22, %v5104_v47  ;;  %v2196_v1 = vmul.f32 %v4973_v27, %v4720_v21  ;;  %p2547_p2 = por %p2546_p1, %p2545_p0 }
 0x603   : > { %v2252_v45 = vadd.f32 %v2236_v5, %v2234_v8  ;;  %2119 = vrot.lane.b32.xlu1 %v5156_v26, %s2607_s13  ;;  %2138 = vrot.lane.b32.xlu0 %v5128_v58, %s2606_s12  ;;  %v2185_v8 = vmul.f32 %v2004_v29, %v5887_v32  ;;  %v5889_v32 = vld [vmem:[#allocation57_spill] sm:$0xff] }
 0x604   : > { %v2228_v34 = vadd.f32 %v2188_v51, %v2186_v28  ;;  %v2009_v15 = vpop.permute.xlu1 %2008  ;;  %v2022_v33 = vpop.permute.xlu0 %2021  ;;  %v2225_v18 = vadd.f32 %v2183_v53, %v2181_v31  ;;  %p2548_p3 = pnand %p2547_p2, %p2541_p13 }
 0x605   : > { %v2012_v38 = vsel %vm356_vm7, %v2009_v15, %v2011_v57 }
 0x606   : > { %v2248_v5 = vadd.f32 %v2228_v34, %v2226_v41  ;;  %v2187_v54 = vmul.f32 %v2012_v38, %v4542_v39  ;;  %v5888_v34 = vld [vmem:[#allocation18_spill] sm:$0xff] }
 0x607   : > { %2163 = vrot.lane.b32.xlu1 %v5151_v60, %s2605_s11  ;;  %2160 = vrot.lane.b32.xlu0 %v5151_v60, %s2606_s12 }
 0x608   : > { %v2258_v14 = vadd.f32 %v2248_v5, %v5078_v46  ;;  %v2227_v55 = vadd.f32 %v2187_v54, %v2185_v8  ;;  %v2020_v13 = vpop.permute.xlu1 %2019  ;;  %v2031_v57 = vpop.permute.xlu0 %2030 }
 0x609   : > { %v2027_v62 = vsel %vm384_vm9, %v2026_v36, %v2020_v13  ;;  %v2023_v41 = vsel %vm384_vm9, %v2020_v13, %v2022_v33 }
 0x60a   : > { %v2247_v3 = vadd.f32 %v2227_v55, %v2225_v18  ;;  %v2189_v47 = vmul.f32 %v2027_v62, %v5859_v16  ;;  %v2190_v38 = vmul.f32 %v2023_v41, %v4697_v2  ;;  %v5890_v55 = vld [vmem:[#allocation41_spill] sm:$0xff]  ;;  %v5891_v62 = vld [vmem:[#allocation55_spill] sm:$0xff] }
 0x60b   : > { %2144 = vrot.lane.b32.xlu1 %v5128_v58, %s2603_s9  ;;  %2085 = vrot.lane.b32.xlu0 %v5123_v30, %s2607_s13 }
 0x60c   : > { %v2257_v39 = vadd.f32 %v2247_v3, %v5076_v37  ;;  %v2029_v28 = vpop.permute.xlu1 %2028  ;;  %v2042_v29 = vpop.permute.xlu0 %2041  ;;  %v2046_v37 = vsel %vm331_vm6, %v4956_v10, %v5100_v40 }
 0x60d   : > { %v2032_v46 = vsel %vm384_vm9, %v2029_v28, %v2031_v57  ;;  %v5208_v48 = vsel %vm384_vm9, %v5049_v20, %v2029_v28 }
 0x60e   : > { %v2191_v51 = vmul.f32 %v5208_v48, %v5857_v63  ;;  %v2192_v20 = vmul.f32 %v2032_v46, %v4711_v19  ;;  %v2195_v63 = vmul.f32 %v4968_v22, %v5888_v34 }
 0x60f   : > { %2092 = vrot.lane.b32.xlu1 %v5123_v30, %s2604_s10  ;;  %2141 = vrot.lane.b32.xlu0 %v5128_v58, %s2605_s11 }
 0x610   : > { %v2229_v53 = vadd.f32 %v2191_v51, %v2189_v47  ;;  %v2040_v16 = vpop.permute.xlu1 %2039  ;;  %v2230_v19 = vadd.f32 %v2192_v20, %v2190_v38  ;;  %v2061_v5 = vpop.permute.xlu0 %2060  ;;  %v5893_v47 = vld [vmem:[#allocation47_spill] sm:$0xff] }
 0x611   : > { %v2043_v15 = vsel %vm384_vm9, %v2040_v16, %v2042_v29  ;;  %v2047_v33 = vsel %vm384_vm9, %v2046_v37, %v2040_v16 }
 0x612   : > { %v2193_v31 = vmul.f32 %v2047_v33, %v4570_v35  ;;  %v2194_v40 = vmul.f32 %v2043_v15, %v5889_v32  ;;  %v2064_v35 = vsel %vm414_vm8, %v2061_v5, %v5102_v24 }
 0x613   : > { %2126 = vrot.lane.b32.xlu1 %v5156_v26, %s2604_s10  ;;  %2088 = vrot.lane.b32.xlu0 %v5123_v30, %s2608_s18  ;;  %v2201_v28 = vmul.f32 %v2064_v35, %v5891_v62 }
 0x614   : > { %v2231_v22 = vadd.f32 %v2195_v63, %v2193_v31  ;;  %v2232_v8 = vadd.f32 %v2196_v1, %v2194_v40  ;;  %v2049_v54 = vpop.permute.xlu1 %2048 }
 0x615   : > { %v2052_v2 = vsel %vm414_vm8, %v2049_v54, %v5108_v12  ;;  %v5892_v12 = vld [vmem:[#allocation31_spill] sm:$0xff] }
 0x616   : > { %v2249_v18 = vadd.f32 %v2231_v22, %v2229_v53  ;;  %v2250_v21 = vadd.f32 %v2232_v8, %v2230_v19  ;;  %v2199_v13 = vmul.f32 %v2052_v2, %v5890_v55  ;;  %v2197_v46 = vmul.f32 %v4956_v10, %v5892_v12  ;;  %v5894_v55 = vld [vmem:[#allocation27_spill] sm:$0xff] }
 0x617   : > { %2122 = vrot.lane.b32.xlu0 %v5156_v26, %s2608_s18 }
 0x618   : > { %v2260_v27 = vadd.f32 %v2252_v45, %v2250_v21  ;;  %v2070_v57 = vpop.permute.xlu1 %2069  ;;  %v2233_v29 = vadd.f32 %v2199_v13, %v2197_v46  ;;  %v2213_v13 = vmul.f32 %v5156_v26, %v5894_v55 }
 0x619   : > { %v2073_v36 = vsel %vm414_vm8, %v2070_v57, %v5106_v52 }
 0x61a   : > { %v5244_v3 = vadd.f32 %v2260_v27, %v2258_v14  ;;  %v2203_v51 = vmul.f32 %v2073_v36, %v5893_v47  ;;  %v5895_v47 = vld [vmem:[#allocation43_spill] sm:$0xff] }
 0x61b   : > { %2166 = vrot.lane.b32.xlu0 %v5151_v60, %s2603_s9 }
 0x61c   : > { %v2235_v45 = vadd.f32 %v2203_v51, %v2201_v28  ;;  %v2104_v14 = vpop.permute.xlu1 %2103  ;;  %v2214_v51 = vmul.f32 %v5151_v60, %v5895_v47 }
 0x61e   : > { %v2251_v41 = vadd.f32 %v2235_v45, %v2233_v29  ;;  %v5896_v45 = vld [vmem:[#allocation42_spill] sm:$0xff] }
 0x61f   : > { %2106 = vrot.lane.b32.xlu0 %v4898_v23, %s2604_s10  ;;  %v2155_v23 = vsel %vm459_vm11, %v5139_v56, %v5170_v42 }
 0x620   : > { %v2259_v37 = vadd.f32 %v2251_v41, %v2249_v18  ;;  %v2156_v22 = vsel %vm513_vm12, %v2155_v23, %v5102_v24  ;;  %v2212_v41 = vmul.f32 %v5128_v58, %v5896_v45 }
 0x621   : > { %v2157_v35 = vsel %vm414_vm8, %v2156_v22, %v5098_v6 }
 0x622   : > { %v5254_v52 = vadd.f32 %v2259_v37, %v2257_v39  ;;  %v2158_v6 = vsel %vm356_vm7, %v2157_v35, %v4901_v11 }
 0x66d   : > { %v2083_v20 = vpop.permute.xlu1 %2082  ;;  %v2095_v53 = vpop.permute.xlu0 %2094 }
 0x66e   : > { %v2099_v54 = vsel %vm331_vm6, %v5123_v30, %v2083_v20  ;;  %v5897_v20 = vld [vmem:[#allocation39_spill] sm:$0xff] }
 0x671   : > { %v2129_v16 = vpop.permute.xlu1 %2128  ;;  %v2117_v34 = vpop.permute.xlu0 %2116 }
 0x672   : > { %v2133_v8 = vsel %vm331_vm6, %v5156_v26, %v2117_v34 }
 0x675   : > { %v2120_v10 = vpop.permute.xlu1 %2119  ;;  %v2139_v63 = vpop.permute.xlu0 %2138 }
 0x676   : > { %v2147_v39 = vsel %vm459_vm11, %v2095_v53, %v2139_v63  ;;  %v2134_v2 = vsel %vm384_vm9, %v2133_v8, %v2120_v10 }
 0x679   : > { %v2164_v15 = vpop.permute.xlu1 %2163  ;;  %v2161_v33 = vpop.permute.xlu0 %2160 }
 0x67a   : > { %v2169_v18 = vsel %vm459_vm11, %v2129_v16, %v2161_v33 }
 0x67b   : > { %v2170_v12 = vsel %vm513_vm12, %v2169_v18, %v2164_v15 }
 0x67d   : > { %v2086_v38 = vpop.permute.xlu0 %2085  ;;  %v2145_v1 = vpop.permute.xlu1 %2144 }
 0x67e   : > { %v2100_v27 = vsel %vm384_vm9, %v2099_v54, %v2086_v38 }
 0x681   : > { %v2142_v31 = vpop.permute.xlu0 %2141  ;;  %v2093_v32 = vpop.permute.xlu1 %2092 }
 0x682   : > { %v2148_v19 = vsel %vm513_vm12, %v2147_v39, %v2142_v31  ;;  %v2096_v36 = vsel %vm459_vm11, %v2093_v32, %v2095_v53  ;;  %v2211_v53 = vmul.f32 %v5123_v30, %v5897_v20  ;;  %v5898_v30 = vld [vmem:[#allocation29_spill] sm:$0xff] }
 0x683   : > { %v2149_v42 = vsel %vm414_vm8, %v2148_v19, %v2145_v1  ;;  %v2215_v11 = vmul.f32 %v2096_v36, %v5863_v61  ;;  %v2206_v15 = vmul.f32 %v2096_v36, %v4735_v4  ;;  %v2218_v38 = vmul.f32 %v2158_v6, %v5898_v30 }
 0x684   : > { %v2150_v62 = vsel %vm356_vm7, %v2149_v42, %v5128_v58  ;;  %v2113_v58 = vsel %vm465_vm10, %v5208_v48, %v2104_v14 }
 0x685   : > { %v2089_v40 = vpop.permute.xlu0 %2088  ;;  %v2127_v21 = vpop.permute.xlu1 %2126  ;;  %v2216_v34 = vmul.f32 %v2150_v62, %v4749_v7 }
 0x686   : > { %v2101_v57 = vsel %vm465_vm10, %v2100_v27, %v2089_v40  ;;  %v2130_v28 = vsel %vm459_vm11, %v2127_v21, %v2129_v16 }
 0x687   : > { %v2102_v37 = vsel %vm459_vm11, %v2101_v57, %v2093_v32  ;;  %v2210_v10 = vmul.f32 %v2130_v28, %v4763_v44  ;;  %v2242_v14 = vadd.f32 %v2216_v34, %v2214_v51 }
 0x688   : > { %v2205_v61 = vmul.f32 %v2102_v37, %v5862_v17 }
 0x689   : > { %v2123_v5 = vpop.permute.xlu0 %2122  ;;  %v2240_v32 = vadd.f32 %v2212_v41, %v2210_v10 }
 0x68a   : > { %v2135_v24 = vsel %vm465_vm10, %v2134_v2, %v2123_v5 }
 0x68b   : > { %v2136_v26 = vsel %vm459_vm11, %v2135_v24, %v2127_v21 }
 0x68c   : > { %v2209_v33 = vmul.f32 %v2136_v26, %v5867_v50  ;;  %v2241_v50 = vadd.f32 %v2215_v11, %v2213_v13 }
 0x68d   : > { %v2167_v46 = vpop.permute.xlu0 %2166 }
 0x68e   : > { %v2171_v29 = vsel %vm414_vm8, %v2170_v12, %v2167_v46 }
 0x68f   : > { %v2172_v16 = vsel %vm356_vm7, %v2171_v29, %v5151_v60  ;;  %v2219_v60 = vmul.f32 %v2130_v28, %v5868_v25  ;;  %v2239_v25 = vadd.f32 %v2211_v53, %v2209_v33 }
 0x690   : > { %v2220_v63 = vmul.f32 %v2172_v16, %v4739_v9 }
 0x691   : > { %v2107_v1 = vpop.permute.xlu0 %2106 }
 0x692   : > { %v2110_v7 = vsel %vm459_vm11, %v2107_v1, %v5139_v56  ;;  %v2114_v44 = vsel %vm459_vm11, %v2113_v58, %v2107_v1  ;;  %v2244_v9 = vadd.f32 %v2220_v63, %v2218_v38 }
 0x693   : > { %v2207_v31 = vmul.f32 %v2114_v44, %v5866_v59  ;;  %v2208_v48 = vmul.f32 %v2110_v7, %v4701_v43  ;;  %v2217_v4 = vmul.f32 %v2110_v7, %v5864_v0 }
 0x694   : > { %v2256_v56 = vadd.f32 %v2244_v9, %v2242_v14 }
 0x695   : > { %v2237_v23 = vadd.f32 %v2207_v31, %v2205_v61  ;;  %v2238_v17 = vadd.f32 %v2208_v48, %v2206_v15  ;;  %v2243_v40 = vadd.f32 %v2219_v60, %v2217_v4 }
 0x697   : > { %v2253_v39 = vadd.f32 %v2239_v25, %v2237_v23  ;;  %v2254_v19 = vadd.f32 %v2240_v32, %v2238_v17  ;;  %v2255_v22 = vadd.f32 %v2243_v40, %v2241_v50 }
 0x699   : > { %v2261_v8 = vadd.f32 %v2255_v22, %v2253_v39  ;;  %v2262_v59 = vadd.f32 %v2256_v56, %v2254_v19 }
 0x69b   : > { %v2265_v43 = vadd.f32 %v5254_v52, %v2261_v8  ;;  %v2266_v0 = vadd.f32 %v5244_v3, %v2262_v59 }
 0x69d   : > { %v2267_v5 = vmul.f32 %v2265_v43, %v4895_v49  ;;  %v2268_v54 = vmul.f32 %v2266_v0, %v4895_v49 }
 0x69f   : > { %v2271_v2 = vcombine.low %v2267_v5, %v2268_v54 }
 0x6a1   : > { %2273 = vst [vmem:[%s179_s27] sm:$0xff] %v2271_v2 }
 0x6a2   : > { %2551 = shalt.err (!%p2548_p3)
}
 0x6a3   : > { %s2552_s9 = scalar_lea.hbm %s2287_s4, 128  ;;  %s2556_s12 = scalar_lea.hbm %s5353_s3, 256 }
 0x6a4   : > { %p2553_p4 = scmp.ne.s32.totalorder %s2287_s4, %s2552_s9  ;;  %p2557_p9 = scmp.lt.s32.totalorder %s2287_s4, %s5353_s3 }
 0x6a5   : > { %p2558_p10 = scmp.lt.s32.totalorder %s2556_s12, %s2552_s9 }
 0x6a6   : > { %p2554_p7 = pnand %p2553_p4, %p2671_p5 }
 0x6a7   : > { %p2559_p11 = por %p2558_p10, %p2557_p9 }
 0x6a8   : > { %p2555_p8 = pneg %p2554_p7 }
 0x6aa   : > { %p2560_p12 = pnand %p2559_p11, %p2555_p8 }
 0x6ac   : > { %2563 = shalt.err (!%p2560_p12)
}
 0x6ad   : > { %2377 = dma.vmem_to_hbm [thread:$0]  (%p2671_p5), %s2290_s28, 128, %s2287_s4, %s2275_s5  }
 0x6ae PF: > { %p2383_p13 = scmp.ge.s32.totalorder %s2598_s17, 2  ;;  %s2301_s20 = sand.u32 1, %s2586_s14  }
 0x6af   : > { %s2302_s21 = scalar_lea.sflag [#allocation4], %s2301_s20 }
 0x6b0   : > { %p2380_p0 = pnand %p2383_p13, %p2675_p6 }
 0x6b2   : > { %p2381_p1 = pneg %p2380_p0 }
 0x6b4   : > { %2581 = dma.done.wait (%p2381_p1), %s2302_s21, 128  }
 0x6b5   : > { %2583 = vsyncadd (%p2381_p1), %s2302_s21, 4294967168  ;;  %p14_p2 = scmp.ge.s32.totalorder %s2658_s19, 4   ;;  %s5899_s14 = smov %s2590_s15 }
 0x6b6   : > { %s5900_s15 = smov %s2594_s16  ;;  %s5901_s16 = smov %s2669_s22 }
 0x6b7   : > { %s5902_s17 = smov %s2658_s19  ;;  %16 = sbr.rel (!%p14_p2) target bundleno = 5 (0x5), region = 70 }
 0x6bc   :  { %2307 = vsyncpa [#allocation4], 1 }
 0x6bd   :  { %2309 = vsyncpa [#allocation4 + $0x1], 1 }

</bundles_post_ra>
